<compile_context>
chip_gen: v7x
topology: tpu7x:2x2x1
jax: 0.10.0
libtpu: 0.0.40
codegen_flags: <defaults>
</compile_context>

<pallas_src>
import math

import jax
import jax.numpy as jnp
import numpy as np
from jax.experimental import pallas as pl
from jax.experimental.pallas import tpu as pltpu

_BF16 = jnp.bfloat16


# ----------------------------------------------------------------------------
# shared helpers (usable inside and outside kernels)
# ----------------------------------------------------------------------------
def _layer_norm(x, gamma, beta, eps=1e-5):
    mu = jnp.mean(x, axis=-1, keepdims=True)
    var = jnp.mean((x - mu) ** 2, axis=-1, keepdims=True)
    return (x - mu) * jax.lax.rsqrt(var + eps) * gamma + beta


def _rand(key, shape, scale):
    return (scale * jax.random.normal(key, shape)).astype(jnp.float32)


def positional_encoding(n_pos, d_model):
    position = jnp.arange(n_pos, dtype=jnp.float32)[:, None]
    div_term = jnp.exp(jnp.arange(0, d_model, 2, dtype=jnp.float32)
                       * (-math.log(10000.0) / d_model))
    pe = jnp.zeros((n_pos, d_model), jnp.float32)
    pe = pe.at[:, 0::2].set(jnp.sin(position * div_term))
    pe = pe.at[:, 1::2].set(jnp.cos(position * div_term))
    return pe


def _make_patches(x, patch_size):
    B, L, C = x.shape
    n_patches = L // patch_size
    if L % patch_size != 0:
        pad_len = patch_size - L % patch_size
        # F.pad(..., mode='replicate') along the time dim
        x = jnp.concatenate([x, jnp.repeat(x[:, -1:, :], pad_len, axis=1)], axis=1)
        n_patches += 1
    patches = x[:, :n_patches * patch_size].reshape(B, n_patches, patch_size * C)
    return patches, n_patches


# ----------------------------------------------------------------------------
# parameter construction (logical, PyTorch-like, f32)
# ----------------------------------------------------------------------------
def init_params(key, input_dim, patch_size, d_model, nhead, num_layers,
                output_dim, horizon, dim_ff):
    K = patch_size * input_dim
    keys = iter(jax.random.split(key, 4 + 12 * num_layers))
    p = {}
    p["we_t"] = _rand(next(keys), (K, d_model), 0.02)
    p["be"] = _rand(next(keys), (1, d_model), 0.01)
    p["layers"] = []
    for _ in range(num_layers):
        lp = {
            "wq_t": _rand(next(keys), (d_model, d_model), 0.02),
            "bq": _rand(next(keys), (1, d_model), 0.01),
            "wk_t": _rand(next(keys), (d_model, d_model), 0.02),
            "bk": _rand(next(keys), (1, d_model), 0.01),
            "wv_t": _rand(next(keys), (d_model, d_model), 0.02),
            "bv": _rand(next(keys), (1, d_model), 0.01),
            "wo_t": _rand(next(keys), (d_model, d_model), 0.02),
            "bo": _rand(next(keys), (1, d_model), 0.01),
            "ln1_g": jnp.ones((1, d_model), jnp.float32),
            "ln1_b": jnp.zeros((1, d_model), jnp.float32),
            "w1_t": _rand(next(keys), (d_model, dim_ff), 0.02),
            "b1": _rand(next(keys), (1, dim_ff), 0.01),
            "w2_t": _rand(next(keys), (dim_ff, d_model), 0.02),
            "b2": _rand(next(keys), (1, d_model), 0.01),
            "ln2_g": jnp.ones((1, d_model), jnp.float32),
            "ln2_b": jnp.zeros((1, d_model), jnp.float32),
        }
        p["layers"].append(lp)
    p["wout_t"] = _rand(next(keys), (d_model, output_dim * horizon), 0.02)
    p["bout"] = _rand(next(keys), (1, output_dim * horizon), 0.01)
    return p


def _pack_params(params, nhead):
    """Host-side packing into the kernel layout:
    per-layer weights stacked on a leading layer axis, QKV weights split
    per head into (L, H, D, hd), matmul weights cast to bf16, biases / LN f32."""
    D = params["we_t"].shape[1]
    hd = D // nhead
    layers = params["layers"]

    def stack(name):
        return jnp.stack([lp[name] for lp in layers])

    def stack_bf(name):
        return jnp.stack([lp[name] for lp in layers]).astype(_BF16)

    def per_head_w(name):
        # (D, D) -> (H, D, hd); stacked -> (L, H, D, hd)
        return jnp.stack([lp[name].reshape(D, nhead, hd).transpose(1, 0, 2)
                          for lp in layers]).astype(_BF16)

    def per_head_b(name):
        # (1, D) -> (H, 1, hd); stacked -> (L, H, 1, hd)
        return jnp.stack([lp[name].reshape(nhead, hd)[:, None, :]
                          for lp in layers])

    return dict(
        we=params["we_t"].astype(_BF16), be=params["be"],
        wq=per_head_w("wq_t"), bq=per_head_b("bq"),
        wk=per_head_w("wk_t"), bk=per_head_b("bk"),
        wv=per_head_w("wv_t"), bv=per_head_b("bv"),
        wo=stack_bf("wo_t"), bo=stack("bo"),
        ln1g=stack("ln1_g"), ln1b=stack("ln1_b"),
        w1=stack_bf("w1_t"), b1=stack("b1"),
        w2=stack_bf("w2_t"), b2=stack("b2"),
        ln2g=stack("ln2_g"), ln2b=stack("ln2_b"),
        wout=params["wout_t"].astype(_BF16), bout=params["bout"],
    )


def _full_spec(shape):
    ndim = len(shape)

    def index_map(i):
        return (0,) * ndim

    return pl.BlockSpec(shape, index_map)


# ----------------------------------------------------------------------------
# fully fused forward: one pallas_call for the whole model
# ----------------------------------------------------------------------------
def patchtst_forward(x, params, patch_size, nhead, horizon):
    B = x.shape[0]
    patches, P = _make_patches(x, patch_size)           # (B, P, K)
    K = patches.shape[-1]
    D = params["we_t"].shape[1]
    O = params["wout_t"].shape[1]
    num_layers = len(params["layers"])
    hd = D // nhead
    scale = 1.0 / math.sqrt(hd)

    # pad patch count to a full sublane tile and flatten batch into tokens
    P_pad = ((P + 7) // 8) * 8
    T = B * P_pad

    kp = _pack_params(params, nhead)

    patches_pad = jnp.pad(patches, ((0, 0), (0, P_pad - P), (0, 0)))
    patches_flat = patches_pad.reshape(T, K).astype(_BF16)          # (T, K)
    pe_full = jnp.tile(positional_encoding(P_pad, D), (B, 1))       # (T, D) f32

    # static masks (compile-time constants)
    tok = np.arange(T)
    same_batch = (tok[:, None] // P_pad) == (tok[None, :] // P_pad)
    valid_key = (tok[None, :] % P_pad) < P
    attn_bias = jnp.asarray(
        np.where(same_batch & valid_key, 0.0, -1e30).astype(np.float32))  # (T, T)

    pool_np = np.zeros((B, T), np.float32)
    for b in range(B):
        pool_np[b, b * P_pad:b * P_pad + P] = 1.0 / P
    pool_w = jnp.asarray(pool_np)                                    # (B, T)

    def kernel(patches_ref, pe_ref, bias_ref, poolw_ref,
               we_ref, be_ref,
               wq_ref, bq_ref, wk_ref, bk_ref, wv_ref, bv_ref,
               wo_ref, bo_ref, ln1g_ref, ln1b_ref,
               w1_ref, b1_ref, w2_ref, b2_ref, ln2g_ref, ln2b_ref,
               wout_ref, bout_ref,
               out_ref, attn_scr):
        # ---- patch embedding + positional encoding (all tokens at once) ----
        h = jnp.dot(patches_ref[...], we_ref[...],
                    preferred_element_type=jnp.float32)
        h = h + be_ref[...] + pe_ref[...]                 # (T, D) f32

        bias = bias_ref[...]                              # (T, T) additive mask

        # ---- encoder stack: activation stays on-chip across layers ----
        for l in range(num_layers):
            hb = h.astype(_BF16)
            # multi-head self-attention: per-head weights, no activation
            # lane-slicing; head outputs written straight into VMEM scratch.
            for hh in range(nhead):
                q = jnp.dot(hb, wq_ref[l, hh],
                            preferred_element_type=jnp.float32) + bq_ref[l, hh]
                k = jnp.dot(hb, wk_ref[l, hh],
                            preferred_element_type=jnp.float32) + bk_ref[l, hh]
                v = jnp.dot(hb, wv_ref[l, hh],
                            preferred_element_type=jnp.float32) + bv_ref[l, hh]
                s = jax.lax.dot_general(
                    q.astype(_BF16), k.astype(_BF16),
                    dimension_numbers=(((1,), (1,)), ((), ())),
                    preferred_element_type=jnp.float32) * scale + bias
                s = s - jnp.max(s, axis=-1, keepdims=True)
                p = jnp.exp(s)
                p = p * pl.reciprocal(jnp.sum(p, axis=-1, keepdims=True),
                                      approx=True)
                ctx = jnp.dot(p.astype(_BF16), v.astype(_BF16),
                              preferred_element_type=jnp.float32)
                attn_scr[:, hh * hd:(hh + 1) * hd] = ctx
            attn = jnp.dot(attn_scr[...].astype(_BF16), wo_ref[l],
                           preferred_element_type=jnp.float32) + bo_ref[l]
            # dropout is identity in eval mode
            h = _layer_norm(h + attn, ln1g_ref[l], ln1b_ref[l])
            # feed-forward (ReLU, TransformerEncoderLayer default)
            ffh = jnp.dot(h.astype(_BF16), w1_ref[l],
                          preferred_element_type=jnp.float32) + b1_ref[l]
            ffh = jnp.maximum(ffh, 0.0)
            ff = jnp.dot(ffh.astype(_BF16), w2_ref[l],
                         preferred_element_type=jnp.float32) + b2_ref[l]
            h = _layer_norm(h + ff, ln2g_ref[l], ln2b_ref[l])

        # ---- masked mean-pool over valid patches + output projection ----
        pooled = jnp.dot(poolw_ref[...], h,
                         preferred_element_type=jnp.float32)        # (B, D)
        out_ref[...] = jnp.dot(pooled.astype(_BF16), wout_ref[...],
                               preferred_element_type=jnp.float32) + bout_ref[...]

    args = (patches_flat, pe_full, attn_bias, pool_w,
            kp["we"], kp["be"],
            kp["wq"], kp["bq"], kp["wk"], kp["bk"], kp["wv"], kp["bv"],
            kp["wo"], kp["bo"], kp["ln1g"], kp["ln1b"],
            kp["w1"], kp["b1"], kp["w2"], kp["b2"], kp["ln2g"], kp["ln2b"],
            kp["wout"], kp["bout"])

    out = pl.pallas_call(
        kernel,
        out_shape=jax.ShapeDtypeStruct((B, O), jnp.float32),
        grid_spec=pltpu.PrefetchScalarGridSpec(
            num_scalar_prefetch=0,
            grid=(1,),                                   # single fused step
            in_specs=[_full_spec(a.shape) for a in args],
            out_specs=pl.BlockSpec((B, O), lambda i: (0, 0)),
            scratch_shapes=[pltpu.VMEM((T, D), jnp.float32)],
        ),
        compiler_params=pltpu.CompilerParams(
            dimension_semantics=("arbitrary",)),
    )(*args)
    return out.reshape(B, horizon, -1)


# ----------------------------------------------------------------------------
# pure-JAX reference mirroring the kernel's bf16-operand / f32-accumulate math
# ----------------------------------------------------------------------------
def reference_forward(x, params, patch_size, nhead, horizon):
    def mm(a, w):
        return jnp.dot(a.astype(_BF16), w.astype(_BF16),
                       preferred_element_type=jnp.float32)

    B = x.shape[0]
    patches, P = _make_patches(x, patch_size)
    D = params["we_t"].shape[1]
    hd = D // nhead
    h = mm(patches, params["we_t"]) + params["be"] + positional_encoding(P, D)
    for lp in params["layers"]:
        q = mm(h, lp["wq_t"]) + lp["bq"]
        k = mm(h, lp["wk_t"]) + lp["bk"]
        v = mm(h, lp["wv_t"]) + lp["bv"]

        def split(t):
            return t.reshape(B, P, nhead, hd).transpose(0, 2, 1, 3)

        qh, kh, vh = split(q), split(k), split(v)
        s = jnp.einsum("bhqd,bhkd->bhqk", qh.astype(_BF16), kh.astype(_BF16),
                       preferred_element_type=jnp.float32) / math.sqrt(hd)
        p = jax.nn.softmax(s, axis=-1)
        a = jnp.einsum("bhqk,bhkd->bhqd", p.astype(_BF16), vh.astype(_BF16),
                       preferred_element_type=jnp.float32)
        a = a.transpose(0, 2, 1, 3).reshape(B, P, D)
        a = mm(a, lp["wo_t"]) + lp["bo"]
        h1 = _layer_norm(h + a, lp["ln1_g"], lp["ln1_b"])
        ff = mm(jnp.maximum(mm(h1, lp["w1_t"]) + lp["b1"], 0.0),
                lp["w2_t"]) + lp["b2"]
        h = _layer_norm(h1 + ff, lp["ln2_g"], lp["ln2_b"])
    pooled = jnp.mean(h, axis=1)
    out = mm(pooled, params["wout_t"]) + params["bout"]
    return out.reshape(B, horizon, -1)


if __name__ == "__main__":
    # small shapes consistent with the module
    B, L, C = 2, 36, 4                        # batch, seq_len, input_dim
    patch_size, d_model, nhead, num_layers = 8, 64, 4, 2
    output_dim, horizon, dim_ff = 2, 6, 512   # dim_feedforward fixed at 512 in __init__

    key = jax.random.PRNGKey(0)
    kx, kp = jax.random.split(key)
    x = jax.random.normal(kx, (B, L, C), dtype=jnp.float32)
    params = init_params(kp, C, patch_size, d_model, nhead, num_layers,
                         output_dim, horizon, dim_ff)

    forward = jax.jit(patchtst_forward, static_argnums=(2, 3, 4))
    out = forward(x, params, patch_size, nhead, horizon)
    out = jax.block_until_ready(out)

    ref = reference_forward(x, params, patch_size, nhead, horizon)
    assert out.shape == (B, horizon, output_dim), out.shape
    # tolerance covers the EUP approximate reciprocal in the kernel softmax
    assert jnp.allclose(out, ref, atol=1e-2, rtol=1e-2), float(jnp.abs(out - ref).max())
    print("KERNEL_OK")
</pallas_src>

<mosaic_0001>
module attributes {stable_mosaic.version = 11 : i64} {
  func.func @kernel(%arg0: i32, %arg1: memref<16x32xbf16, #tpu.memory_space<vmem>>, %arg2: memref<16x64xf32, #tpu.memory_space<vmem>>, %arg3: memref<16x16xf32, #tpu.memory_space<vmem>>, %arg4: memref<2x16xf32, #tpu.memory_space<vmem>>, %arg5: memref<32x64xbf16, #tpu.memory_space<vmem>>, %arg6: memref<1x64xf32, #tpu.memory_space<vmem>>, %arg7: memref<2x4x64x16xbf16, #tpu.memory_space<vmem>>, %arg8: memref<2x4x1x16xf32, #tpu.memory_space<vmem>>, %arg9: memref<2x4x64x16xbf16, #tpu.memory_space<vmem>>, %arg10: memref<2x4x1x16xf32, #tpu.memory_space<vmem>>, %arg11: memref<2x4x64x16xbf16, #tpu.memory_space<vmem>>, %arg12: memref<2x4x1x16xf32, #tpu.memory_space<vmem>>, %arg13: memref<2x64x64xbf16, #tpu.memory_space<vmem>>, %arg14: memref<2x1x64xf32, #tpu.memory_space<vmem>>, %arg15: memref<2x1x64xf32, #tpu.memory_space<vmem>>, %arg16: memref<2x1x64xf32, #tpu.memory_space<vmem>>, %arg17: memref<2x64x512xbf16, #tpu.memory_space<vmem>>, %arg18: memref<2x1x512xf32, #tpu.memory_space<vmem>>, %arg19: memref<2x512x64xbf16, #tpu.memory_space<vmem>>, %arg20: memref<2x1x64xf32, #tpu.memory_space<vmem>>, %arg21: memref<2x1x64xf32, #tpu.memory_space<vmem>>, %arg22: memref<2x1x64xf32, #tpu.memory_space<vmem>>, %arg23: memref<64x12xbf16, #tpu.memory_space<vmem>>, %arg24: memref<1x12xf32, #tpu.memory_space<vmem>>, %arg25: memref<2x12xf32, #tpu.memory_space<vmem>>, %arg26: memref<16x64xf32, #tpu.memory_space<vmem>>) attributes {dimension_semantics = [#tpu.dimension_semantics<arbitrary>], iteration_bounds = array<i64: 1>, scalar_prefetch = 0 : i64, scratch_operands = 1 : i64, tpu.core_type = #tpu.core_type<tc>, window_params = [{pipeline_mode = #tpu.pipeline_mode<synchronous>, transform_indices = @transform_0, window_bounds = array<i64: 16, 32>}, {pipeline_mode = #tpu.pipeline_mode<synchronous>, transform_indices = @transform_1, window_bounds = array<i64: 16, 64>}, {pipeline_mode = #tpu.pipeline_mode<synchronous>, transform_indices = @transform_2, window_bounds = array<i64: 16, 16>}, {pipeline_mode = #tpu.pipeline_mode<synchronous>, transform_indices = @transform_3, window_bounds = array<i64: 2, 16>}, {pipeline_mode = #tpu.pipeline_mode<synchronous>, transform_indices = @transform_4, window_bounds = array<i64: 32, 64>}, {pipeline_mode = #tpu.pipeline_mode<synchronous>, transform_indices = @transform_5, window_bounds = array<i64: 1, 64>}, {pipeline_mode = #tpu.pipeline_mode<synchronous>, transform_indices = @transform_6, window_bounds = array<i64: 2, 4, 64, 16>}, {pipeline_mode = #tpu.pipeline_mode<synchronous>, transform_indices = @transform_7, window_bounds = array<i64: 2, 4, 1, 16>}, {pipeline_mode = #tpu.pipeline_mode<synchronous>, transform_indices = @transform_8, window_bounds = array<i64: 2, 4, 64, 16>}, {pipeline_mode = #tpu.pipeline_mode<synchronous>, transform_indices = @transform_9, window_bounds = array<i64: 2, 4, 1, 16>}, {pipeline_mode = #tpu.pipeline_mode<synchronous>, transform_indices = @transform_10, window_bounds = array<i64: 2, 4, 64, 16>}, {pipeline_mode = #tpu.pipeline_mode<synchronous>, transform_indices = @transform_11, window_bounds = array<i64: 2, 4, 1, 16>}, {pipeline_mode = #tpu.pipeline_mode<synchronous>, transform_indices = @transform_12, window_bounds = array<i64: 2, 64, 64>}, {pipeline_mode = #tpu.pipeline_mode<synchronous>, transform_indices = @transform_13, window_bounds = array<i64: 2, 1, 64>}, {pipeline_mode = #tpu.pipeline_mode<synchronous>, transform_indices = @transform_14, window_bounds = array<i64: 2, 1, 64>}, {pipeline_mode = #tpu.pipeline_mode<synchronous>, transform_indices = @transform_15, window_bounds = array<i64: 2, 1, 64>}, {pipeline_mode = #tpu.pipeline_mode<synchronous>, transform_indices = @transform_16, window_bounds = array<i64: 2, 64, 512>}, {pipeline_mode = #tpu.pipeline_mode<synchronous>, transform_indices = @transform_17, window_bounds = array<i64: 2, 1, 512>}, {pipeline_mode = #tpu.pipeline_mode<synchronous>, transform_indices = @transform_18, window_bounds = array<i64: 2, 512, 64>}, {pipeline_mode = #tpu.pipeline_mode<synchronous>, transform_indices = @transform_19, window_bounds = array<i64: 2, 1, 64>}, {pipeline_mode = #tpu.pipeline_mode<synchronous>, transform_indices = @transform_20, window_bounds = array<i64: 2, 1, 64>}, {pipeline_mode = #tpu.pipeline_mode<synchronous>, transform_indices = @transform_21, window_bounds = array<i64: 2, 1, 64>}, {pipeline_mode = #tpu.pipeline_mode<synchronous>, transform_indices = @transform_22, window_bounds = array<i64: 64, 12>}, {pipeline_mode = #tpu.pipeline_mode<synchronous>, transform_indices = @transform_23, window_bounds = array<i64: 1, 12>}, {pipeline_mode = #tpu.pipeline_mode<synchronous>, transform_indices = @transform_24, window_bounds = array<i64: 2, 12>}]} {
    %c0 = arith.constant 0 : index
    %c0_0 = arith.constant 0 : index
    %0 = vector.load %arg1[%c0, %c0_0] : memref<16x32xbf16, #tpu.memory_space<vmem>>, vector<16x32xbf16>
    %c0_1 = arith.constant 0 : index
    %c0_2 = arith.constant 0 : index
    %1 = vector.load %arg5[%c0_1, %c0_2] : memref<32x64xbf16, #tpu.memory_space<vmem>>, vector<32x64xbf16>
    %cst = arith.constant dense<0.000000e+00> : vector<16x64xf32>
    %2 = tpu.matmul %0, %1, %cst {dimension_numbers = #tpu.dot_dimension_numbers<[1], [0], [0], [1], [0, 0, 1, 1], [], []>} : vector<16x32xbf16>, vector<32x64xbf16>, vector<16x64xf32> -> vector<16x64xf32>
    %c0_3 = arith.constant 0 : index
    %c0_4 = arith.constant 0 : index
    %3 = vector.load %arg6[%c0_3, %c0_4] : memref<1x64xf32, #tpu.memory_space<vmem>>, vector<1x64xf32>
    %4 = vector.broadcast %3 : vector<1x64xf32> to vector<16x64xf32>
    %5 = arith.addf %2, %4 : vector<16x64xf32>
    %c0_5 = arith.constant 0 : index
    %c0_6 = arith.constant 0 : index
    %6 = vector.load %arg2[%c0_5, %c0_6] : memref<16x64xf32, #tpu.memory_space<vmem>>, vector<16x64xf32>
    %7 = arith.addf %5, %6 : vector<16x64xf32>
    %c0_7 = arith.constant 0 : index
    %c0_8 = arith.constant 0 : index
    %8 = vector.load %arg3[%c0_7, %c0_8] : memref<16x16xf32, #tpu.memory_space<vmem>>, vector<16x16xf32>
    %9 = arith.truncf %7 : vector<16x64xf32> to vector<16x64xbf16>
    %c0_9 = arith.constant 0 : index
    %c0_10 = arith.constant 0 : index
    %c0_11 = arith.constant 0 : index
    %c0_12 = arith.constant 0 : index
    %10 = vector.load %arg7[%c0_9, %c0_10, %c0_11, %c0_12] : memref<2x4x64x16xbf16, #tpu.memory_space<vmem>>, vector<1x1x64x16xbf16>
    %11 = vector.shape_cast %10 : vector<1x1x64x16xbf16> to vector<64x16xbf16>
    %cst_13 = arith.constant dense<0.000000e+00> : vector<16x16xf32>
    %12 = tpu.matmul %9, %11, %cst_13 {dimension_numbers = #tpu.dot_dimension_numbers<[1], [0], [0], [1], [0, 0, 1, 1], [], []>} : vector<16x64xbf16>, vector<64x16xbf16>, vector<16x16xf32> -> vector<16x16xf32>
    %c0_14 = arith.constant 0 : index
    %c0_15 = arith.constant 0 : index
    %c0_16 = arith.constant 0 : index
    %c0_17 = arith.constant 0 : index
    %13 = vector.load %arg8[%c0_14, %c0_15, %c0_16, %c0_17] : memref<2x4x1x16xf32, #tpu.memory_space<vmem>>, vector<1x1x1x16xf32>
    %14 = vector.shape_cast %13 : vector<1x1x1x16xf32> to vector<1x16xf32>
    %15 = vector.broadcast %14 : vector<1x16xf32> to vector<16x16xf32>
    %16 = arith.addf %12, %15 : vector<16x16xf32>
    %c0_18 = arith.constant 0 : index
    %c0_19 = arith.constant 0 : index
    %c0_20 = arith.constant 0 : index
    %c0_21 = arith.constant 0 : index
    %17 = vector.load %arg9[%c0_18, %c0_19, %c0_20, %c0_21] : memref<2x4x64x16xbf16, #tpu.memory_space<vmem>>, vector<1x1x64x16xbf16>
    %18 = vector.shape_cast %17 : vector<1x1x64x16xbf16> to vector<64x16xbf16>
    %cst_22 = arith.constant dense<0.000000e+00> : vector<16x16xf32>
    %19 = tpu.matmul %9, %18, %cst_22 {dimension_numbers = #tpu.dot_dimension_numbers<[1], [0], [0], [1], [0, 0, 1, 1], [], []>} : vector<16x64xbf16>, vector<64x16xbf16>, vector<16x16xf32> -> vector<16x16xf32>
    %c0_23 = arith.constant 0 : index
    %c0_24 = arith.constant 0 : index
    %c0_25 = arith.constant 0 : index
    %c0_26 = arith.constant 0 : index
    %20 = vector.load %arg10[%c0_23, %c0_24, %c0_25, %c0_26] : memref<2x4x1x16xf32, #tpu.memory_space<vmem>>, vector<1x1x1x16xf32>
    %21 = vector.shape_cast %20 : vector<1x1x1x16xf32> to vector<1x16xf32>
    %22 = vector.broadcast %21 : vector<1x16xf32> to vector<16x16xf32>
    %23 = arith.addf %19, %22 : vector<16x16xf32>
    %c0_27 = arith.constant 0 : index
    %c0_28 = arith.constant 0 : index
    %c0_29 = arith.constant 0 : index
    %c0_30 = arith.constant 0 : index
    %24 = vector.load %arg11[%c0_27, %c0_28, %c0_29, %c0_30] : memref<2x4x64x16xbf16, #tpu.memory_space<vmem>>, vector<1x1x64x16xbf16>
    %25 = vector.shape_cast %24 : vector<1x1x64x16xbf16> to vector<64x16xbf16>
    %cst_31 = arith.constant dense<0.000000e+00> : vector<16x16xf32>
    %26 = tpu.matmul %9, %25, %cst_31 {dimension_numbers = #tpu.dot_dimension_numbers<[1], [0], [0], [1], [0, 0, 1, 1], [], []>} : vector<16x64xbf16>, vector<64x16xbf16>, vector<16x16xf32> -> vector<16x16xf32>
    %c0_32 = arith.constant 0 : index
    %c0_33 = arith.constant 0 : index
    %c0_34 = arith.constant 0 : index
    %c0_35 = arith.constant 0 : index
    %27 = vector.load %arg12[%c0_32, %c0_33, %c0_34, %c0_35] : memref<2x4x1x16xf32, #tpu.memory_space<vmem>>, vector<1x1x1x16xf32>
    %28 = vector.shape_cast %27 : vector<1x1x1x16xf32> to vector<1x16xf32>
    %29 = vector.broadcast %28 : vector<1x16xf32> to vector<16x16xf32>
    %30 = arith.addf %26, %29 : vector<16x16xf32>
    %31 = arith.truncf %16 : vector<16x16xf32> to vector<16x16xbf16>
    %32 = arith.truncf %23 : vector<16x16xf32> to vector<16x16xbf16>
    %cst_36 = arith.constant dense<0.000000e+00> : vector<16x16xf32>
    %33 = tpu.matmul %31, %32, %cst_36 {dimension_numbers = #tpu.dot_dimension_numbers<[1], [1], [0], [0], [0, 0, 1, 0], [], []>} : vector<16x16xbf16>, vector<16x16xbf16>, vector<16x16xf32> -> vector<16x16xf32>
    %cst_37 = arith.constant 2.500000e-01 : f32
    %34 = vector.broadcast %cst_37 : f32 to vector<16x16xf32>
    %35 = arith.mulf %33, %34 : vector<16x16xf32>
    %36 = arith.addf %35, %8 : vector<16x16xf32>
    %cst_38 = arith.constant dense<0xFF800000> : vector<16xf32>
    %37 = vector.multi_reduction <maximumf>, %36, %cst_38 [1] : vector<16x16xf32> to vector<16xf32>
    %38 = vector.shape_cast %37 : vector<16xf32> to vector<16x1xf32>
    %39 = vector.broadcast %38 : vector<16x1xf32> to vector<16x16xf32>
    %40 = arith.subf %36, %39 : vector<16x16xf32>
    %41 = math.exp %40 : vector<16x16xf32>
    %cst_39 = arith.constant dense<0.000000e+00> : vector<16xf32>
    %42 = vector.multi_reduction <add>, %41, %cst_39 [1] : vector<16x16xf32> to vector<16xf32>
    %43 = vector.shape_cast %42 : vector<16xf32> to vector<16x1xf32>
    %44 = tpu.reciprocal %43 {approx = true} : vector<16x1xf32> -> vector<16x1xf32>
    %45 = vector.broadcast %44 : vector<16x1xf32> to vector<16x16xf32>
    %46 = arith.mulf %41, %45 : vector<16x16xf32>
    %47 = arith.truncf %46 : vector<16x16xf32> to vector<16x16xbf16>
    %48 = arith.truncf %30 : vector<16x16xf32> to vector<16x16xbf16>
    %cst_40 = arith.constant dense<0.000000e+00> : vector<16x16xf32>
    %49 = tpu.matmul %47, %48, %cst_40 {dimension_numbers = #tpu.dot_dimension_numbers<[1], [0], [0], [1], [0, 0, 1, 1], [], []>} : vector<16x16xbf16>, vector<16x16xbf16>, vector<16x16xf32> -> vector<16x16xf32>
    %c0_41 = arith.constant 0 : index
    %c0_42 = arith.constant 0 : index
    %50 = vector.load %arg26[%c0_41, %c0_42] : memref<16x64xf32, #tpu.memory_space<vmem>>, vector<16x16xf32>
    tpu.vector_store %arg26[%c0_41, %c0_42], %49 {strides = array<i32>} : memref<16x64xf32, #tpu.memory_space<vmem>>, vector<16x16xf32>,
    %c0_43 = arith.constant 0 : index
    %c1 = arith.constant 1 : index
    %c0_44 = arith.constant 0 : index
    %c0_45 = arith.constant 0 : index
    %51 = vector.load %arg7[%c0_43, %c1, %c0_44, %c0_45] : memref<2x4x64x16xbf16, #tpu.memory_space<vmem>>, vector<1x1x64x16xbf16>
    %52 = vector.shape_cast %51 : vector<1x1x64x16xbf16> to vector<64x16xbf16>
    %cst_46 = arith.constant dense<0.000000e+00> : vector<16x16xf32>
    %53 = tpu.matmul %9, %52, %cst_46 {dimension_numbers = #tpu.dot_dimension_numbers<[1], [0], [0], [1], [0, 0, 1, 1], [], []>} : vector<16x64xbf16>, vector<64x16xbf16>, vector<16x16xf32> -> vector<16x16xf32>
    %c0_47 = arith.constant 0 : index
    %c1_48 = arith.constant 1 : index
    %c0_49 = arith.constant 0 : index
    %c0_50 = arith.constant 0 : index
    %54 = vector.load %arg8[%c0_47, %c1_48, %c0_49, %c0_50] : memref<2x4x1x16xf32, #tpu.memory_space<vmem>>, vector<1x1x1x16xf32>
    %55 = vector.shape_cast %54 : vector<1x1x1x16xf32> to vector<1x16xf32>
    %56 = vector.broadcast %55 : vector<1x16xf32> to vector<16x16xf32>
    %57 = arith.addf %53, %56 : vector<16x16xf32>
    %c0_51 = arith.constant 0 : index
    %c1_52 = arith.constant 1 : index
    %c0_53 = arith.constant 0 : index
    %c0_54 = arith.constant 0 : index
    %58 = vector.load %arg9[%c0_51, %c1_52, %c0_53, %c0_54] : memref<2x4x64x16xbf16, #tpu.memory_space<vmem>>, vector<1x1x64x16xbf16>
    %59 = vector.shape_cast %58 : vector<1x1x64x16xbf16> to vector<64x16xbf16>
    %cst_55 = arith.constant dense<0.000000e+00> : vector<16x16xf32>
    %60 = tpu.matmul %9, %59, %cst_55 {dimension_numbers = #tpu.dot_dimension_numbers<[1], [0], [0], [1], [0, 0, 1, 1], [], []>} : vector<16x64xbf16>, vector<64x16xbf16>, vector<16x16xf32> -> vector<16x16xf32>
    %c0_56 = arith.constant 0 : index
    %c1_57 = arith.constant 1 : index
    %c0_58 = arith.constant 0 : index
    %c0_59 = arith.constant 0 : index
    %61 = vector.load %arg10[%c0_56, %c1_57, %c0_58, %c0_59] : memref<2x4x1x16xf32, #tpu.memory_space<vmem>>, vector<1x1x1x16xf32>
    %62 = vector.shape_cast %61 : vector<1x1x1x16xf32> to vector<1x16xf32>
    %63 = vector.broadcast %62 : vector<1x16xf32> to vector<16x16xf32>
    %64 = arith.addf %60, %63 : vector<16x16xf32>
    %c0_60 = arith.constant 0 : index
    %c1_61 = arith.constant 1 : index
    %c0_62 = arith.constant 0 : index
    %c0_63 = arith.constant 0 : index
    %65 = vector.load %arg11[%c0_60, %c1_61, %c0_62, %c0_63] : memref<2x4x64x16xbf16, #tpu.memory_space<vmem>>, vector<1x1x64x16xbf16>
    %66 = vector.shape_cast %65 : vector<1x1x64x16xbf16> to vector<64x16xbf16>
    %cst_64 = arith.constant dense<0.000000e+00> : vector<16x16xf32>
    %67 = tpu.matmul %9, %66, %cst_64 {dimension_numbers = #tpu.dot_dimension_numbers<[1], [0], [0], [1], [0, 0, 1, 1], [], []>} : vector<16x64xbf16>, vector<64x16xbf16>, vector<16x16xf32> -> vector<16x16xf32>
    %c0_65 = arith.constant 0 : index
    %c1_66 = arith.constant 1 : index
    %c0_67 = arith.constant 0 : index
    %c0_68 = arith.constant 0 : index
    %68 = vector.load %arg12[%c0_65, %c1_66, %c0_67, %c0_68] : memref<2x4x1x16xf32, #tpu.memory_space<vmem>>, vector<1x1x1x16xf32>
    %69 = vector.shape_cast %68 : vector<1x1x1x16xf32> to vector<1x16xf32>
    %70 = vector.broadcast %69 : vector<1x16xf32> to vector<16x16xf32>
    %71 = arith.addf %67, %70 : vector<16x16xf32>
    %72 = arith.truncf %57 : vector<16x16xf32> to vector<16x16xbf16>
    %73 = arith.truncf %64 : vector<16x16xf32> to vector<16x16xbf16>
    %cst_69 = arith.constant dense<0.000000e+00> : vector<16x16xf32>
    %74 = tpu.matmul %72, %73, %cst_69 {dimension_numbers = #tpu.dot_dimension_numbers<[1], [1], [0], [0], [0, 0, 1, 0], [], []>} : vector<16x16xbf16>, vector<16x16xbf16>, vector<16x16xf32> -> vector<16x16xf32>
    %cst_70 = arith.constant 2.500000e-01 : f32
    %75 = vector.broadcast %cst_70 : f32 to vector<16x16xf32>
    %76 = arith.mulf %74, %75 : vector<16x16xf32>
    %77 = arith.addf %76, %8 : vector<16x16xf32>
    %cst_71 = arith.constant dense<0xFF800000> : vector<16xf32>
    %78 = vector.multi_reduction <maximumf>, %77, %cst_71 [1] : vector<16x16xf32> to vector<16xf32>
    %79 = vector.shape_cast %78 : vector<16xf32> to vector<16x1xf32>
    %80 = vector.broadcast %79 : vector<16x1xf32> to vector<16x16xf32>
    %81 = arith.subf %77, %80 : vector<16x16xf32>
    %82 = math.exp %81 : vector<16x16xf32>
    %cst_72 = arith.constant dense<0.000000e+00> : vector<16xf32>
    %83 = vector.multi_reduction <add>, %82, %cst_72 [1] : vector<16x16xf32> to vector<16xf32>
    %84 = vector.shape_cast %83 : vector<16xf32> to vector<16x1xf32>
    %85 = tpu.reciprocal %84 {approx = true} : vector<16x1xf32> -> vector<16x1xf32>
    %86 = vector.broadcast %85 : vector<16x1xf32> to vector<16x16xf32>
    %87 = arith.mulf %82, %86 : vector<16x16xf32>
    %88 = arith.truncf %87 : vector<16x16xf32> to vector<16x16xbf16>
    %89 = arith.truncf %71 : vector<16x16xf32> to vector<16x16xbf16>
    %cst_73 = arith.constant dense<0.000000e+00> : vector<16x16xf32>
    %90 = tpu.matmul %88, %89, %cst_73 {dimension_numbers = #tpu.dot_dimension_numbers<[1], [0], [0], [1], [0, 0, 1, 1], [], []>} : vector<16x16xbf16>, vector<16x16xbf16>, vector<16x16xf32> -> vector<16x16xf32>
    %c0_74 = arith.constant 0 : index
    %c16 = arith.constant 16 : index
    %91 = vector.load %arg26[%c0_74, %c16] : memref<16x64xf32, #tpu.memory_space<vmem>>, vector<16x16xf32>
    tpu.vector_store %arg26[%c0_74, %c16], %90 {strides = array<i32>} : memref<16x64xf32, #tpu.memory_space<vmem>>, vector<16x16xf32>,
    %c0_75 = arith.constant 0 : index
    %c2 = arith.constant 2 : index
    %c0_76 = arith.constant 0 : index
    %c0_77 = arith.constant 0 : index
    %92 = vector.load %arg7[%c0_75, %c2, %c0_76, %c0_77] : memref<2x4x64x16xbf16, #tpu.memory_space<vmem>>, vector<1x1x64x16xbf16>
    %93 = vector.shape_cast %92 : vector<1x1x64x16xbf16> to vector<64x16xbf16>
    %cst_78 = arith.constant dense<0.000000e+00> : vector<16x16xf32>
    %94 = tpu.matmul %9, %93, %cst_78 {dimension_numbers = #tpu.dot_dimension_numbers<[1], [0], [0], [1], [0, 0, 1, 1], [], []>} : vector<16x64xbf16>, vector<64x16xbf16>, vector<16x16xf32> -> vector<16x16xf32>
    %c0_79 = arith.constant 0 : index
    %c2_80 = arith.constant 2 : index
    %c0_81 = arith.constant 0 : index
    %c0_82 = arith.constant 0 : index
    %95 = vector.load %arg8[%c0_79, %c2_80, %c0_81, %c0_82] : memref<2x4x1x16xf32, #tpu.memory_space<vmem>>, vector<1x1x1x16xf32>
    %96 = vector.shape_cast %95 : vector<1x1x1x16xf32> to vector<1x16xf32>
    %97 = vector.broadcast %96 : vector<1x16xf32> to vector<16x16xf32>
    %98 = arith.addf %94, %97 : vector<16x16xf32>
    %c0_83 = arith.constant 0 : index
    %c2_84 = arith.constant 2 : index
    %c0_85 = arith.constant 0 : index
    %c0_86 = arith.constant 0 : index
    %99 = vector.load %arg9[%c0_83, %c2_84, %c0_85, %c0_86] : memref<2x4x64x16xbf16, #tpu.memory_space<vmem>>, vector<1x1x64x16xbf16>
    %100 = vector.shape_cast %99 : vector<1x1x64x16xbf16> to vector<64x16xbf16>
    %cst_87 = arith.constant dense<0.000000e+00> : vector<16x16xf32>
    %101 = tpu.matmul %9, %100, %cst_87 {dimension_numbers = #tpu.dot_dimension_numbers<[1], [0], [0], [1], [0, 0, 1, 1], [], []>} : vector<16x64xbf16>, vector<64x16xbf16>, vector<16x16xf32> -> vector<16x16xf32>
    %c0_88 = arith.constant 0 : index
    %c2_89 = arith.constant 2 : index
    %c0_90 = arith.constant 0 : index
    %c0_91 = arith.constant 0 : index
    %102 = vector.load %arg10[%c0_88, %c2_89, %c0_90, %c0_91] : memref<2x4x1x16xf32, #tpu.memory_space<vmem>>, vector<1x1x1x16xf32>
    %103 = vector.shape_cast %102 : vector<1x1x1x16xf32> to vector<1x16xf32>
    %104 = vector.broadcast %103 : vector<1x16xf32> to vector<16x16xf32>
    %105 = arith.addf %101, %104 : vector<16x16xf32>
    %c0_92 = arith.constant 0 : index
    %c2_93 = arith.constant 2 : index
    %c0_94 = arith.constant 0 : index
    %c0_95 = arith.constant 0 : index
    %106 = vector.load %arg11[%c0_92, %c2_93, %c0_94, %c0_95] : memref<2x4x64x16xbf16, #tpu.memory_space<vmem>>, vector<1x1x64x16xbf16>
    %107 = vector.shape_cast %106 : vector<1x1x64x16xbf16> to vector<64x16xbf16>
    %cst_96 = arith.constant dense<0.000000e+00> : vector<16x16xf32>
    %108 = tpu.matmul %9, %107, %cst_96 {dimension_numbers = #tpu.dot_dimension_numbers<[1], [0], [0], [1], [0, 0, 1, 1], [], []>} : vector<16x64xbf16>, vector<64x16xbf16>, vector<16x16xf32> -> vector<16x16xf32>
    %c0_97 = arith.constant 0 : index
    %c2_98 = arith.constant 2 : index
    %c0_99 = arith.constant 0 : index
    %c0_100 = arith.constant 0 : index
    %109 = vector.load %arg12[%c0_97, %c2_98, %c0_99, %c0_100] : memref<2x4x1x16xf32, #tpu.memory_space<vmem>>, vector<1x1x1x16xf32>
    %110 = vector.shape_cast %109 : vector<1x1x1x16xf32> to vector<1x16xf32>
    %111 = vector.broadcast %110 : vector<1x16xf32> to vector<16x16xf32>
    %112 = arith.addf %108, %111 : vector<16x16xf32>
    %113 = arith.truncf %98 : vector<16x16xf32> to vector<16x16xbf16>
    %114 = arith.truncf %105 : vector<16x16xf32> to vector<16x16xbf16>
    %cst_101 = arith.constant dense<0.000000e+00> : vector<16x16xf32>
    %115 = tpu.matmul %113, %114, %cst_101 {dimension_numbers = #tpu.dot_dimension_numbers<[1], [1], [0], [0], [0, 0, 1, 0], [], []>} : vector<16x16xbf16>, vector<16x16xbf16>, vector<16x16xf32> -> vector<16x16xf32>
    %cst_102 = arith.constant 2.500000e-01 : f32
    %116 = vector.broadcast %cst_102 : f32 to vector<16x16xf32>
    %117 = arith.mulf %115, %116 : vector<16x16xf32>
    %118 = arith.addf %117, %8 : vector<16x16xf32>
    %cst_103 = arith.constant dense<0xFF800000> : vector<16xf32>
    %119 = vector.multi_reduction <maximumf>, %118, %cst_103 [1] : vector<16x16xf32> to vector<16xf32>
    %120 = vector.shape_cast %119 : vector<16xf32> to vector<16x1xf32>
    %121 = vector.broadcast %120 : vector<16x1xf32> to vector<16x16xf32>
    %122 = arith.subf %118, %121 : vector<16x16xf32>
    %123 = math.exp %122 : vector<16x16xf32>
    %cst_104 = arith.constant dense<0.000000e+00> : vector<16xf32>
    %124 = vector.multi_reduction <add>, %123, %cst_104 [1] : vector<16x16xf32> to vector<16xf32>
    %125 = vector.shape_cast %124 : vector<16xf32> to vector<16x1xf32>
    %126 = tpu.reciprocal %125 {approx = true} : vector<16x1xf32> -> vector<16x1xf32>
    %127 = vector.broadcast %126 : vector<16x1xf32> to vector<16x16xf32>
    %128 = arith.mulf %123, %127 : vector<16x16xf32>
    %129 = arith.truncf %128 : vector<16x16xf32> to vector<16x16xbf16>
    %130 = arith.truncf %112 : vector<16x16xf32> to vector<16x16xbf16>
    %cst_105 = arith.constant dense<0.000000e+00> : vector<16x16xf32>
    %131 = tpu.matmul %129, %130, %cst_105 {dimension_numbers = #tpu.dot_dimension_numbers<[1], [0], [0], [1], [0, 0, 1, 1], [], []>} : vector<16x16xbf16>, vector<16x16xbf16>, vector<16x16xf32> -> vector<16x16xf32>
    %c0_106 = arith.constant 0 : index
    %c32 = arith.constant 32 : index
    %132 = vector.load %arg26[%c0_106, %c32] : memref<16x64xf32, #tpu.memory_space<vmem>>, vector<16x16xf32>
    tpu.vector_store %arg26[%c0_106, %c32], %131 {strides = array<i32>} : memref<16x64xf32, #tpu.memory_space<vmem>>, vector<16x16xf32>,
    %c0_107 = arith.constant 0 : index
    %c3 = arith.constant 3 : index
    %c0_108 = arith.constant 0 : index
    %c0_109 = arith.constant 0 : index
    %133 = vector.load %arg7[%c0_107, %c3, %c0_108, %c0_109] : memref<2x4x64x16xbf16, #tpu.memory_space<vmem>>, vector<1x1x64x16xbf16>
    %134 = vector.shape_cast %133 : vector<1x1x64x16xbf16> to vector<64x16xbf16>
    %cst_110 = arith.constant dense<0.000000e+00> : vector<16x16xf32>
    %135 = tpu.matmul %9, %134, %cst_110 {dimension_numbers = #tpu.dot_dimension_numbers<[1], [0], [0], [1], [0, 0, 1, 1], [], []>} : vector<16x64xbf16>, vector<64x16xbf16>, vector<16x16xf32> -> vector<16x16xf32>
    %c0_111 = arith.constant 0 : index
    %c3_112 = arith.constant 3 : index
    %c0_113 = arith.constant 0 : index
    %c0_114 = arith.constant 0 : index
    %136 = vector.load %arg8[%c0_111, %c3_112, %c0_113, %c0_114] : memref<2x4x1x16xf32, #tpu.memory_space<vmem>>, vector<1x1x1x16xf32>
    %137 = vector.shape_cast %136 : vector<1x1x1x16xf32> to vector<1x16xf32>
    %138 = vector.broadcast %137 : vector<1x16xf32> to vector<16x16xf32>
    %139 = arith.addf %135, %138 : vector<16x16xf32>
    %c0_115 = arith.constant 0 : index
    %c3_116 = arith.constant 3 : index
    %c0_117 = arith.constant 0 : index
    %c0_118 = arith.constant 0 : index
    %140 = vector.load %arg9[%c0_115, %c3_116, %c0_117, %c0_118] : memref<2x4x64x16xbf16, #tpu.memory_space<vmem>>, vector<1x1x64x16xbf16>
    %141 = vector.shape_cast %140 : vector<1x1x64x16xbf16> to vector<64x16xbf16>
    %cst_119 = arith.constant dense<0.000000e+00> : vector<16x16xf32>
    %142 = tpu.matmul %9, %141, %cst_119 {dimension_numbers = #tpu.dot_dimension_numbers<[1], [0], [0], [1], [0, 0, 1, 1], [], []>} : vector<16x64xbf16>, vector<64x16xbf16>, vector<16x16xf32> -> vector<16x16xf32>
    %c0_120 = arith.constant 0 : index
    %c3_121 = arith.constant 3 : index
    %c0_122 = arith.constant 0 : index
    %c0_123 = arith.constant 0 : index
    %143 = vector.load %arg10[%c0_120, %c3_121, %c0_122, %c0_123] : memref<2x4x1x16xf32, #tpu.memory_space<vmem>>, vector<1x1x1x16xf32>
    %144 = vector.shape_cast %143 : vector<1x1x1x16xf32> to vector<1x16xf32>
    %145 = vector.broadcast %144 : vector<1x16xf32> to vector<16x16xf32>
    %146 = arith.addf %142, %145 : vector<16x16xf32>
    %c0_124 = arith.constant 0 : index
    %c3_125 = arith.constant 3 : index
    %c0_126 = arith.constant 0 : index
    %c0_127 = arith.constant 0 : index
    %147 = vector.load %arg11[%c0_124, %c3_125, %c0_126, %c0_127] : memref<2x4x64x16xbf16, #tpu.memory_space<vmem>>, vector<1x1x64x16xbf16>
    %148 = vector.shape_cast %147 : vector<1x1x64x16xbf16> to vector<64x16xbf16>
    %cst_128 = arith.constant dense<0.000000e+00> : vector<16x16xf32>
    %149 = tpu.matmul %9, %148, %cst_128 {dimension_numbers = #tpu.dot_dimension_numbers<[1], [0], [0], [1], [0, 0, 1, 1], [], []>} : vector<16x64xbf16>, vector<64x16xbf16>, vector<16x16xf32> -> vector<16x16xf32>
    %c0_129 = arith.constant 0 : index
    %c3_130 = arith.constant 3 : index
    %c0_131 = arith.constant 0 : index
    %c0_132 = arith.constant 0 : index
    %150 = vector.load %arg12[%c0_129, %c3_130, %c0_131, %c0_132] : memref<2x4x1x16xf32, #tpu.memory_space<vmem>>, vector<1x1x1x16xf32>
    %151 = vector.shape_cast %150 : vector<1x1x1x16xf32> to vector<1x16xf32>
    %152 = vector.broadcast %151 : vector<1x16xf32> to vector<16x16xf32>
    %153 = arith.addf %149, %152 : vector<16x16xf32>
    %154 = arith.truncf %139 : vector<16x16xf32> to vector<16x16xbf16>
    %155 = arith.truncf %146 : vector<16x16xf32> to vector<16x16xbf16>
    %cst_133 = arith.constant dense<0.000000e+00> : vector<16x16xf32>
    %156 = tpu.matmul %154, %155, %cst_133 {dimension_numbers = #tpu.dot_dimension_numbers<[1], [1], [0], [0], [0, 0, 1, 0], [], []>} : vector<16x16xbf16>, vector<16x16xbf16>, vector<16x16xf32> -> vector<16x16xf32>
    %cst_134 = arith.constant 2.500000e-01 : f32
    %157 = vector.broadcast %cst_134 : f32 to vector<16x16xf32>
    %158 = arith.mulf %156, %157 : vector<16x16xf32>
    %159 = arith.addf %158, %8 : vector<16x16xf32>
    %cst_135 = arith.constant dense<0xFF800000> : vector<16xf32>
    %160 = vector.multi_reduction <maximumf>, %159, %cst_135 [1] : vector<16x16xf32> to vector<16xf32>
    %161 = vector.shape_cast %160 : vector<16xf32> to vector<16x1xf32>
    %162 = vector.broadcast %161 : vector<16x1xf32> to vector<16x16xf32>
    %163 = arith.subf %159, %162 : vector<16x16xf32>
    %164 = math.exp %163 : vector<16x16xf32>
    %cst_136 = arith.constant dense<0.000000e+00> : vector<16xf32>
    %165 = vector.multi_reduction <add>, %164, %cst_136 [1] : vector<16x16xf32> to vector<16xf32>
    %166 = vector.shape_cast %165 : vector<16xf32> to vector<16x1xf32>
    %167 = tpu.reciprocal %166 {approx = true} : vector<16x1xf32> -> vector<16x1xf32>
    %168 = vector.broadcast %167 : vector<16x1xf32> to vector<16x16xf32>
    %169 = arith.mulf %164, %168 : vector<16x16xf32>
    %170 = arith.truncf %169 : vector<16x16xf32> to vector<16x16xbf16>
    %171 = arith.truncf %153 : vector<16x16xf32> to vector<16x16xbf16>
    %cst_137 = arith.constant dense<0.000000e+00> : vector<16x16xf32>
    %172 = tpu.matmul %170, %171, %cst_137 {dimension_numbers = #tpu.dot_dimension_numbers<[1], [0], [0], [1], [0, 0, 1, 1], [], []>} : vector<16x16xbf16>, vector<16x16xbf16>, vector<16x16xf32> -> vector<16x16xf32>
    %c0_138 = arith.constant 0 : index
    %c48 = arith.constant 48 : index
    %173 = vector.load %arg26[%c0_138, %c48] : memref<16x64xf32, #tpu.memory_space<vmem>>, vector<16x16xf32>
    tpu.vector_store %arg26[%c0_138, %c48], %172 {strides = array<i32>} : memref<16x64xf32, #tpu.memory_space<vmem>>, vector<16x16xf32>,
    %c0_139 = arith.constant 0 : index
    %c0_140 = arith.constant 0 : index
    %174 = vector.load %arg26[%c0_139, %c0_140] : memref<16x64xf32, #tpu.memory_space<vmem>>, vector<16x64xf32>
    %175 = arith.truncf %174 : vector<16x64xf32> to vector<16x64xbf16>
    %c0_141 = arith.constant 0 : index
    %c0_142 = arith.constant 0 : index
    %c0_143 = arith.constant 0 : index
    %176 = vector.load %arg13[%c0_141, %c0_142, %c0_143] : memref<2x64x64xbf16, #tpu.memory_space<vmem>>, vector<1x64x64xbf16>
    %177 = vector.shape_cast %176 : vector<1x64x64xbf16> to vector<64x64xbf16>
    %cst_144 = arith.constant dense<0.000000e+00> : vector<16x64xf32>
    %178 = tpu.matmul %175, %177, %cst_144 {dimension_numbers = #tpu.dot_dimension_numbers<[1], [0], [0], [1], [0, 0, 1, 1], [], []>} : vector<16x64xbf16>, vector<64x64xbf16>, vector<16x64xf32> -> vector<16x64xf32>
    %c0_145 = arith.constant 0 : index
    %c0_146 = arith.constant 0 : index
    %c0_147 = arith.constant 0 : index
    %179 = vector.load %arg14[%c0_145, %c0_146, %c0_147] : memref<2x1x64xf32, #tpu.memory_space<vmem>>, vector<1x1x64xf32>
    %180 = vector.shape_cast %179 : vector<1x1x64xf32> to vector<1x64xf32>
    %181 = vector.broadcast %180 : vector<1x64xf32> to vector<16x64xf32>
    %182 = arith.addf %178, %181 : vector<16x64xf32>
    %183 = arith.addf %7, %182 : vector<16x64xf32>
    %c0_148 = arith.constant 0 : index
    %c0_149 = arith.constant 0 : index
    %c0_150 = arith.constant 0 : index
    %184 = vector.load %arg15[%c0_148, %c0_149, %c0_150] : memref<2x1x64xf32, #tpu.memory_space<vmem>>, vector<1x1x64xf32>
    %185 = vector.shape_cast %184 : vector<1x1x64xf32> to vector<1x64xf32>
    %c0_151 = arith.constant 0 : index
    %c0_152 = arith.constant 0 : index
    %c0_153 = arith.constant 0 : index
    %186 = vector.load %arg16[%c0_151, %c0_152, %c0_153] : memref<2x1x64xf32, #tpu.memory_space<vmem>>, vector<1x1x64xf32>
    %187 = vector.shape_cast %186 : vector<1x1x64xf32> to vector<1x64xf32>
    %cst_154 = arith.constant dense<0.000000e+00> : vector<16xf32>
    %188 = vector.multi_reduction <add>, %183, %cst_154 [1] : vector<16x64xf32> to vector<16xf32>
    %189 = vector.shape_cast %188 : vector<16xf32> to vector<16x1xf32>
    %cst_155 = arith.constant 6.400000e+01 : f32
    %190 = vector.broadcast %cst_155 : f32 to vector<16x1xf32>
    %191 = arith.divf %189, %190 : vector<16x1xf32>
    %192 = vector.broadcast %191 : vector<16x1xf32> to vector<16x64xf32>
    %193 = arith.subf %183, %192 : vector<16x64xf32>
    %194 = arith.mulf %193, %193 : vector<16x64xf32>
    %cst_156 = arith.constant dense<0.000000e+00> : vector<16xf32>
    %195 = vector.multi_reduction <add>, %194, %cst_156 [1] : vector<16x64xf32> to vector<16xf32>
    %196 = vector.shape_cast %195 : vector<16xf32> to vector<16x1xf32>
    %cst_157 = arith.constant 6.400000e+01 : f32
    %197 = vector.broadcast %cst_157 : f32 to vector<16x1xf32>
    %198 = arith.divf %196, %197 : vector<16x1xf32>
    %199 = vector.broadcast %191 : vector<16x1xf32> to vector<16x64xf32>
    %200 = arith.subf %183, %199 : vector<16x64xf32>
    %cst_158 = arith.constant 9.99999974E-6 : f32
    %201 = vector.broadcast %cst_158 : f32 to vector<16x1xf32>
    %202 = arith.addf %198, %201 : vector<16x1xf32>
    %203 = math.rsqrt %202 : vector<16x1xf32>
    %204 = vector.broadcast %203 : vector<16x1xf32> to vector<16x64xf32>
    %205 = arith.mulf %200, %204 : vector<16x64xf32>
    %206 = vector.broadcast %185 : vector<1x64xf32> to vector<16x64xf32>
    %207 = arith.mulf %205, %206 : vector<16x64xf32>
    %208 = vector.broadcast %187 : vector<1x64xf32> to vector<16x64xf32>
    %209 = arith.addf %207, %208 : vector<16x64xf32>
    %210 = arith.truncf %209 : vector<16x64xf32> to vector<16x64xbf16>
    %c0_159 = arith.constant 0 : index
    %c0_160 = arith.constant 0 : index
    %c0_161 = arith.constant 0 : index
    %211 = vector.load %arg17[%c0_159, %c0_160, %c0_161] : memref<2x64x512xbf16, #tpu.memory_space<vmem>>, vector<1x64x512xbf16>
    %212 = vector.shape_cast %211 : vector<1x64x512xbf16> to vector<64x512xbf16>
    %cst_162 = arith.constant dense<0.000000e+00> : vector<16x512xf32>
    %213 = tpu.matmul %210, %212, %cst_162 {dimension_numbers = #tpu.dot_dimension_numbers<[1], [0], [0], [1], [0, 0, 1, 1], [], []>} : vector<16x64xbf16>, vector<64x512xbf16>, vector<16x512xf32> -> vector<16x512xf32>
    %c0_163 = arith.constant 0 : index
    %c0_164 = arith.constant 0 : index
    %c0_165 = arith.constant 0 : index
    %214 = vector.load %arg18[%c0_163, %c0_164, %c0_165] : memref<2x1x512xf32, #tpu.memory_space<vmem>>, vector<1x1x512xf32>
    %215 = vector.shape_cast %214 : vector<1x1x512xf32> to vector<1x512xf32>
    %216 = vector.broadcast %215 : vector<1x512xf32> to vector<16x512xf32>
    %217 = arith.addf %213, %216 : vector<16x512xf32>
    %cst_166 = arith.constant 0.000000e+00 : f32
    %218 = vector.broadcast %cst_166 : f32 to vector<16x512xf32>
    %219 = arith.maximumf %217, %218 : vector<16x512xf32>
    %220 = arith.truncf %219 : vector<16x512xf32> to vector<16x512xbf16>
    %c0_167 = arith.constant 0 : index
    %c0_168 = arith.constant 0 : index
    %c0_169 = arith.constant 0 : index
    %221 = vector.load %arg19[%c0_167, %c0_168, %c0_169] : memref<2x512x64xbf16, #tpu.memory_space<vmem>>, vector<1x512x64xbf16>
    %222 = vector.shape_cast %221 : vector<1x512x64xbf16> to vector<512x64xbf16>
    %cst_170 = arith.constant dense<0.000000e+00> : vector<16x64xf32>
    %223 = tpu.matmul %220, %222, %cst_170 {dimension_numbers = #tpu.dot_dimension_numbers<[1], [0], [0], [1], [0, 0, 1, 1], [], []>} : vector<16x512xbf16>, vector<512x64xbf16>, vector<16x64xf32> -> vector<16x64xf32>
    %c0_171 = arith.constant 0 : index
    %c0_172 = arith.constant 0 : index
    %c0_173 = arith.constant 0 : index
    %224 = vector.load %arg20[%c0_171, %c0_172, %c0_173] : memref<2x1x64xf32, #tpu.memory_space<vmem>>, vector<1x1x64xf32>
    %225 = vector.shape_cast %224 : vector<1x1x64xf32> to vector<1x64xf32>
    %226 = vector.broadcast %225 : vector<1x64xf32> to vector<16x64xf32>
    %227 = arith.addf %223, %226 : vector<16x64xf32>
    %228 = arith.addf %209, %227 : vector<16x64xf32>
    %c0_174 = arith.constant 0 : index
    %c0_175 = arith.constant 0 : index
    %c0_176 = arith.constant 0 : index
    %229 = vector.load %arg21[%c0_174, %c0_175, %c0_176] : memref<2x1x64xf32, #tpu.memory_space<vmem>>, vector<1x1x64xf32>
    %230 = vector.shape_cast %229 : vector<1x1x64xf32> to vector<1x64xf32>
    %c0_177 = arith.constant 0 : index
    %c0_178 = arith.constant 0 : index
    %c0_179 = arith.constant 0 : index
    %231 = vector.load %arg22[%c0_177, %c0_178, %c0_179] : memref<2x1x64xf32, #tpu.memory_space<vmem>>, vector<1x1x64xf32>
    %232 = vector.shape_cast %231 : vector<1x1x64xf32> to vector<1x64xf32>
    %cst_180 = arith.constant dense<0.000000e+00> : vector<16xf32>
    %233 = vector.multi_reduction <add>, %228, %cst_180 [1] : vector<16x64xf32> to vector<16xf32>
    %234 = vector.shape_cast %233 : vector<16xf32> to vector<16x1xf32>
    %cst_181 = arith.constant 6.400000e+01 : f32
    %235 = vector.broadcast %cst_181 : f32 to vector<16x1xf32>
    %236 = arith.divf %234, %235 : vector<16x1xf32>
    %237 = vector.broadcast %236 : vector<16x1xf32> to vector<16x64xf32>
    %238 = arith.subf %228, %237 : vector<16x64xf32>
    %239 = arith.mulf %238, %238 : vector<16x64xf32>
    %cst_182 = arith.constant dense<0.000000e+00> : vector<16xf32>
    %240 = vector.multi_reduction <add>, %239, %cst_182 [1] : vector<16x64xf32> to vector<16xf32>
    %241 = vector.shape_cast %240 : vector<16xf32> to vector<16x1xf32>
    %cst_183 = arith.constant 6.400000e+01 : f32
    %242 = vector.broadcast %cst_183 : f32 to vector<16x1xf32>
    %243 = arith.divf %241, %242 : vector<16x1xf32>
    %244 = vector.broadcast %236 : vector<16x1xf32> to vector<16x64xf32>
    %245 = arith.subf %228, %244 : vector<16x64xf32>
    %cst_184 = arith.constant 9.99999974E-6 : f32
    %246 = vector.broadcast %cst_184 : f32 to vector<16x1xf32>
    %247 = arith.addf %243, %246 : vector<16x1xf32>
    %248 = math.rsqrt %247 : vector<16x1xf32>
    %249 = vector.broadcast %248 : vector<16x1xf32> to vector<16x64xf32>
    %250 = arith.mulf %245, %249 : vector<16x64xf32>
    %251 = vector.broadcast %230 : vector<1x64xf32> to vector<16x64xf32>
    %252 = arith.mulf %250, %251 : vector<16x64xf32>
    %253 = vector.broadcast %232 : vector<1x64xf32> to vector<16x64xf32>
    %254 = arith.addf %252, %253 : vector<16x64xf32>
    %255 = arith.truncf %254 : vector<16x64xf32> to vector<16x64xbf16>
    %c1_185 = arith.constant 1 : index
    %c0_186 = arith.constant 0 : index
    %c0_187 = arith.constant 0 : index
    %c0_188 = arith.constant 0 : index
    %256 = vector.load %arg7[%c1_185, %c0_186, %c0_187, %c0_188] : memref<2x4x64x16xbf16, #tpu.memory_space<vmem>>, vector<1x1x64x16xbf16>
    %257 = vector.shape_cast %256 : vector<1x1x64x16xbf16> to vector<64x16xbf16>
    %cst_189 = arith.constant dense<0.000000e+00> : vector<16x16xf32>
    %258 = tpu.matmul %255, %257, %cst_189 {dimension_numbers = #tpu.dot_dimension_numbers<[1], [0], [0], [1], [0, 0, 1, 1], [], []>} : vector<16x64xbf16>, vector<64x16xbf16>, vector<16x16xf32> -> vector<16x16xf32>
    %c1_190 = arith.constant 1 : index
    %c0_191 = arith.constant 0 : index
    %c0_192 = arith.constant 0 : index
    %c0_193 = arith.constant 0 : index
    %259 = vector.load %arg8[%c1_190, %c0_191, %c0_192, %c0_193] : memref<2x4x1x16xf32, #tpu.memory_space<vmem>>, vector<1x1x1x16xf32>
    %260 = vector.shape_cast %259 : vector<1x1x1x16xf32> to vector<1x16xf32>
    %261 = vector.broadcast %260 : vector<1x16xf32> to vector<16x16xf32>
    %262 = arith.addf %258, %261 : vector<16x16xf32>
    %c1_194 = arith.constant 1 : index
    %c0_195 = arith.constant 0 : index
    %c0_196 = arith.constant 0 : index
    %c0_197 = arith.constant 0 : index
    %263 = vector.load %arg9[%c1_194, %c0_195, %c0_196, %c0_197] : memref<2x4x64x16xbf16, #tpu.memory_space<vmem>>, vector<1x1x64x16xbf16>
    %264 = vector.shape_cast %263 : vector<1x1x64x16xbf16> to vector<64x16xbf16>
    %cst_198 = arith.constant dense<0.000000e+00> : vector<16x16xf32>
    %265 = tpu.matmul %255, %264, %cst_198 {dimension_numbers = #tpu.dot_dimension_numbers<[1], [0], [0], [1], [0, 0, 1, 1], [], []>} : vector<16x64xbf16>, vector<64x16xbf16>, vector<16x16xf32> -> vector<16x16xf32>
    %c1_199 = arith.constant 1 : index
    %c0_200 = arith.constant 0 : index
    %c0_201 = arith.constant 0 : index
    %c0_202 = arith.constant 0 : index
    %266 = vector.load %arg10[%c1_199, %c0_200, %c0_201, %c0_202] : memref<2x4x1x16xf32, #tpu.memory_space<vmem>>, vector<1x1x1x16xf32>
    %267 = vector.shape_cast %266 : vector<1x1x1x16xf32> to vector<1x16xf32>
    %268 = vector.broadcast %267 : vector<1x16xf32> to vector<16x16xf32>
    %269 = arith.addf %265, %268 : vector<16x16xf32>
    %c1_203 = arith.constant 1 : index
    %c0_204 = arith.constant 0 : index
    %c0_205 = arith.constant 0 : index
    %c0_206 = arith.constant 0 : index
    %270 = vector.load %arg11[%c1_203, %c0_204, %c0_205, %c0_206] : memref<2x4x64x16xbf16, #tpu.memory_space<vmem>>, vector<1x1x64x16xbf16>
    %271 = vector.shape_cast %270 : vector<1x1x64x16xbf16> to vector<64x16xbf16>
    %cst_207 = arith.constant dense<0.000000e+00> : vector<16x16xf32>
    %272 = tpu.matmul %255, %271, %cst_207 {dimension_numbers = #tpu.dot_dimension_numbers<[1], [0], [0], [1], [0, 0, 1, 1], [], []>} : vector<16x64xbf16>, vector<64x16xbf16>, vector<16x16xf32> -> vector<16x16xf32>
    %c1_208 = arith.constant 1 : index
    %c0_209 = arith.constant 0 : index
    %c0_210 = arith.constant 0 : index
    %c0_211 = arith.constant 0 : index
    %273 = vector.load %arg12[%c1_208, %c0_209, %c0_210, %c0_211] : memref<2x4x1x16xf32, #tpu.memory_space<vmem>>, vector<1x1x1x16xf32>
    %274 = vector.shape_cast %273 : vector<1x1x1x16xf32> to vector<1x16xf32>
    %275 = vector.broadcast %274 : vector<1x16xf32> to vector<16x16xf32>
    %276 = arith.addf %272, %275 : vector<16x16xf32>
    %277 = arith.truncf %262 : vector<16x16xf32> to vector<16x16xbf16>
    %278 = arith.truncf %269 : vector<16x16xf32> to vector<16x16xbf16>
    %cst_212 = arith.constant dense<0.000000e+00> : vector<16x16xf32>
    %279 = tpu.matmul %277, %278, %cst_212 {dimension_numbers = #tpu.dot_dimension_numbers<[1], [1], [0], [0], [0, 0, 1, 0], [], []>} : vector<16x16xbf16>, vector<16x16xbf16>, vector<16x16xf32> -> vector<16x16xf32>
    %cst_213 = arith.constant 2.500000e-01 : f32
    %280 = vector.broadcast %cst_213 : f32 to vector<16x16xf32>
    %281 = arith.mulf %279, %280 : vector<16x16xf32>
    %282 = arith.addf %281, %8 : vector<16x16xf32>
    %cst_214 = arith.constant dense<0xFF800000> : vector<16xf32>
    %283 = vector.multi_reduction <maximumf>, %282, %cst_214 [1] : vector<16x16xf32> to vector<16xf32>
    %284 = vector.shape_cast %283 : vector<16xf32> to vector<16x1xf32>
    %285 = vector.broadcast %284 : vector<16x1xf32> to vector<16x16xf32>
    %286 = arith.subf %282, %285 : vector<16x16xf32>
    %287 = math.exp %286 : vector<16x16xf32>
    %cst_215 = arith.constant dense<0.000000e+00> : vector<16xf32>
    %288 = vector.multi_reduction <add>, %287, %cst_215 [1] : vector<16x16xf32> to vector<16xf32>
    %289 = vector.shape_cast %288 : vector<16xf32> to vector<16x1xf32>
    %290 = tpu.reciprocal %289 {approx = true} : vector<16x1xf32> -> vector<16x1xf32>
    %291 = vector.broadcast %290 : vector<16x1xf32> to vector<16x16xf32>
    %292 = arith.mulf %287, %291 : vector<16x16xf32>
    %293 = arith.truncf %292 : vector<16x16xf32> to vector<16x16xbf16>
    %294 = arith.truncf %276 : vector<16x16xf32> to vector<16x16xbf16>
    %cst_216 = arith.constant dense<0.000000e+00> : vector<16x16xf32>
    %295 = tpu.matmul %293, %294, %cst_216 {dimension_numbers = #tpu.dot_dimension_numbers<[1], [0], [0], [1], [0, 0, 1, 1], [], []>} : vector<16x16xbf16>, vector<16x16xbf16>, vector<16x16xf32> -> vector<16x16xf32>
    %c0_217 = arith.constant 0 : index
    %c0_218 = arith.constant 0 : index
    %296 = vector.load %arg26[%c0_217, %c0_218] : memref<16x64xf32, #tpu.memory_space<vmem>>, vector<16x16xf32>
    tpu.vector_store %arg26[%c0_217, %c0_218], %295 {strides = array<i32>} : memref<16x64xf32, #tpu.memory_space<vmem>>, vector<16x16xf32>,
    %c1_219 = arith.constant 1 : index
    %c1_220 = arith.constant 1 : index
    %c0_221 = arith.constant 0 : index
    %c0_222 = arith.constant 0 : index
    %297 = vector.load %arg7[%c1_219, %c1_220, %c0_221, %c0_222] : memref<2x4x64x16xbf16, #tpu.memory_space<vmem>>, vector<1x1x64x16xbf16>
    %298 = vector.shape_cast %297 : vector<1x1x64x16xbf16> to vector<64x16xbf16>
    %cst_223 = arith.constant dense<0.000000e+00> : vector<16x16xf32>
    %299 = tpu.matmul %255, %298, %cst_223 {dimension_numbers = #tpu.dot_dimension_numbers<[1], [0], [0], [1], [0, 0, 1, 1], [], []>} : vector<16x64xbf16>, vector<64x16xbf16>, vector<16x16xf32> -> vector<16x16xf32>
    %c1_224 = arith.constant 1 : index
    %c1_225 = arith.constant 1 : index
    %c0_226 = arith.constant 0 : index
    %c0_227 = arith.constant 0 : index
    %300 = vector.load %arg8[%c1_224, %c1_225, %c0_226, %c0_227] : memref<2x4x1x16xf32, #tpu.memory_space<vmem>>, vector<1x1x1x16xf32>
    %301 = vector.shape_cast %300 : vector<1x1x1x16xf32> to vector<1x16xf32>
    %302 = vector.broadcast %301 : vector<1x16xf32> to vector<16x16xf32>
    %303 = arith.addf %299, %302 : vector<16x16xf32>
    %c1_228 = arith.constant 1 : index
    %c1_229 = arith.constant 1 : index
    %c0_230 = arith.constant 0 : index
    %c0_231 = arith.constant 0 : index
    %304 = vector.load %arg9[%c1_228, %c1_229, %c0_230, %c0_231] : memref<2x4x64x16xbf16, #tpu.memory_space<vmem>>, vector<1x1x64x16xbf16>
    %305 = vector.shape_cast %304 : vector<1x1x64x16xbf16> to vector<64x16xbf16>
    %cst_232 = arith.constant dense<0.000000e+00> : vector<16x16xf32>
    %306 = tpu.matmul %255, %305, %cst_232 {dimension_numbers = #tpu.dot_dimension_numbers<[1], [0], [0], [1], [0, 0, 1, 1], [], []>} : vector<16x64xbf16>, vector<64x16xbf16>, vector<16x16xf32> -> vector<16x16xf32>
    %c1_233 = arith.constant 1 : index
    %c1_234 = arith.constant 1 : index
    %c0_235 = arith.constant 0 : index
    %c0_236 = arith.constant 0 : index
    %307 = vector.load %arg10[%c1_233, %c1_234, %c0_235, %c0_236] : memref<2x4x1x16xf32, #tpu.memory_space<vmem>>, vector<1x1x1x16xf32>
    %308 = vector.shape_cast %307 : vector<1x1x1x16xf32> to vector<1x16xf32>
    %309 = vector.broadcast %308 : vector<1x16xf32> to vector<16x16xf32>
    %310 = arith.addf %306, %309 : vector<16x16xf32>
    %c1_237 = arith.constant 1 : index
    %c1_238 = arith.constant 1 : index
    %c0_239 = arith.constant 0 : index
    %c0_240 = arith.constant 0 : index
    %311 = vector.load %arg11[%c1_237, %c1_238, %c0_239, %c0_240] : memref<2x4x64x16xbf16, #tpu.memory_space<vmem>>, vector<1x1x64x16xbf16>
    %312 = vector.shape_cast %311 : vector<1x1x64x16xbf16> to vector<64x16xbf16>
    %cst_241 = arith.constant dense<0.000000e+00> : vector<16x16xf32>
    %313 = tpu.matmul %255, %312, %cst_241 {dimension_numbers = #tpu.dot_dimension_numbers<[1], [0], [0], [1], [0, 0, 1, 1], [], []>} : vector<16x64xbf16>, vector<64x16xbf16>, vector<16x16xf32> -> vector<16x16xf32>
    %c1_242 = arith.constant 1 : index
    %c1_243 = arith.constant 1 : index
    %c0_244 = arith.constant 0 : index
    %c0_245 = arith.constant 0 : index
    %314 = vector.load %arg12[%c1_242, %c1_243, %c0_244, %c0_245] : memref<2x4x1x16xf32, #tpu.memory_space<vmem>>, vector<1x1x1x16xf32>
    %315 = vector.shape_cast %314 : vector<1x1x1x16xf32> to vector<1x16xf32>
    %316 = vector.broadcast %315 : vector<1x16xf32> to vector<16x16xf32>
    %317 = arith.addf %313, %316 : vector<16x16xf32>
    %318 = arith.truncf %303 : vector<16x16xf32> to vector<16x16xbf16>
    %319 = arith.truncf %310 : vector<16x16xf32> to vector<16x16xbf16>
    %cst_246 = arith.constant dense<0.000000e+00> : vector<16x16xf32>
    %320 = tpu.matmul %318, %319, %cst_246 {dimension_numbers = #tpu.dot_dimension_numbers<[1], [1], [0], [0], [0, 0, 1, 0], [], []>} : vector<16x16xbf16>, vector<16x16xbf16>, vector<16x16xf32> -> vector<16x16xf32>
    %cst_247 = arith.constant 2.500000e-01 : f32
    %321 = vector.broadcast %cst_247 : f32 to vector<16x16xf32>
    %322 = arith.mulf %320, %321 : vector<16x16xf32>
    %323 = arith.addf %322, %8 : vector<16x16xf32>
    %cst_248 = arith.constant dense<0xFF800000> : vector<16xf32>
    %324 = vector.multi_reduction <maximumf>, %323, %cst_248 [1] : vector<16x16xf32> to vector<16xf32>
    %325 = vector.shape_cast %324 : vector<16xf32> to vector<16x1xf32>
    %326 = vector.broadcast %325 : vector<16x1xf32> to vector<16x16xf32>
    %327 = arith.subf %323, %326 : vector<16x16xf32>
    %328 = math.exp %327 : vector<16x16xf32>
    %cst_249 = arith.constant dense<0.000000e+00> : vector<16xf32>
    %329 = vector.multi_reduction <add>, %328, %cst_249 [1] : vector<16x16xf32> to vector<16xf32>
    %330 = vector.shape_cast %329 : vector<16xf32> to vector<16x1xf32>
    %331 = tpu.reciprocal %330 {approx = true} : vector<16x1xf32> -> vector<16x1xf32>
    %332 = vector.broadcast %331 : vector<16x1xf32> to vector<16x16xf32>
    %333 = arith.mulf %328, %332 : vector<16x16xf32>
    %334 = arith.truncf %333 : vector<16x16xf32> to vector<16x16xbf16>
    %335 = arith.truncf %317 : vector<16x16xf32> to vector<16x16xbf16>
    %cst_250 = arith.constant dense<0.000000e+00> : vector<16x16xf32>
    %336 = tpu.matmul %334, %335, %cst_250 {dimension_numbers = #tpu.dot_dimension_numbers<[1], [0], [0], [1], [0, 0, 1, 1], [], []>} : vector<16x16xbf16>, vector<16x16xbf16>, vector<16x16xf32> -> vector<16x16xf32>
    %c0_251 = arith.constant 0 : index
    %c16_252 = arith.constant 16 : index
    %337 = vector.load %arg26[%c0_251, %c16_252] : memref<16x64xf32, #tpu.memory_space<vmem>>, vector<16x16xf32>
    tpu.vector_store %arg26[%c0_251, %c16_252], %336 {strides = array<i32>} : memref<16x64xf32, #tpu.memory_space<vmem>>, vector<16x16xf32>,
    %c1_253 = arith.constant 1 : index
    %c2_254 = arith.constant 2 : index
    %c0_255 = arith.constant 0 : index
    %c0_256 = arith.constant 0 : index
    %338 = vector.load %arg7[%c1_253, %c2_254, %c0_255, %c0_256] : memref<2x4x64x16xbf16, #tpu.memory_space<vmem>>, vector<1x1x64x16xbf16>
    %339 = vector.shape_cast %338 : vector<1x1x64x16xbf16> to vector<64x16xbf16>
    %cst_257 = arith.constant dense<0.000000e+00> : vector<16x16xf32>
    %340 = tpu.matmul %255, %339, %cst_257 {dimension_numbers = #tpu.dot_dimension_numbers<[1], [0], [0], [1], [0, 0, 1, 1], [], []>} : vector<16x64xbf16>, vector<64x16xbf16>, vector<16x16xf32> -> vector<16x16xf32>
    %c1_258 = arith.constant 1 : index
    %c2_259 = arith.constant 2 : index
    %c0_260 = arith.constant 0 : index
    %c0_261 = arith.constant 0 : index
    %341 = vector.load %arg8[%c1_258, %c2_259, %c0_260, %c0_261] : memref<2x4x1x16xf32, #tpu.memory_space<vmem>>, vector<1x1x1x16xf32>
    %342 = vector.shape_cast %341 : vector<1x1x1x16xf32> to vector<1x16xf32>
    %343 = vector.broadcast %342 : vector<1x16xf32> to vector<16x16xf32>
    %344 = arith.addf %340, %343 : vector<16x16xf32>
    %c1_262 = arith.constant 1 : index
    %c2_263 = arith.constant 2 : index
    %c0_264 = arith.constant 0 : index
    %c0_265 = arith.constant 0 : index
    %345 = vector.load %arg9[%c1_262, %c2_263, %c0_264, %c0_265] : memref<2x4x64x16xbf16, #tpu.memory_space<vmem>>, vector<1x1x64x16xbf16>
    %346 = vector.shape_cast %345 : vector<1x1x64x16xbf16> to vector<64x16xbf16>
    %cst_266 = arith.constant dense<0.000000e+00> : vector<16x16xf32>
    %347 = tpu.matmul %255, %346, %cst_266 {dimension_numbers = #tpu.dot_dimension_numbers<[1], [0], [0], [1], [0, 0, 1, 1], [], []>} : vector<16x64xbf16>, vector<64x16xbf16>, vector<16x16xf32> -> vector<16x16xf32>
    %c1_267 = arith.constant 1 : index
    %c2_268 = arith.constant 2 : index
    %c0_269 = arith.constant 0 : index
    %c0_270 = arith.constant 0 : index
    %348 = vector.load %arg10[%c1_267, %c2_268, %c0_269, %c0_270] : memref<2x4x1x16xf32, #tpu.memory_space<vmem>>, vector<1x1x1x16xf32>
    %349 = vector.shape_cast %348 : vector<1x1x1x16xf32> to vector<1x16xf32>
    %350 = vector.broadcast %349 : vector<1x16xf32> to vector<16x16xf32>
    %351 = arith.addf %347, %350 : vector<16x16xf32>
    %c1_271 = arith.constant 1 : index
    %c2_272 = arith.constant 2 : index
    %c0_273 = arith.constant 0 : index
    %c0_274 = arith.constant 0 : index
    %352 = vector.load %arg11[%c1_271, %c2_272, %c0_273, %c0_274] : memref<2x4x64x16xbf16, #tpu.memory_space<vmem>>, vector<1x1x64x16xbf16>
    %353 = vector.shape_cast %352 : vector<1x1x64x16xbf16> to vector<64x16xbf16>
    %cst_275 = arith.constant dense<0.000000e+00> : vector<16x16xf32>
    %354 = tpu.matmul %255, %353, %cst_275 {dimension_numbers = #tpu.dot_dimension_numbers<[1], [0], [0], [1], [0, 0, 1, 1], [], []>} : vector<16x64xbf16>, vector<64x16xbf16>, vector<16x16xf32> -> vector<16x16xf32>
    %c1_276 = arith.constant 1 : index
    %c2_277 = arith.constant 2 : index
    %c0_278 = arith.constant 0 : index
    %c0_279 = arith.constant 0 : index
    %355 = vector.load %arg12[%c1_276, %c2_277, %c0_278, %c0_279] : memref<2x4x1x16xf32, #tpu.memory_space<vmem>>, vector<1x1x1x16xf32>
    %356 = vector.shape_cast %355 : vector<1x1x1x16xf32> to vector<1x16xf32>
    %357 = vector.broadcast %356 : vector<1x16xf32> to vector<16x16xf32>
    %358 = arith.addf %354, %357 : vector<16x16xf32>
    %359 = arith.truncf %344 : vector<16x16xf32> to vector<16x16xbf16>
    %360 = arith.truncf %351 : vector<16x16xf32> to vector<16x16xbf16>
    %cst_280 = arith.constant dense<0.000000e+00> : vector<16x16xf32>
    %361 = tpu.matmul %359, %360, %cst_280 {dimension_numbers = #tpu.dot_dimension_numbers<[1], [1], [0], [0], [0, 0, 1, 0], [], []>} : vector<16x16xbf16>, vector<16x16xbf16>, vector<16x16xf32> -> vector<16x16xf32>
    %cst_281 = arith.constant 2.500000e-01 : f32
    %362 = vector.broadcast %cst_281 : f32 to vector<16x16xf32>
    %363 = arith.mulf %361, %362 : vector<16x16xf32>
    %364 = arith.addf %363, %8 : vector<16x16xf32>
    %cst_282 = arith.constant dense<0xFF800000> : vector<16xf32>
    %365 = vector.multi_reduction <maximumf>, %364, %cst_282 [1] : vector<16x16xf32> to vector<16xf32>
    %366 = vector.shape_cast %365 : vector<16xf32> to vector<16x1xf32>
    %367 = vector.broadcast %366 : vector<16x1xf32> to vector<16x16xf32>
    %368 = arith.subf %364, %367 : vector<16x16xf32>
    %369 = math.exp %368 : vector<16x16xf32>
    %cst_283 = arith.constant dense<0.000000e+00> : vector<16xf32>
    %370 = vector.multi_reduction <add>, %369, %cst_283 [1] : vector<16x16xf32> to vector<16xf32>
    %371 = vector.shape_cast %370 : vector<16xf32> to vector<16x1xf32>
    %372 = tpu.reciprocal %371 {approx = true} : vector<16x1xf32> -> vector<16x1xf32>
    %373 = vector.broadcast %372 : vector<16x1xf32> to vector<16x16xf32>
    %374 = arith.mulf %369, %373 : vector<16x16xf32>
    %375 = arith.truncf %374 : vector<16x16xf32> to vector<16x16xbf16>
    %376 = arith.truncf %358 : vector<16x16xf32> to vector<16x16xbf16>
    %cst_284 = arith.constant dense<0.000000e+00> : vector<16x16xf32>
    %377 = tpu.matmul %375, %376, %cst_284 {dimension_numbers = #tpu.dot_dimension_numbers<[1], [0], [0], [1], [0, 0, 1, 1], [], []>} : vector<16x16xbf16>, vector<16x16xbf16>, vector<16x16xf32> -> vector<16x16xf32>
    %c0_285 = arith.constant 0 : index
    %c32_286 = arith.constant 32 : index
    %378 = vector.load %arg26[%c0_285, %c32_286] : memref<16x64xf32, #tpu.memory_space<vmem>>, vector<16x16xf32>
    tpu.vector_store %arg26[%c0_285, %c32_286], %377 {strides = array<i32>} : memref<16x64xf32, #tpu.memory_space<vmem>>, vector<16x16xf32>,
    %c1_287 = arith.constant 1 : index
    %c3_288 = arith.constant 3 : index
    %c0_289 = arith.constant 0 : index
    %c0_290 = arith.constant 0 : index
    %379 = vector.load %arg7[%c1_287, %c3_288, %c0_289, %c0_290] : memref<2x4x64x16xbf16, #tpu.memory_space<vmem>>, vector<1x1x64x16xbf16>
    %380 = vector.shape_cast %379 : vector<1x1x64x16xbf16> to vector<64x16xbf16>
    %cst_291 = arith.constant dense<0.000000e+00> : vector<16x16xf32>
    %381 = tpu.matmul %255, %380, %cst_291 {dimension_numbers = #tpu.dot_dimension_numbers<[1], [0], [0], [1], [0, 0, 1, 1], [], []>} : vector<16x64xbf16>, vector<64x16xbf16>, vector<16x16xf32> -> vector<16x16xf32>
    %c1_292 = arith.constant 1 : index
    %c3_293 = arith.constant 3 : index
    %c0_294 = arith.constant 0 : index
    %c0_295 = arith.constant 0 : index
    %382 = vector.load %arg8[%c1_292, %c3_293, %c0_294, %c0_295] : memref<2x4x1x16xf32, #tpu.memory_space<vmem>>, vector<1x1x1x16xf32>
    %383 = vector.shape_cast %382 : vector<1x1x1x16xf32> to vector<1x16xf32>
    %384 = vector.broadcast %383 : vector<1x16xf32> to vector<16x16xf32>
    %385 = arith.addf %381, %384 : vector<16x16xf32>
    %c1_296 = arith.constant 1 : index
    %c3_297 = arith.constant 3 : index
    %c0_298 = arith.constant 0 : index
    %c0_299 = arith.constant 0 : index
    %386 = vector.load %arg9[%c1_296, %c3_297, %c0_298, %c0_299] : memref<2x4x64x16xbf16, #tpu.memory_space<vmem>>, vector<1x1x64x16xbf16>
    %387 = vector.shape_cast %386 : vector<1x1x64x16xbf16> to vector<64x16xbf16>
    %cst_300 = arith.constant dense<0.000000e+00> : vector<16x16xf32>
    %388 = tpu.matmul %255, %387, %cst_300 {dimension_numbers = #tpu.dot_dimension_numbers<[1], [0], [0], [1], [0, 0, 1, 1], [], []>} : vector<16x64xbf16>, vector<64x16xbf16>, vector<16x16xf32> -> vector<16x16xf32>
    %c1_301 = arith.constant 1 : index
    %c3_302 = arith.constant 3 : index
    %c0_303 = arith.constant 0 : index
    %c0_304 = arith.constant 0 : index
    %389 = vector.load %arg10[%c1_301, %c3_302, %c0_303, %c0_304] : memref<2x4x1x16xf32, #tpu.memory_space<vmem>>, vector<1x1x1x16xf32>
    %390 = vector.shape_cast %389 : vector<1x1x1x16xf32> to vector<1x16xf32>
    %391 = vector.broadcast %390 : vector<1x16xf32> to vector<16x16xf32>
    %392 = arith.addf %388, %391 : vector<16x16xf32>
    %c1_305 = arith.constant 1 : index
    %c3_306 = arith.constant 3 : index
    %c0_307 = arith.constant 0 : index
    %c0_308 = arith.constant 0 : index
    %393 = vector.load %arg11[%c1_305, %c3_306, %c0_307, %c0_308] : memref<2x4x64x16xbf16, #tpu.memory_space<vmem>>, vector<1x1x64x16xbf16>
    %394 = vector.shape_cast %393 : vector<1x1x64x16xbf16> to vector<64x16xbf16>
    %cst_309 = arith.constant dense<0.000000e+00> : vector<16x16xf32>
    %395 = tpu.matmul %255, %394, %cst_309 {dimension_numbers = #tpu.dot_dimension_numbers<[1], [0], [0], [1], [0, 0, 1, 1], [], []>} : vector<16x64xbf16>, vector<64x16xbf16>, vector<16x16xf32> -> vector<16x16xf32>
    %c1_310 = arith.constant 1 : index
    %c3_311 = arith.constant 3 : index
    %c0_312 = arith.constant 0 : index
    %c0_313 = arith.constant 0 : index
    %396 = vector.load %arg12[%c1_310, %c3_311, %c0_312, %c0_313] : memref<2x4x1x16xf32, #tpu.memory_space<vmem>>, vector<1x1x1x16xf32>
    %397 = vector.shape_cast %396 : vector<1x1x1x16xf32> to vector<1x16xf32>
    %398 = vector.broadcast %397 : vector<1x16xf32> to vector<16x16xf32>
    %399 = arith.addf %395, %398 : vector<16x16xf32>
    %400 = arith.truncf %385 : vector<16x16xf32> to vector<16x16xbf16>
    %401 = arith.truncf %392 : vector<16x16xf32> to vector<16x16xbf16>
    %cst_314 = arith.constant dense<0.000000e+00> : vector<16x16xf32>
    %402 = tpu.matmul %400, %401, %cst_314 {dimension_numbers = #tpu.dot_dimension_numbers<[1], [1], [0], [0], [0, 0, 1, 0], [], []>} : vector<16x16xbf16>, vector<16x16xbf16>, vector<16x16xf32> -> vector<16x16xf32>
    %cst_315 = arith.constant 2.500000e-01 : f32
    %403 = vector.broadcast %cst_315 : f32 to vector<16x16xf32>
    %404 = arith.mulf %402, %403 : vector<16x16xf32>
    %405 = arith.addf %404, %8 : vector<16x16xf32>
    %cst_316 = arith.constant dense<0xFF800000> : vector<16xf32>
    %406 = vector.multi_reduction <maximumf>, %405, %cst_316 [1] : vector<16x16xf32> to vector<16xf32>
    %407 = vector.shape_cast %406 : vector<16xf32> to vector<16x1xf32>
    %408 = vector.broadcast %407 : vector<16x1xf32> to vector<16x16xf32>
    %409 = arith.subf %405, %408 : vector<16x16xf32>
    %410 = math.exp %409 : vector<16x16xf32>
    %cst_317 = arith.constant dense<0.000000e+00> : vector<16xf32>
    %411 = vector.multi_reduction <add>, %410, %cst_317 [1] : vector<16x16xf32> to vector<16xf32>
    %412 = vector.shape_cast %411 : vector<16xf32> to vector<16x1xf32>
    %413 = tpu.reciprocal %412 {approx = true} : vector<16x1xf32> -> vector<16x1xf32>
    %414 = vector.broadcast %413 : vector<16x1xf32> to vector<16x16xf32>
    %415 = arith.mulf %410, %414 : vector<16x16xf32>
    %416 = arith.truncf %415 : vector<16x16xf32> to vector<16x16xbf16>
    %417 = arith.truncf %399 : vector<16x16xf32> to vector<16x16xbf16>
    %cst_318 = arith.constant dense<0.000000e+00> : vector<16x16xf32>
    %418 = tpu.matmul %416, %417, %cst_318 {dimension_numbers = #tpu.dot_dimension_numbers<[1], [0], [0], [1], [0, 0, 1, 1], [], []>} : vector<16x16xbf16>, vector<16x16xbf16>, vector<16x16xf32> -> vector<16x16xf32>
    %c0_319 = arith.constant 0 : index
    %c48_320 = arith.constant 48 : index
    %419 = vector.load %arg26[%c0_319, %c48_320] : memref<16x64xf32, #tpu.memory_space<vmem>>, vector<16x16xf32>
    tpu.vector_store %arg26[%c0_319, %c48_320], %418 {strides = array<i32>} : memref<16x64xf32, #tpu.memory_space<vmem>>, vector<16x16xf32>,
    %c0_321 = arith.constant 0 : index
    %c0_322 = arith.constant 0 : index
    %420 = vector.load %arg26[%c0_321, %c0_322] : memref<16x64xf32, #tpu.memory_space<vmem>>, vector<16x64xf32>
    %421 = arith.truncf %420 : vector<16x64xf32> to vector<16x64xbf16>
    %c1_323 = arith.constant 1 : index
    %c0_324 = arith.constant 0 : index
    %c0_325 = arith.constant 0 : index
    %422 = vector.load %arg13[%c1_323, %c0_324, %c0_325] : memref<2x64x64xbf16, #tpu.memory_space<vmem>>, vector<1x64x64xbf16>
    %423 = vector.shape_cast %422 : vector<1x64x64xbf16> to vector<64x64xbf16>
    %cst_326 = arith.constant dense<0.000000e+00> : vector<16x64xf32>
    %424 = tpu.matmul %421, %423, %cst_326 {dimension_numbers = #tpu.dot_dimension_numbers<[1], [0], [0], [1], [0, 0, 1, 1], [], []>} : vector<16x64xbf16>, vector<64x64xbf16>, vector<16x64xf32> -> vector<16x64xf32>
    %c1_327 = arith.constant 1 : index
    %c0_328 = arith.constant 0 : index
    %c0_329 = arith.constant 0 : index
    %425 = vector.load %arg14[%c1_327, %c0_328, %c0_329] : memref<2x1x64xf32, #tpu.memory_space<vmem>>, vector<1x1x64xf32>
    %426 = vector.shape_cast %425 : vector<1x1x64xf32> to vector<1x64xf32>
    %427 = vector.broadcast %426 : vector<1x64xf32> to vector<16x64xf32>
    %428 = arith.addf %424, %427 : vector<16x64xf32>
    %429 = arith.addf %254, %428 : vector<16x64xf32>
    %c1_330 = arith.constant 1 : index
    %c0_331 = arith.constant 0 : index
    %c0_332 = arith.constant 0 : index
    %430 = vector.load %arg15[%c1_330, %c0_331, %c0_332] : memref<2x1x64xf32, #tpu.memory_space<vmem>>, vector<1x1x64xf32>
    %431 = vector.shape_cast %430 : vector<1x1x64xf32> to vector<1x64xf32>
    %c1_333 = arith.constant 1 : index
    %c0_334 = arith.constant 0 : index
    %c0_335 = arith.constant 0 : index
    %432 = vector.load %arg16[%c1_333, %c0_334, %c0_335] : memref<2x1x64xf32, #tpu.memory_space<vmem>>, vector<1x1x64xf32>
    %433 = vector.shape_cast %432 : vector<1x1x64xf32> to vector<1x64xf32>
    %cst_336 = arith.constant dense<0.000000e+00> : vector<16xf32>
    %434 = vector.multi_reduction <add>, %429, %cst_336 [1] : vector<16x64xf32> to vector<16xf32>
    %435 = vector.shape_cast %434 : vector<16xf32> to vector<16x1xf32>
    %cst_337 = arith.constant 6.400000e+01 : f32
    %436 = vector.broadcast %cst_337 : f32 to vector<16x1xf32>
    %437 = arith.divf %435, %436 : vector<16x1xf32>
    %438 = vector.broadcast %437 : vector<16x1xf32> to vector<16x64xf32>
    %439 = arith.subf %429, %438 : vector<16x64xf32>
    %440 = arith.mulf %439, %439 : vector<16x64xf32>
    %cst_338 = arith.constant dense<0.000000e+00> : vector<16xf32>
    %441 = vector.multi_reduction <add>, %440, %cst_338 [1] : vector<16x64xf32> to vector<16xf32>
    %442 = vector.shape_cast %441 : vector<16xf32> to vector<16x1xf32>
    %cst_339 = arith.constant 6.400000e+01 : f32
    %443 = vector.broadcast %cst_339 : f32 to vector<16x1xf32>
    %444 = arith.divf %442, %443 : vector<16x1xf32>
    %445 = vector.broadcast %437 : vector<16x1xf32> to vector<16x64xf32>
    %446 = arith.subf %429, %445 : vector<16x64xf32>
    %cst_340 = arith.constant 9.99999974E-6 : f32
    %447 = vector.broadcast %cst_340 : f32 to vector<16x1xf32>
    %448 = arith.addf %444, %447 : vector<16x1xf32>
    %449 = math.rsqrt %448 : vector<16x1xf32>
    %450 = vector.broadcast %449 : vector<16x1xf32> to vector<16x64xf32>
    %451 = arith.mulf %446, %450 : vector<16x64xf32>
    %452 = vector.broadcast %431 : vector<1x64xf32> to vector<16x64xf32>
    %453 = arith.mulf %451, %452 : vector<16x64xf32>
    %454 = vector.broadcast %433 : vector<1x64xf32> to vector<16x64xf32>
    %455 = arith.addf %453, %454 : vector<16x64xf32>
    %456 = arith.truncf %455 : vector<16x64xf32> to vector<16x64xbf16>
    %c1_341 = arith.constant 1 : index
    %c0_342 = arith.constant 0 : index
    %c0_343 = arith.constant 0 : index
    %457 = vector.load %arg17[%c1_341, %c0_342, %c0_343] : memref<2x64x512xbf16, #tpu.memory_space<vmem>>, vector<1x64x512xbf16>
    %458 = vector.shape_cast %457 : vector<1x64x512xbf16> to vector<64x512xbf16>
    %cst_344 = arith.constant dense<0.000000e+00> : vector<16x512xf32>
    %459 = tpu.matmul %456, %458, %cst_344 {dimension_numbers = #tpu.dot_dimension_numbers<[1], [0], [0], [1], [0, 0, 1, 1], [], []>} : vector<16x64xbf16>, vector<64x512xbf16>, vector<16x512xf32> -> vector<16x512xf32>
    %c1_345 = arith.constant 1 : index
    %c0_346 = arith.constant 0 : index
    %c0_347 = arith.constant 0 : index
    %460 = vector.load %arg18[%c1_345, %c0_346, %c0_347] : memref<2x1x512xf32, #tpu.memory_space<vmem>>, vector<1x1x512xf32>
    %461 = vector.shape_cast %460 : vector<1x1x512xf32> to vector<1x512xf32>
    %462 = vector.broadcast %461 : vector<1x512xf32> to vector<16x512xf32>
    %463 = arith.addf %459, %462 : vector<16x512xf32>
    %cst_348 = arith.constant 0.000000e+00 : f32
    %464 = vector.broadcast %cst_348 : f32 to vector<16x512xf32>
    %465 = arith.maximumf %463, %464 : vector<16x512xf32>
    %466 = arith.truncf %465 : vector<16x512xf32> to vector<16x512xbf16>
    %c1_349 = arith.constant 1 : index
    %c0_350 = arith.constant 0 : index
    %c0_351 = arith.constant 0 : index
    %467 = vector.load %arg19[%c1_349, %c0_350, %c0_351] : memref<2x512x64xbf16, #tpu.memory_space<vmem>>, vector<1x512x64xbf16>
    %468 = vector.shape_cast %467 : vector<1x512x64xbf16> to vector<512x64xbf16>
    %cst_352 = arith.constant dense<0.000000e+00> : vector<16x64xf32>
    %469 = tpu.matmul %466, %468, %cst_352 {dimension_numbers = #tpu.dot_dimension_numbers<[1], [0], [0], [1], [0, 0, 1, 1], [], []>} : vector<16x512xbf16>, vector<512x64xbf16>, vector<16x64xf32> -> vector<16x64xf32>
    %c1_353 = arith.constant 1 : index
    %c0_354 = arith.constant 0 : index
    %c0_355 = arith.constant 0 : index
    %470 = vector.load %arg20[%c1_353, %c0_354, %c0_355] : memref<2x1x64xf32, #tpu.memory_space<vmem>>, vector<1x1x64xf32>
    %471 = vector.shape_cast %470 : vector<1x1x64xf32> to vector<1x64xf32>
    %472 = vector.broadcast %471 : vector<1x64xf32> to vector<16x64xf32>
    %473 = arith.addf %469, %472 : vector<16x64xf32>
    %474 = arith.addf %455, %473 : vector<16x64xf32>
    %c1_356 = arith.constant 1 : index
    %c0_357 = arith.constant 0 : index
    %c0_358 = arith.constant 0 : index
    %475 = vector.load %arg21[%c1_356, %c0_357, %c0_358] : memref<2x1x64xf32, #tpu.memory_space<vmem>>, vector<1x1x64xf32>
    %476 = vector.shape_cast %475 : vector<1x1x64xf32> to vector<1x64xf32>
    %c1_359 = arith.constant 1 : index
    %c0_360 = arith.constant 0 : index
    %c0_361 = arith.constant 0 : index
    %477 = vector.load %arg22[%c1_359, %c0_360, %c0_361] : memref<2x1x64xf32, #tpu.memory_space<vmem>>, vector<1x1x64xf32>
    %478 = vector.shape_cast %477 : vector<1x1x64xf32> to vector<1x64xf32>
    %cst_362 = arith.constant dense<0.000000e+00> : vector<16xf32>
    %479 = vector.multi_reduction <add>, %474, %cst_362 [1] : vector<16x64xf32> to vector<16xf32>
    %480 = vector.shape_cast %479 : vector<16xf32> to vector<16x1xf32>
    %cst_363 = arith.constant 6.400000e+01 : f32
    %481 = vector.broadcast %cst_363 : f32 to vector<16x1xf32>
    %482 = arith.divf %480, %481 : vector<16x1xf32>
    %483 = vector.broadcast %482 : vector<16x1xf32> to vector<16x64xf32>
    %484 = arith.subf %474, %483 : vector<16x64xf32>
    %485 = arith.mulf %484, %484 : vector<16x64xf32>
    %cst_364 = arith.constant dense<0.000000e+00> : vector<16xf32>
    %486 = vector.multi_reduction <add>, %485, %cst_364 [1] : vector<16x64xf32> to vector<16xf32>
    %487 = vector.shape_cast %486 : vector<16xf32> to vector<16x1xf32>
    %cst_365 = arith.constant 6.400000e+01 : f32
    %488 = vector.broadcast %cst_365 : f32 to vector<16x1xf32>
    %489 = arith.divf %487, %488 : vector<16x1xf32>
    %490 = vector.broadcast %482 : vector<16x1xf32> to vector<16x64xf32>
    %491 = arith.subf %474, %490 : vector<16x64xf32>
    %cst_366 = arith.constant 9.99999974E-6 : f32
    %492 = vector.broadcast %cst_366 : f32 to vector<16x1xf32>
    %493 = arith.addf %489, %492 : vector<16x1xf32>
    %494 = math.rsqrt %493 : vector<16x1xf32>
    %495 = vector.broadcast %494 : vector<16x1xf32> to vector<16x64xf32>
    %496 = arith.mulf %491, %495 : vector<16x64xf32>
    %497 = vector.broadcast %476 : vector<1x64xf32> to vector<16x64xf32>
    %498 = arith.mulf %496, %497 : vector<16x64xf32>
    %499 = vector.broadcast %478 : vector<1x64xf32> to vector<16x64xf32>
    %500 = arith.addf %498, %499 : vector<16x64xf32>
    %c0_367 = arith.constant 0 : index
    %c0_368 = arith.constant 0 : index
    %501 = vector.load %arg4[%c0_367, %c0_368] : memref<2x16xf32, #tpu.memory_space<vmem>>, vector<2x16xf32>
    %cst_369 = arith.constant dense<0.000000e+00> : vector<2x64xf32>
    %502 = tpu.matmul %501, %500, %cst_369 {dimension_numbers = #tpu.dot_dimension_numbers<[1], [0], [0], [1], [0, 0, 1, 1], [], []>} : vector<2x16xf32>, vector<16x64xf32>, vector<2x64xf32> -> vector<2x64xf32>
    %503 = arith.truncf %502 : vector<2x64xf32> to vector<2x64xbf16>
    %c0_370 = arith.constant 0 : index
    %c0_371 = arith.constant 0 : index
    %504 = vector.load %arg23[%c0_370, %c0_371] : memref<64x12xbf16, #tpu.memory_space<vmem>>, vector<64x12xbf16>
    %cst_372 = arith.constant dense<0.000000e+00> : vector<2x12xf32>
    %505 = tpu.matmul %503, %504, %cst_372 {dimension_numbers = #tpu.dot_dimension_numbers<[1], [0], [0], [1], [0, 0, 1, 1], [], []>} : vector<2x64xbf16>, vector<64x12xbf16>, vector<2x12xf32> -> vector<2x12xf32>
    %c0_373 = arith.constant 0 : index
    %c0_374 = arith.constant 0 : index
    %506 = vector.load %arg24[%c0_373, %c0_374] : memref<1x12xf32, #tpu.memory_space<vmem>>, vector<1x12xf32>
    %507 = vector.broadcast %506 : vector<1x12xf32> to vector<2x12xf32>
    %508 = arith.addf %505, %507 : vector<2x12xf32>
    %c0_375 = arith.constant 0 : index
    %c0_376 = arith.constant 0 : index
    %509 = vector.load %arg25[%c0_375, %c0_376] : memref<2x12xf32, #tpu.memory_space<vmem>>, vector<2x12xf32>
    tpu.vector_store %arg25[%c0_375, %c0_376], %508 {strides = array<i32>} : memref<2x12xf32, #tpu.memory_space<vmem>>, vector<2x12xf32>,
    return
  }
  func.func @transform_0(%arg0: i32) -> (i32, i32) {
    %c0_i32 = arith.constant 0 : i32
    %c0_i32_0 = arith.constant 0 : i32
    %c0_i32_1 = arith.constant 0 : i32
    return %c0_i32, %c0_i32_0 : i32, i32
  }
  func.func @transform_1(%arg0: i32) -> (i32, i32) {
    %c0_i32 = arith.constant 0 : i32
    %c0_i32_0 = arith.constant 0 : i32
    %c0_i32_1 = arith.constant 0 : i32
    return %c0_i32, %c0_i32_0 : i32, i32
  }
  func.func @transform_2(%arg0: i32) -> (i32, i32) {
    %c0_i32 = arith.constant 0 : i32
    %c0_i32_0 = arith.constant 0 : i32
    %c0_i32_1 = arith.constant 0 : i32
    return %c0_i32, %c0_i32_0 : i32, i32
  }
  func.func @transform_3(%arg0: i32) -> (i32, i32) {
    %c0_i32 = arith.constant 0 : i32
    %c0_i32_0 = arith.constant 0 : i32
    %c0_i32_1 = arith.constant 0 : i32
    return %c0_i32, %c0_i32_0 : i32, i32
  }
  func.func @transform_4(%arg0: i32) -> (i32, i32) {
    %c0_i32 = arith.constant 0 : i32
    %c0_i32_0 = arith.constant 0 : i32
    %c0_i32_1 = arith.constant 0 : i32
    return %c0_i32, %c0_i32_0 : i32, i32
  }
  func.func @transform_5(%arg0: i32) -> (i32, i32) {
    %c0_i32 = arith.constant 0 : i32
    %c0_i32_0 = arith.constant 0 : i32
    %c0_i32_1 = arith.constant 0 : i32
    return %c0_i32, %c0_i32_0 : i32, i32
  }
  func.func @transform_6(%arg0: i32) -> (i32, i32, i32, i32) {
    %c0_i32 = arith.constant 0 : i32
    %c0_i32_0 = arith.constant 0 : i32
    %c0_i32_1 = arith.constant 0 : i32
    %c0_i32_2 = arith.constant 0 : i32
    %c0_i32_3 = arith.constant 0 : i32
    return %c0_i32, %c0_i32_0, %c0_i32_1, %c0_i32_2 : i32, i32, i32, i32
  }
  func.func @transform_7(%arg0: i32) -> (i32, i32, i32, i32) {
    %c0_i32 = arith.constant 0 : i32
    %c0_i32_0 = arith.constant 0 : i32
    %c0_i32_1 = arith.constant 0 : i32
    %c0_i32_2 = arith.constant 0 : i32
    %c0_i32_3 = arith.constant 0 : i32
    return %c0_i32, %c0_i32_0, %c0_i32_1, %c0_i32_2 : i32, i32, i32, i32
  }
  func.func @transform_8(%arg0: i32) -> (i32, i32, i32, i32) {
    %c0_i32 = arith.constant 0 : i32
    %c0_i32_0 = arith.constant 0 : i32
    %c0_i32_1 = arith.constant 0 : i32
    %c0_i32_2 = arith.constant 0 : i32
    %c0_i32_3 = arith.constant 0 : i32
    return %c0_i32, %c0_i32_0, %c0_i32_1, %c0_i32_2 : i32, i32, i32, i32
  }
  func.func @transform_9(%arg0: i32) -> (i32, i32, i32, i32) {
    %c0_i32 = arith.constant 0 : i32
    %c0_i32_0 = arith.constant 0 : i32
    %c0_i32_1 = arith.constant 0 : i32
    %c0_i32_2 = arith.constant 0 : i32
    %c0_i32_3 = arith.constant 0 : i32
    return %c0_i32, %c0_i32_0, %c0_i32_1, %c0_i32_2 : i32, i32, i32, i32
  }
  func.func @transform_10(%arg0: i32) -> (i32, i32, i32, i32) {
    %c0_i32 = arith.constant 0 : i32
    %c0_i32_0 = arith.constant 0 : i32
    %c0_i32_1 = arith.constant 0 : i32
    %c0_i32_2 = arith.constant 0 : i32
    %c0_i32_3 = arith.constant 0 : i32
    return %c0_i32, %c0_i32_0, %c0_i32_1, %c0_i32_2 : i32, i32, i32, i32
  }
  func.func @transform_11(%arg0: i32) -> (i32, i32, i32, i32) {
    %c0_i32 = arith.constant 0 : i32
    %c0_i32_0 = arith.constant 0 : i32
    %c0_i32_1 = arith.constant 0 : i32
    %c0_i32_2 = arith.constant 0 : i32
    %c0_i32_3 = arith.constant 0 : i32
    return %c0_i32, %c0_i32_0, %c0_i32_1, %c0_i32_2 : i32, i32, i32, i32
  }
  func.func @transform_12(%arg0: i32) -> (i32, i32, i32) {
    %c0_i32 = arith.constant 0 : i32
    %c0_i32_0 = arith.constant 0 : i32
    %c0_i32_1 = arith.constant 0 : i32
    %c0_i32_2 = arith.constant 0 : i32
    return %c0_i32, %c0_i32_0, %c0_i32_1 : i32, i32, i32
  }
  func.func @transform_13(%arg0: i32) -> (i32, i32, i32) {
    %c0_i32 = arith.constant 0 : i32
    %c0_i32_0 = arith.constant 0 : i32
    %c0_i32_1 = arith.constant 0 : i32
    %c0_i32_2 = arith.constant 0 : i32
    return %c0_i32, %c0_i32_0, %c0_i32_1 : i32, i32, i32
  }
  func.func @transform_14(%arg0: i32) -> (i32, i32, i32) {
    %c0_i32 = arith.constant 0 : i32
    %c0_i32_0 = arith.constant 0 : i32
    %c0_i32_1 = arith.constant 0 : i32
    %c0_i32_2 = arith.constant 0 : i32
    return %c0_i32, %c0_i32_0, %c0_i32_1 : i32, i32, i32
  }
  func.func @transform_15(%arg0: i32) -> (i32, i32, i32) {
    %c0_i32 = arith.constant 0 : i32
    %c0_i32_0 = arith.constant 0 : i32
    %c0_i32_1 = arith.constant 0 : i32
    %c0_i32_2 = arith.constant 0 : i32
    return %c0_i32, %c0_i32_0, %c0_i32_1 : i32, i32, i32
  }
  func.func @transform_16(%arg0: i32) -> (i32, i32, i32) {
    %c0_i32 = arith.constant 0 : i32
    %c0_i32_0 = arith.constant 0 : i32
    %c0_i32_1 = arith.constant 0 : i32
    %c0_i32_2 = arith.constant 0 : i32
    return %c0_i32, %c0_i32_0, %c0_i32_1 : i32, i32, i32
  }
  func.func @transform_17(%arg0: i32) -> (i32, i32, i32) {
    %c0_i32 = arith.constant 0 : i32
    %c0_i32_0 = arith.constant 0 : i32
    %c0_i32_1 = arith.constant 0 : i32
    %c0_i32_2 = arith.constant 0 : i32
    return %c0_i32, %c0_i32_0, %c0_i32_1 : i32, i32, i32
  }
  func.func @transform_18(%arg0: i32) -> (i32, i32, i32) {
    %c0_i32 = arith.constant 0 : i32
    %c0_i32_0 = arith.constant 0 : i32
    %c0_i32_1 = arith.constant 0 : i32
    %c0_i32_2 = arith.constant 0 : i32
    return %c0_i32, %c0_i32_0, %c0_i32_1 : i32, i32, i32
  }
  func.func @transform_19(%arg0: i32) -> (i32, i32, i32) {
    %c0_i32 = arith.constant 0 : i32
    %c0_i32_0 = arith.constant 0 : i32
    %c0_i32_1 = arith.constant 0 : i32
    %c0_i32_2 = arith.constant 0 : i32
    return %c0_i32, %c0_i32_0, %c0_i32_1 : i32, i32, i32
  }
  func.func @transform_20(%arg0: i32) -> (i32, i32, i32) {
    %c0_i32 = arith.constant 0 : i32
    %c0_i32_0 = arith.constant 0 : i32
    %c0_i32_1 = arith.constant 0 : i32
    %c0_i32_2 = arith.constant 0 : i32
    return %c0_i32, %c0_i32_0, %c0_i32_1 : i32, i32, i32
  }
  func.func @transform_21(%arg0: i32) -> (i32, i32, i32) {
    %c0_i32 = arith.constant 0 : i32
    %c0_i32_0 = arith.constant 0 : i32
    %c0_i32_1 = arith.constant 0 : i32
    %c0_i32_2 = arith.constant 0 : i32
    return %c0_i32, %c0_i32_0, %c0_i32_1 : i32, i32, i32
  }
  func.func @transform_22(%arg0: i32) -> (i32, i32) {
    %c0_i32 = arith.constant 0 : i32
    %c0_i32_0 = arith.constant 0 : i32
    %c0_i32_1 = arith.constant 0 : i32
    return %c0_i32, %c0_i32_0 : i32, i32
  }
  func.func @transform_23(%arg0: i32) -> (i32, i32) {
    %c0_i32 = arith.constant 0 : i32
    %c0_i32_0 = arith.constant 0 : i32
    %c0_i32_1 = arith.constant 0 : i32
    return %c0_i32, %c0_i32_0 : i32, i32
  }
  func.func @transform_24(%arg0: i32) -> (i32, i32) {
    %c0_i32 = arith.constant 0 : i32
    %c0_i32_0 = arith.constant 0 : i32
    %c0_i32_1 = arith.constant 0 : i32
    return %c0_i32, %c0_i32_0 : i32, i32
  }
}

</mosaic_0001>

<bundles_post_ra>
// kernel: patchtst_forward.1
= control target key start
LH: loop header
LB: loop body
LE: loop exit
PB: predicated region body
PF: predicated region fallthrough
CT: control target
= control target key end

     0   :  { %v6415_v0 = vmov 0.0   ;;  %vm6416_vm0 = vmmov 0   ;;  %vm108_vm1 = vcmask 261120   ;;  %vm199_vm2 = vcmask 523264   ;;  %s7929_s29 = smov 32   ;;  %s7927_s30 = smov 48   ;;  %s7895_s4 = inlined_call_operand.vmem [shape: bf16[32,64], index: 4, kind: input, shape index: {}]   ;;  %s7896_s0 = inlined_call_operand.vmem [shape: bf16[16,32], index: 0, kind: input, shape index: {}]   ;;  %s7897_s8 = inlined_call_operand.vmem [shape: bf16[2,4,64,16], index: 8, kind: input, shape index: {}]   ;;  %s7898_s6 = inlined_call_operand.vmem [shape: bf16[2,4,64,16], index: 6, kind: input, shape index: {}]   ;;  %s7899_s10 = inlined_call_operand.vmem [shape: bf16[2,4,64,16], index: 10, kind: input, shape index: {}]   ;;  %s7900_s5 = inlined_call_operand.vmem [shape: f32[1,64], index: 5, kind: input, shape index: {}]   ;;  %s7901_s1 = inlined_call_operand.vmem [shape: f32[16,64], index: 1, kind: input, shape index: {}]   ;;  %s7902_s7 = inlined_call_operand.vmem [shape: f32[2,4,1,16], index: 7, kind: input, shape index: {}]   ;;  %s7903_s9 = inlined_call_operand.vmem [shape: f32[2,4,1,16], index: 9, kind: input, shape index: {}]   ;;  %s7904_s11 = inlined_call_operand.vmem [shape: f32[2,4,1,16], index: 11, kind: input, shape index: {}]   ;;  %s7905_s2 = inlined_call_operand.vmem [shape: f32[16,16], index: 2, kind: input, shape index: {}]   ;;  %s7906_s12 = inlined_call_operand.vmem [shape: bf16[2,64,64], index: 12, kind: input, shape index: {}]   ;;  %s7907_s13 = inlined_call_operand.vmem [shape: f32[2,1,64], index: 13, kind: input, shape index: {}]   ;;  %s7908_s16 = inlined_call_operand.vmem [shape: bf16[2,64,512], index: 16, kind: input, shape index: {}]   ;;  %s7909_s18 = inlined_call_operand.vmem [shape: bf16[2,512,64], index: 18, kind: input, shape index: {}]   ;;  %s7910_s14 = inlined_call_operand.vmem [shape: f32[2,1,64], index: 14, kind: input, shape index: {}]   ;;  %s7911_s15 = inlined_call_operand.vmem [shape: f32[2,1,64], index: 15, kind: input, shape index: {}]   ;;  %s7912_s17 = inlined_call_operand.vmem [shape: f32[2,1,512], index: 17, kind: input, shape index: {}]   ;;  %s7913_s19 = inlined_call_operand.vmem [shape: f32[2,1,64], index: 19, kind: input, shape index: {}]   ;;  %s7914_s20 = inlined_call_operand.vmem [shape: f32[2,1,64], index: 20, kind: input, shape index: {}]   ;;  %s7915_s21 = inlined_call_operand.vmem [shape: f32[2,1,64], index: 21, kind: input, shape index: {}]   ;;  %s7916_s22 = inlined_call_operand.vmem [shape: bf16[64,12], index: 22, kind: input, shape index: {}]   ;;  %s7917_s3 = inlined_call_operand.vmem [shape: f32[2,16], index: 3, kind: input, shape index: {}]   ;;  %s7918_s23 = inlined_call_operand.vmem [shape: f32[1,12], index: 23, kind: input, shape index: {}]   ;;  %s7919_s24 = inlined_call_operand.vmem [shape: f32[2,12], index: 24, kind: output, shape index: {}]  }
   0x1   :  { %7933 = sst [smem:[#allocation3_spill]] %s7895_s4  ;;  %5665 = vmatprep.subr.bf16.mxu1 %v6415_v0  ;;  %5669 = vmatprep.mubr.msk.bf16.mxu1 %vm6416_vm0, %v6415_v0  ;;  %vm406_vm3 = vcmask 130048   ;;  %vm903_vm4 = vcmask 261248   ;;  %vm1281_vm5 = vcmask 392448   ;;  %vm1659_vm6 = vcmask 523648  }
   0x2   :  { %7934 = sst [smem:[#allocation4_spill]] %s7896_s0  ;;  %s7942_s27 = sld [smem:[#allocation3_spill]]  ;;  %5685 = vmatprep.subr.bf16.mxu0 %v6415_v0  ;;  %5693 = vmatprep.mubr.msk.bf16.mxu0 %vm6416_vm0, %v6415_v0  ;;  %vm4820_vm7 = vcmask 91136  }
   0x3   :  { %7935 = sst [smem:[#allocation5_spill]] %s7897_s8  ;;  %s7943_s4 = sld [smem:[#allocation4_spill]] }
   0x4   :  { %7936 = sst [smem:[#allocation6_spill]] %s7898_s6  ;;  %s7944_s6 = sld [smem:[#allocation5_spill]] }
   0x5   :  { %7937 = sst [smem:[#allocation7_spill]] %s7899_s10  ;;  %s7945_s10 = sld [smem:[#allocation6_spill]] }
   0x6   :  { %7938 = sst [smem:[#allocation8_spill]] %s7900_s5  ;;  %s7931_s8 = smov 16  }
   0x7   :  { %7939 = sst [smem:[#allocation9_spill]] %s7901_s1  ;;  %s7946_s5 = sld [smem:[#allocation8_spill]] }
   0x8   :  { %7940 = sst [smem:[#allocation10_spill]] %s7902_s7  ;;  %v6110_v1 = vld [vmem:[%s7942_s27] sm:$0xff]   ;;  %v6111_v2 = vld [vmem:[%s7942_s27 + $0x8] sm:$0xff]   ;;  %s7947_s28 = sld [smem:[#allocation9_spill]] }
   0x9   :  { %7941 = sst [smem:[#allocation11_spill]] %s7903_s9  ;;  %5666 = vmatpush3.bf16.msra.mxu1 %v6110_v1  ;;  %v6112_v3 = vld [vmem:[%s7943_s4] sm:$0xff]   ;;  %s7948_s7 = sld [smem:[#allocation7_spill]] }
   0xa   :  { %5667 = vmatprep.subr.bf16.mxu1 %v6415_v0  ;;  %v6114_v4 = vld [vmem:[%s7944_s6] sm:$0xff]   ;;  %v6116_v6 = vld [vmem:[%s7944_s6 + $0x8] sm:$0xff]   ;;  %v6118_v9 = vld [vmem:[%s7944_s6 + $0x10] sm:$0xff]   ;;  %s7949_s1 = sld [smem:[#allocation10_spill]]  ;;  %s7950_s4 = sld [smem:[#allocation11_spill]] }
   0xb   :  { %v6113_v5 = vld [vmem:[%s7945_s10] sm:$0xff]   ;;  %5686 = vmatpush3.bf16.msra.mxu0 %v6114_v4  ;;  %v6115_v7 = vld [vmem:[%s7945_s10 + $0x8] sm:$0xff]   ;;  %v6117_v8 = vld [vmem:[%s7945_s10 + $0x10] sm:$0xff]  }
   0xc   :  { %5687 = vmatprep.subr.bf16.mxu0 %v6415_v0  ;;  %v6119_v10 = vld [vmem:[%s7945_s10 + $0x18] sm:$0xff]   ;;  %v6125_v28 = vld [vmem:[%s7945_s10 + $0x20] sm:$0xff]   ;;  %v6126_v29 = vld [vmem:[%s7945_s10 + $0x28] sm:$0xff]  }
   0xd   :  { %5668 = vmatpush3.bf16.msra.mxu1 %v6111_v2  ;;  %v6120_v11 = vld [vmem:[%s7944_s6 + $0x18] sm:$0xff]   ;;  %v4826_v12 = vld [vmem:[%s7946_s5] ss:$0 sm:$0xff]  ;;  %v6127_v30 = vld [vmem:[%s7945_s10 + $0x30] sm:$0xff]  }
   0xe   :  { %5673 = vmatprep.subr.bf16.mxu1 %v6415_v0  ;;  %v153_v16 = vld [vmem:[%s7947_s28] sm:$0xff]  ;;  %v154_v18 = vld [vmem:[%s7947_s28 + $0x8] sm:$0xff]  ;;  %v6128_v31 = vld [vmem:[%s7945_s10 + $0x38] sm:$0xff]  }
   0xf   :  { %5688 = vmatpush3.bf16.msra.mxu0 %v6116_v6  ;;  %v6121_v23 = vld [vmem:[%s7948_s7] sm:$0xff]   ;;  %v6122_v25 = vld [vmem:[%s7948_s7 + $0x8] sm:$0xff]   ;;  %v6123_v26 = vld [vmem:[%s7948_s7 + $0x10] sm:$0xff]  }
  0x10   :  { %5670 = vmatmul.mubr.msk.bf16.vlgmr.msra.gmra.mrb[0].mxu1 %vm108_vm1, %v6112_v3  ;;  %5689 = vmatprep.subr.bf16.mxu0 %v6415_v0  ;;  %v6124_v27 = vld [vmem:[%s7948_s7 + $0x18] sm:$0xff]   ;;  %v6129_v32 = vld [vmem:[%s7948_s7 + $0x20] sm:$0xff]   ;;  %v6130_v33 = vld [vmem:[%s7948_s7 + $0x28] sm:$0xff]  }
  0x11   :  { %5674 = vmatpush3.bf16.msra.mxu1 %v6113_v5  ;;  %5681 = vmatprep.mubr.msk.bf16.mxu1 %vm6416_vm0, %v6415_v0  ;;  %v6131_v34 = vld [vmem:[%s7948_s7 + $0x30] sm:$0xff]   ;;  %v6132_v35 = vld [vmem:[%s7948_s7 + $0x38] sm:$0xff]   ;;  %v6133_v36 = vld [vmem:[%s7945_s10 + $0x40] sm:$0xff]  }
  0x12   :  { %5675 = vmatprep.subr.bf16.mxu1 %v6415_v0  ;;  %v6134_v37 = vld [vmem:[%s7945_s10 + $0x48] sm:$0xff]   ;;  %v6135_v38 = vld [vmem:[%s7945_s10 + $0x50] sm:$0xff]   ;;  %v6136_v39 = vld [vmem:[%s7945_s10 + $0x58] sm:$0xff]  }
  0x13   :  { %5690 = vmatpush3.bf16.msra.mxu0 %v6118_v9  ;;  %v6137_v40 = vld [vmem:[%s7948_s7 + $0x40] sm:$0xff]   ;;  %v6138_v41 = vld [vmem:[%s7948_s7 + $0x48] sm:$0xff]   ;;  %v6139_v42 = vld [vmem:[%s7948_s7 + $0x50] sm:$0xff]  }
  0x14   :  { %5691 = vmatprep.subr.bf16.mxu0 %v6415_v0  ;;  %v6140_v43 = vld [vmem:[%s7948_s7 + $0x58] sm:$0xff]   ;;  %v6141_v44 = vld [vmem:[%s7945_s10 + $0x60] sm:$0xff]   ;;  %v6142_v45 = vld [vmem:[%s7945_s10 + $0x68] sm:$0xff]  }
  0x15   :  { %5676 = vmatpush3.bf16.msra.mxu1 %v6115_v7  ;;  %v6143_v46 = vld [vmem:[%s7945_s10 + $0x70] sm:$0xff]   ;;  %v6144_v47 = vld [vmem:[%s7945_s10 + $0x78] sm:$0xff]   ;;  %v6145_v48 = vld [vmem:[%s7948_s7 + $0x60] sm:$0xff]  }
  0x16   :  { %5677 = vmatprep.subr.bf16.mxu1 %v6415_v0  ;;  %v6146_v49 = vld [vmem:[%s7948_s7 + $0x68] sm:$0xff]   ;;  %v6147_v50 = vld [vmem:[%s7948_s7 + $0x70] sm:$0xff]   ;;  %v6148_v51 = vld [vmem:[%s7948_s7 + $0x78] sm:$0xff]  }
  0x17   :  { %5692 = vmatpush3.bf16.msra.mxu0 %v6120_v11  ;;  %v4831_v52 = vld [vmem:[%s7949_s1] ss:$0 sm:$0xff] }
  0x18   :  { %5709 = vmatprep.subr.bf16.mxu0 %v6415_v0  ;;  %v4837_v54 = vld [vmem:[%s7950_s4] ss:$0 sm:$0xff] }
  0x19   :  { %5678 = vmatpush3.bf16.msra.mxu1 %v6117_v8  ;;  %v4843_v6 = vld [vmem:[%s7904_s11] ss:$0 sm:$0xff] }
  0x1a   :  { %5679 = vmatprep.subr.bf16.mxu1 %v6415_v0 }
  0x1d   :  { %5680 = vmatpush3.bf16.msra.mxu1 %v6119_v10 }
  0x1e   :  { %5697 = vmatprep.subr.bf16.mxu1 %v6415_v0 }
  0xe3   :  { %v146_v13 = vpop.f32.mrb[0].mxu1 }
  0xe4   :  { %v147_v14 = vadd.f32 %v4826_v12, %v146_v13  ;;  %v5671_v15 = vpop.f32.mrb[1].mxu1 }
  0xe5   :  { %v149_v17 = vpop.f32.mrb[2].mxu1 }
  0xe6   :  { %v150_v19 = vadd.f32 %v4826_v12, %v149_v17  ;;  %v5672_v20 = vpop.f32.mrb[3].mxu1  ;;  %v6607_v21 = vadd.f32 %v153_v16, %v147_v14  ;;  %v4860_v14 = vld [vmem:[%s7949_s1 + $0x1] ss:$0 sm:$0xff] }
  0xe8   :  { %v6609_v22 = vadd.f32 %v154_v18, %v150_v19 }
  0xea   :  { %v6616_v24 = vpack.c.bf16 %v6609_v22, %v6607_v21 }
  0xec   :  { %5682 = vmatmul.mubr.msk.bf16.vlgmr.msra.gmra.mrb[4].mxu1 %vm199_vm2, %v6616_v24  ;;  %5694 = vmatmul.mubr.msk.bf16.vlgmr.msra.gmra.mrb[0].mxu0 %vm199_vm2, %v6616_v24 }
  0xed   :  { %5698 = vmatpush3.bf16.msra.mxu1 %v6121_v23  ;;  %5705 = vmatprep.mubr.msk.bf16.mxu1 %vm6416_vm0, %v6415_v0 }
  0xee   :  { %5699 = vmatprep.subr.bf16.mxu1 %v6415_v0  ;;  %5711 = vmatprep.mubr.msk.bf16.mxu0 %vm6416_vm0, %v6415_v0 }
  0xf1   :  { %5700 = vmatpush3.bf16.msra.mxu1 %v6122_v25  ;;  %v4890_v25 = vld [vmem:[%s7904_s11 + $0x1] ss:$0 sm:$0xff] }
  0xf2   :  { %5701 = vmatprep.subr.bf16.mxu1 %v6415_v0 }
  0xf5   :  { %5702 = vmatpush3.bf16.msra.mxu1 %v6123_v26 }
  0xf6   :  { %5703 = vmatprep.subr.bf16.mxu1 %v6415_v0 }
  0xf9   :  { %5704 = vmatpush3.bf16.msra.mxu1 %v6124_v27 }
  0xfa   :  { %5721 = vmatprep.subr.bf16.mxu1 %v6415_v0 }
  0xfc   :  { %5706 = vmatmul.mubr.msk.bf16.vlgmr.msra.gmra.mrb[8].mxu1 %vm199_vm2, %v6616_v24 }
  0xfd   :  { %5722 = vmatpush3.bf16.msra.mxu1 %v6125_v28  ;;  %5729 = vmatprep.mubr.msk.bf16.mxu1 %vm6416_vm0, %v6415_v0 }
  0xfe   :  { %5723 = vmatprep.subr.bf16.mxu1 %v6415_v0 }
 0x101   :  { %5724 = vmatpush3.bf16.msra.mxu1 %v6126_v29 }
 0x102   :  { %5725 = vmatprep.subr.bf16.mxu1 %v6415_v0 }
 0x105   :  { %5726 = vmatpush3.bf16.msra.mxu1 %v6127_v30 }
 0x106   :  { %5727 = vmatprep.subr.bf16.mxu1 %v6415_v0 }
 0x109   :  { %5728 = vmatpush3.bf16.msra.mxu1 %v6128_v31 }
 0x10a   :  { %5745 = vmatprep.subr.bf16.mxu1 %v6415_v0 }
 0x10c   :  { %5730 = vmatmul.mubr.msk.bf16.vlgmr.msra.gmra.mrb[12].mxu1 %vm199_vm2, %v6616_v24 }
 0x10d   :  { %5746 = vmatpush3.bf16.msra.mxu1 %v6129_v32  ;;  %5753 = vmatprep.mubr.msk.bf16.mxu1 %vm6416_vm0, %v6415_v0 }
 0x10e   :  { %5747 = vmatprep.subr.bf16.mxu1 %v6415_v0 }
 0x111   :  { %5748 = vmatpush3.bf16.msra.mxu1 %v6130_v33  ;;  %v4907_v33 = vld [vmem:[%s7949_s1 + $0x2] ss:$0 sm:$0xff] }
 0x112   :  { %5749 = vmatprep.subr.bf16.mxu1 %v6415_v0 }
 0x115   :  { %5750 = vmatpush3.bf16.msra.mxu1 %v6131_v34 }
 0x116   :  { %5751 = vmatprep.subr.bf16.mxu1 %v6415_v0 }
 0x119   :  { %5752 = vmatpush3.bf16.msra.mxu1 %v6132_v35 }
 0x11a   :  { %5769 = vmatprep.subr.bf16.mxu1 %v6415_v0 }
 0x11c   :  { %5754 = vmatmul.mubr.msk.bf16.vlgmr.msra.gmra.mrb[16].mxu1 %vm199_vm2, %v6616_v24 }
 0x11d   :  { %5770 = vmatpush3.bf16.msra.mxu1 %v6133_v36  ;;  %5777 = vmatprep.mubr.msk.bf16.mxu1 %vm6416_vm0, %v6415_v0 }
 0x11e   :  { %5771 = vmatprep.subr.bf16.mxu1 %v6415_v0 }
 0x121   :  { %5772 = vmatpush3.bf16.msra.mxu1 %v6134_v37 }
 0x122   :  { %5773 = vmatprep.subr.bf16.mxu1 %v6415_v0 }
 0x125   :  { %5774 = vmatpush3.bf16.msra.mxu1 %v6135_v38 }
 0x126   :  { %5775 = vmatprep.subr.bf16.mxu1 %v6415_v0 }
 0x129   :  { %5776 = vmatpush3.bf16.msra.mxu1 %v6136_v39 }
 0x12a   :  { %5793 = vmatprep.subr.bf16.mxu1 %v6415_v0 }
 0x12c   :  { %5778 = vmatmul.mubr.msk.bf16.vlgmr.msra.gmra.mrb[20].mxu1 %vm199_vm2, %v6616_v24 }
 0x12d   :  { %5794 = vmatpush3.bf16.msra.mxu1 %v6137_v40  ;;  %5801 = vmatprep.mubr.msk.bf16.mxu1 %vm6416_vm0, %v6415_v0 }
 0x12e   :  { %5795 = vmatprep.subr.bf16.mxu1 %v6415_v0 }
 0x131   :  { %5796 = vmatpush3.bf16.msra.mxu1 %v6138_v41  ;;  %v4937_v41 = vld [vmem:[%s7904_s11 + $0x2] ss:$0 sm:$0xff] }
 0x132   :  { %5797 = vmatprep.subr.bf16.mxu1 %v6415_v0 }
 0x135   :  { %5798 = vmatpush3.bf16.msra.mxu1 %v6139_v42 }
 0x136   :  { %5799 = vmatprep.subr.bf16.mxu1 %v6415_v0 }
 0x139   :  { %5800 = vmatpush3.bf16.msra.mxu1 %v6140_v43 }
 0x13a   :  { %5817 = vmatprep.subr.bf16.mxu1 %v6415_v0 }
 0x13c   :  { %5802 = vmatmul.mubr.msk.bf16.vlgmr.msra.gmra.mrb[24].mxu1 %vm199_vm2, %v6616_v24 }
 0x13d   :  { %5818 = vmatpush3.bf16.msra.mxu1 %v6141_v44  ;;  %5825 = vmatprep.mubr.msk.bf16.mxu1 %vm6416_vm0, %v6415_v0 }
 0x13e   :  { %5819 = vmatprep.subr.bf16.mxu1 %v6415_v0 }
 0x141   :  { %5820 = vmatpush3.bf16.msra.mxu1 %v6142_v45 }
 0x142   :  { %5821 = vmatprep.subr.bf16.mxu1 %v6415_v0 }
 0x145   :  { %5822 = vmatpush3.bf16.msra.mxu1 %v6143_v46 }
 0x146   :  { %5823 = vmatprep.subr.bf16.mxu1 %v6415_v0 }
 0x149   :  { %5824 = vmatpush3.bf16.msra.mxu1 %v6144_v47 }
 0x14a   :  { %5841 = vmatprep.subr.bf16.mxu1 %v6415_v0 }
 0x14c   :  { %5826 = vmatmul.mubr.msk.bf16.vlgmr.msra.gmra.mrb[28].mxu1 %vm199_vm2, %v6616_v24 }
 0x14d   :  { %5842 = vmatpush3.bf16.msra.mxu1 %v6145_v48  ;;  %5849 = vmatprep.mubr.msk.bf16.mxu1 %vm6416_vm0, %v6415_v0 }
 0x14e   :  { %5843 = vmatprep.subr.bf16.mxu1 %v6415_v0 }
 0x151   :  { %5844 = vmatpush3.bf16.msra.mxu1 %v6146_v49  ;;  %v4954_v49 = vld [vmem:[%s7949_s1 + $0x3] ss:$0 sm:$0xff] }
 0x152   :  { %5845 = vmatprep.subr.bf16.mxu1 %v6415_v0 }
 0x155   :  { %5846 = vmatpush3.bf16.msra.mxu1 %v6147_v50 }
 0x156   :  { %5847 = vmatprep.subr.bf16.mxu1 %v6415_v0 }
 0x159   :  { %5848 = vmatpush3.bf16.msra.mxu1 %v6148_v51 }
 0x15a   :  { %5865 = vmatprep.subr.bf16.mxu1 %v6415_v0 }
 0x15c   :  { %5850 = vmatmul.mubr.msk.bf16.vlgmr.msra.gmra.mrb[32].mxu1 %vm199_vm2, %v6616_v24 }
 0x15d   :  { %5873 = vmatprep.mubr.msk.bf16.mxu1 %vm6416_vm0, %v6415_v0 }
 0x1bf   :  { %v237_v53 = vpop.f32.mrb[4].mxu1  ;;  %v317_v55 = vpop.f32.mrb[0].mxu0 }
 0x1c0   :  { %v5683_v56 = vpop.f32.mrb[5].mxu1  ;;  %v5695_v57 = vpop.f32.mrb[1].mxu0  ;;  %v238_v60 = vadd.f32 %v4831_v52, %v237_v53  ;;  %v318_v61 = vadd.f32 %v4837_v54, %v317_v55 }
 0x1c1   :  { %v240_v58 = vpop.f32.mrb[6].mxu1  ;;  %v320_v59 = vpop.f32.mrb[2].mxu0  ;;  %v4984_v57 = vld [vmem:[%s7904_s11 + $0x3] ss:$0 sm:$0xff] }
 0x1c2   :  { %v241_v62 = vadd.f32 %v4831_v52, %v240_v58  ;;  %v321_v63 = vadd.f32 %v4837_v54, %v320_v59  ;;  %v5684_v1 = vpop.f32.mrb[7].mxu1  ;;  %v5696_v2 = vpop.f32.mrb[3].mxu0 }
 0x1c4   :  { %v404_v3 = vpack.c.bf16 %v241_v62, %v238_v60  ;;  %v405_v4 = vpack.c.bf16 %v321_v63, %v318_v61 }
 0x1c6   :  { %v411_v5 = vsel %vm406_vm3, %v405_v4, 0 }
 0x1c7   :  { %5710 = vmatpush3.bf16.xpose.msra.mxu0 %v411_v5 }
 0x1c8   :  { %5715 = vmatprep.subr.bf16.mxu0 %v6415_v0 }
 0x1ce   :  { %5712 = vmatmul.mubr.msk.bf16.vlgmr.msra.gmra.mrb[4].mxu0 %vm406_vm3, %v404_v3  ;;  %v6835_v3 = vld [vmem:[%s7905_s2] sm:$0xff] }
 0x1cf   :  { %v397_v7 = vpop.f32.mrb[8].mxu1  ;;  %5717 = vmatprep.mubr.msk.bf16.mxu0 %vm6416_vm0, %v6415_v0 }
 0x1d0   :  { %v5707_v8 = vpop.f32.mrb[9].mxu1  ;;  %v398_v10 = vadd.f32 %v4843_v6, %v397_v7  ;;  %v6840_v7 = vld [vmem:[%s7905_s2 + $0x8] sm:$0xff] }
 0x1d1   :  { %v400_v9 = vpop.f32.mrb[10].mxu1 }
 0x1d2   :  { %v401_v11 = vadd.f32 %v4843_v6, %v400_v9  ;;  %v5708_v12 = vpop.f32.mrb[11].mxu1 }
 0x1d4   :  { %v481_v13 = vpack.c.bf16 %v401_v11, %v398_v10 }
 0x1d6   :  { %5716 = vmatpush3.bf16.msra.mxu0 %v481_v13 }
 0x1d7   :  { %5733 = vmatprep.subr.bf16.mxu0 %v6415_v0 }
 0x1df   :  { %v603_v15 = vpop.f32.mrb[12].mxu1 }
 0x1e0   :  { %v5731_v16 = vpop.f32.mrb[13].mxu1  ;;  %v6781_v18 = vadd.f32 %v4860_v14, %v603_v15 }
 0x1e1   :  { %v606_v17 = vpop.f32.mrb[14].mxu1 }
 0x1e2   :  { %v6783_v19 = vadd.f32 %v4860_v14, %v606_v17  ;;  %v5732_v20 = vpop.f32.mrb[15].mxu1 }
 0x1e4   :  { %v774_v23 = vpack.c.bf16 %v6783_v19, %v6781_v18 }
 0x1ef   :  { %v767_v26 = vpop.f32.mrb[16].mxu1 }
 0x1f0   :  { %v5755_v27 = vpop.f32.mrb[17].mxu1  ;;  %v6790_v29 = vadd.f32 %v4890_v25, %v767_v26 }
 0x1f1   :  { %v770_v28 = vpop.f32.mrb[18].mxu1 }
 0x1f2   :  { %v6792_v30 = vadd.f32 %v4890_v25, %v770_v28  ;;  %v5756_v31 = vpop.f32.mrb[19].mxu1 }
 0x1f4   :  { %v850_v32 = vpack.c.bf16 %v6792_v30, %v6790_v29 }
 0x1ff   :  { %v981_v34 = vpop.f32.mrb[20].mxu1 }
 0x200   :  { %v5779_v35 = vpop.f32.mrb[21].mxu1  ;;  %v6799_v37 = vadd.f32 %v4907_v33, %v981_v34 }
 0x201   :  { %v984_v36 = vpop.f32.mrb[22].mxu1 }
 0x202   :  { %v6801_v38 = vadd.f32 %v4907_v33, %v984_v36  ;;  %v5780_v39 = vpop.f32.mrb[23].mxu1 }
 0x204   :  { %v1152_v40 = vpack.c.bf16 %v6801_v38, %v6799_v37 }
 0x20f   :  { %v1145_v42 = vpop.f32.mrb[24].mxu1 }
 0x210   :  { %v5803_v43 = vpop.f32.mrb[25].mxu1  ;;  %v6808_v45 = vadd.f32 %v4937_v41, %v1145_v42  ;;  %v6149_v42 = vld [vmem:[%s7944_s6 + $0x20] sm:$0xff]  }
 0x211   :  { %v1148_v44 = vpop.f32.mrb[26].mxu1 }
 0x212   :  { %v6810_v46 = vadd.f32 %v4937_v41, %v1148_v44  ;;  %v5804_v47 = vpop.f32.mrb[27].mxu1  ;;  %v6150_v44 = vld [vmem:[%s7944_s6 + $0x28] sm:$0xff]  }
 0x213   :  { %v6151_v47 = vld [vmem:[%s7944_s6 + $0x30] sm:$0xff]  }
 0x214   :  { %v1228_v48 = vpack.c.bf16 %v6810_v46, %v6808_v45 }
 0x21f   :  { %v1359_v50 = vpop.f32.mrb[28].mxu1 }
 0x220   :  { %v5827_v51 = vpop.f32.mrb[29].mxu1  ;;  %v6817_v53 = vadd.f32 %v4954_v49, %v1359_v50 }
 0x221   :  { %v1362_v52 = vpop.f32.mrb[30].mxu1 }
 0x222   :  { %v6819_v54 = vadd.f32 %v4954_v49, %v1362_v52  ;;  %v5828_v55 = vpop.f32.mrb[31].mxu1  ;;  %v6152_v49 = vld [vmem:[%s7944_s6 + $0x38] sm:$0xff]  }
 0x224   :  { %v1530_v56 = vpack.c.bf16 %v6819_v54, %v6817_v53 }
 0x22f   :  { %v1523_v58 = vpop.f32.mrb[32].mxu1 }
 0x230   :  { %v5851_v59 = vpop.f32.mrb[33].mxu1  ;;  %v6826_v61 = vadd.f32 %v4984_v57, %v1523_v58 }
 0x231   :  { %v1526_v60 = vpop.f32.mrb[34].mxu1 }
 0x232   :  { %v6828_v62 = vadd.f32 %v4984_v57, %v1526_v60  ;;  %v5852_v63 = vpop.f32.mrb[35].mxu1  ;;  %v4875_v57 = vld [vmem:[%s7950_s4 + $0x1] ss:$0 sm:$0xff] }
 0x234   :  { %v1606_v1 = vpack.c.bf16 %v6828_v62, %v6826_v61 }
 0x2a1   :  { %v447_v2 = vpop.f32.mrb[4].mxu0 }
 0x2a2   :  { %v454_v4 = vmul.f32 0.25, %v447_v2  ;;  %v5713_v5 = vpop.f32.mrb[5].mxu0 }
 0x2a3   :  { %v450_v6 = vpop.f32.mrb[6].mxu0 }
 0x2a4   :  { %v455_v8 = vmul.f32 0.25, %v450_v6  ;;  %v5714_v9 = vpop.f32.mrb[7].mxu0  ;;  %v456_v10 = vadd.f32 %v454_v4, %v6835_v3 }
 0x2a6   :  { %v458_v11 = vsel %vm406_vm3, %v456_v10, -inf  ;;  %v457_v12 = vadd.f32 %v455_v8, %v6840_v7 }
 0x2a7   :  { %459 = vmax.xlane.f32.xlu0 %v458_v11 }
 0x2a8   :  { %v461_v13 = vsel %vm406_vm3, %v457_v12, -inf }
 0x2ab   :  { %462 = vmax.xlane.f32.xlu0 %v461_v13 }
 0x334   :  { %v460_v14 = vpop.xlane.xlu0 %459 }
 0x335   :  { %v464_v15 = vsub.f32 %v456_v10, %v460_v14 }
 0x337   :  { %v466_v16 = vmul.f32 1.442695, %v464_v15 }
 0x338   :  { %v463_v17 = vpop.xlane.xlu0 %462 }
 0x339   :  { %6333 = vpow2.f32 %v466_v16  ;;  %v465_v20 = vsub.f32 %v457_v12, %v463_v17 }
 0x33b   :  { %v468_v25 = vmul.f32 1.442695, %v465_v20 }
 0x33d   :  { %6335 = vpow2.f32 %v468_v25 }
 0x343   :  { %v6334_v26 = vpop.eup %6333 }
 0x344   :  { %v470_v27 = vsel %vm406_vm3, %v6334_v26, 0.0 }
 0x345   :  { %471 = vadd.xlane.f32.xlu1 %v470_v27 }
 0x347   :  { %v6336_v28 = vpop.eup %6335 }
 0x348   :  { %v473_v31 = vsel %vm406_vm3, %v6336_v28, 0.0 }
 0x349   :  { %474 = vadd.xlane.f32.xlu1 %v473_v31 }
 0x3d2   :  { %v472_v33 = vpop.xlane.xlu1 %471 }
 0x3d3   :  { %6337 = vrcp.f32 %v472_v33 }
 0x3d6   :  { %v475_v34 = vpop.xlane.xlu1 %474 }
 0x3d7   :  { %6339 = vrcp.f32 %v475_v34 }
 0x3dd   :  { %v6338_v35 = vpop.eup %6337 }
 0x3de   :  { %v478_v39 = vmul.f32 %v6338_v35, %v6334_v26 }
 0x3e1   :  { %v6340_v36 = vpop.eup %6339 }
 0x3e2   :  { %v479_v41 = vmul.f32 %v6340_v36, %v6336_v28 }
 0x3e4   :  { %v480_v43 = vpack.c.bf16 %v479_v41, %v478_v39  ;;  %v6153_v39 = vld [vmem:[%s7944_s6 + $0x40] sm:$0xff]  }
 0x3e6   :  { %5718 = vmatmul.mubr.msk.bf16.vlgmr.msra.gmra.mrb[8].mxu0 %vm406_vm3, %v480_v43  ;;  %v6155_v43 = vld [vmem:[%s7944_s6 + $0x50] sm:$0xff]  }
 0x3e7   :  { %5734 = vmatpush3.bf16.msra.mxu0 %v6149_v42  ;;  %5741 = vmatprep.mubr.msk.bf16.mxu0 %vm6416_vm0, %v6415_v0  ;;  %v6154_v42 = vld [vmem:[%s7944_s6 + $0x48] sm:$0xff]  }
 0x3e8   :  { %5735 = vmatprep.subr.bf16.mxu0 %v6415_v0 }
 0x3eb   :  { %5736 = vmatpush3.bf16.msra.mxu0 %v6150_v44  ;;  %v6156_v44 = vld [vmem:[%s7944_s6 + $0x58] sm:$0xff]  }
 0x3ec   :  { %5737 = vmatprep.subr.bf16.mxu0 %v6415_v0 }
 0x3ef   :  { %5738 = vmatpush3.bf16.msra.mxu0 %v6151_v47 }
 0x3f0   :  { %5739 = vmatprep.subr.bf16.mxu0 %v6415_v0 }
 0x3f3   :  { %5740 = vmatpush3.bf16.msra.mxu0 %v6152_v49 }
 0x3f4   :  { %5757 = vmatprep.subr.bf16.mxu0 %v6415_v0 }
 0x3f6   :  { %5742 = vmatmul.mubr.msk.bf16.vlgmr.msra.gmra.mrb[12].mxu0 %vm199_vm2, %v6616_v24 }
 0x3f7   :  { %5759 = vmatprep.mubr.msk.bf16.mxu0 %vm6416_vm0, %v6415_v0 }
 0x4b9   :  { %v519_v50 = vpop.f32.mrb[8].mxu0 }
 0x4ba   :  { %526 = vst.msk [vmem:[#allocation2] sm:$0xff] %vm406_vm3, %v519_v50  ;;  %v5719_v51 = vpop.f32.mrb[9].mxu0 }
 0x4bb   :  { %v522_v52 = vpop.f32.mrb[10].mxu0 }
 0x4bc   :  { %527 = vst.msk [vmem:[#allocation2 + $0x8] sm:$0xff] %vm406_vm3, %v522_v52  ;;  %v5720_v55 = vpop.f32.mrb[11].mxu0  ;;  %v4922_v52 = vld [vmem:[%s7950_s4 + $0x2] ss:$0 sm:$0xff] }
 0x4c9   :  { %v685_v58 = vpop.f32.mrb[12].mxu0 }
 0x4ca   :  { %v5743_v59 = vpop.f32.mrb[13].mxu0  ;;  %v686_v63 = vadd.f32 %v4875_v57, %v685_v58 }
 0x4cb   :  { %v688_v60 = vpop.f32.mrb[14].mxu0 }
 0x4cc   :  { %v689_v2 = vadd.f32 %v4875_v57, %v688_v60  ;;  %v5744_v4 = vpop.f32.mrb[15].mxu0 }
 0x4ce   :  { %v775_v5 = vpack.c.bf16 %v689_v2, %v686_v63 }
 0x4d0   :  { %v780_v6 = vsel %vm406_vm3, %v775_v5, 0 }
 0x4d1   :  { %5758 = vmatpush3.bf16.xpose.msra.mxu0 %v780_v6 }
 0x4d2   :  { %5763 = vmatprep.subr.bf16.mxu0 %v6415_v0 }
 0x4d8   :  { %5760 = vmatmul.mubr.msk.bf16.vlgmr.msra.gmra.mrb[16].mxu0 %vm406_vm3, %v774_v23 }
 0x4d9   :  { %5764 = vmatpush3.bf16.msra.mxu0 %v850_v32  ;;  %5765 = vmatprep.mubr.msk.bf16.mxu0 %vm6416_vm0, %v6415_v0 }
 0x4da   :  { %5781 = vmatprep.subr.bf16.mxu0 %v6415_v0 }
 0x5ab   :  { %v816_v8 = vpop.f32.mrb[16].mxu0 }
 0x5ac   :  { %v823_v9 = vmul.f32 0.25, %v816_v8  ;;  %v5761_v10 = vpop.f32.mrb[17].mxu0 }
 0x5ad   :  { %v819_v11 = vpop.f32.mrb[18].mxu0 }
 0x5ae   :  { %v824_v12 = vmul.f32 0.25, %v819_v11  ;;  %v5762_v13 = vpop.f32.mrb[19].mxu0  ;;  %v825_v14 = vadd.f32 %v823_v9, %v6835_v3 }
 0x5b0   :  { %v827_v18 = vsel %vm406_vm3, %v825_v14, -inf  ;;  %v826_v19 = vadd.f32 %v824_v12, %v6840_v7 }
 0x5b1   :  { %828 = vmax.xlane.f32.xlu0 %v827_v18 }
 0x5b2   :  { %v830_v23 = vsel %vm406_vm3, %v826_v19, -inf }
 0x5b3   :  { %831 = vmax.xlane.f32.xlu1 %v830_v23 }
 0x63e   :  { %v829_v29 = vpop.xlane.xlu0 %828 }
 0x63f   :  { %v833_v30 = vsub.f32 %v825_v14, %v829_v29 }
 0x640   :  { %v832_v32 = vpop.xlane.xlu1 %831 }
 0x641   :  { %v835_v15 = vmul.f32 1.442695, %v833_v30  ;;  %v834_v16 = vsub.f32 %v826_v19, %v832_v32 }
 0x643   :  { %6341 = vpow2.f32 %v835_v15  ;;  %v837_v17 = vmul.f32 1.442695, %v834_v16 }
 0x645   :  { %6343 = vpow2.f32 %v837_v17 }
 0x64d   :  { %v6342_v20 = vpop.eup %6341 }
 0x64e   :  { %v839_v25 = vsel %vm406_vm3, %v6342_v20, 0.0 }
 0x64f   :  { %v6344_v26 = vpop.eup %6343  ;;  %840 = vadd.xlane.f32.xlu0 %v839_v25 }
 0x650   :  { %v842_v27 = vsel %vm406_vm3, %v6344_v26, 0.0 }
 0x651   :  { %843 = vadd.xlane.f32.xlu1 %v842_v27 }
 0x6dc   :  { %v841_v28 = vpop.xlane.xlu0 %840 }
 0x6dd   :  { %6345 = vrcp.f32 %v841_v28  ;;  %v6158_v28 = vld [vmem:[%s7944_s6 + $0x68] sm:$0xff]  }
 0x6de   :  { %v844_v31 = vpop.xlane.xlu1 %843 }
 0x6df   :  { %6347 = vrcp.f32 %v844_v31  ;;  %v6159_v31 = vld [vmem:[%s7944_s6 + $0x70] sm:$0xff]  }
 0x6e7   :  { %v6346_v33 = vpop.eup %6345 }
 0x6e8   :  { %v847_v35 = vmul.f32 %v6346_v33, %v6342_v20  ;;  %v6160_v33 = vld [vmem:[%s7944_s6 + $0x78] sm:$0xff]  }
 0x6e9   :  { %v6348_v34 = vpop.eup %6347 }
 0x6ea   :  { %v848_v36 = vmul.f32 %v6348_v34, %v6344_v26  ;;  %v6157_v26 = vld [vmem:[%s7944_s6 + $0x60] sm:$0xff]  }
 0x6ec   :  { %v849_v41 = vpack.c.bf16 %v848_v36, %v847_v35 }
 0x6ee   :  { %5766 = vmatmul.mubr.msk.bf16.vlgmr.msra.gmra.mrb[20].mxu0 %vm406_vm3, %v849_v41  ;;  %v4969_v41 = vld [vmem:[%s7950_s4 + $0x3] ss:$0 sm:$0xff] }
 0x6ef   :  { %5782 = vmatpush3.bf16.msra.mxu0 %v6153_v39  ;;  %5789 = vmatprep.mubr.msk.bf16.mxu0 %vm6416_vm0, %v6415_v0 }
 0x6f0   :  { %5783 = vmatprep.subr.bf16.mxu0 %v6415_v0 }
 0x6f3   :  { %5784 = vmatpush3.bf16.msra.mxu0 %v6154_v42 }
 0x6f4   :  { %5785 = vmatprep.subr.bf16.mxu0 %v6415_v0 }
 0x6f7   :  { %5786 = vmatpush3.bf16.msra.mxu0 %v6155_v43 }
 0x6f8   :  { %5787 = vmatprep.subr.bf16.mxu0 %v6415_v0 }
 0x6fb   :  { %5788 = vmatpush3.bf16.msra.mxu0 %v6156_v44 }
 0x6fc   :  { %5805 = vmatprep.subr.bf16.mxu0 %v6415_v0 }
 0x6fe   :  { %5790 = vmatmul.mubr.msk.bf16.vlgmr.msra.gmra.mrb[24].mxu0 %vm199_vm2, %v6616_v24 }
 0x6ff   :  { %5807 = vmatprep.mubr.msk.bf16.mxu0 %vm6416_vm0, %v6415_v0 }
 0x7c1   :  { %v6917_v47 = vpop.f32.mrb[20].mxu0 }
 0x7c2   :  { %v5767_v49 = vpop.f32.mrb[21].mxu0 }
 0x7c3   :  { %v6919_v50 = vpop.f32.mrb[22].mxu0 }
 0x7c4   :  { %v5768_v51 = vpop.f32.mrb[23].mxu0 }
 0x7d1   :  { %v1063_v55 = vpop.f32.mrb[24].mxu0 }
 0x7d2   :  { %v5791_v57 = vpop.f32.mrb[25].mxu0  ;;  %v1064_v59 = vadd.f32 %v4922_v52, %v1063_v55 }
 0x7d3   :  { %v1066_v58 = vpop.f32.mrb[26].mxu0 }
 0x7d4   :  { %v1067_v60 = vadd.f32 %v4922_v52, %v1066_v58  ;;  %v5792_v63 = vpop.f32.mrb[27].mxu0 }
 0x7d6   :  { %v1153_v2 = vpack.c.bf16 %v1067_v60, %v1064_v59 }
 0x7d8   :  { %v1158_v4 = vsel %vm406_vm3, %v1153_v2, 0 }
 0x7d9   :  { %5806 = vmatpush3.bf16.xpose.msra.mxu0 %v1158_v4 }
 0x7da   :  { %5811 = vmatprep.subr.bf16.mxu0 %v6415_v0 }
 0x7e0   :  { %5808 = vmatmul.mubr.msk.bf16.vlgmr.msra.gmra.mrb[28].mxu0 %vm406_vm3, %v1152_v40 }
 0x7e1   :  { %5812 = vmatpush3.bf16.msra.mxu0 %v1228_v48  ;;  %5813 = vmatprep.mubr.msk.bf16.mxu0 %vm6416_vm0, %v6415_v0 }
 0x7e2   :  { %5829 = vmatprep.subr.bf16.mxu0 %v6415_v0 }
 0x8b3   :  { %v1194_v5 = vpop.f32.mrb[28].mxu0 }
 0x8b4   :  { %v1201_v6 = vmul.f32 0.25, %v1194_v5  ;;  %v5809_v8 = vpop.f32.mrb[29].mxu0 }
 0x8b5   :  { %v1197_v9 = vpop.f32.mrb[30].mxu0 }
 0x8b6   :  { %v1202_v10 = vmul.f32 0.25, %v1197_v9  ;;  %v5810_v11 = vpop.f32.mrb[31].mxu0  ;;  %v1203_v12 = vadd.f32 %v1201_v6, %v6835_v3 }
 0x8b8   :  { %v1205_v37 = vsel %vm406_vm3, %v1203_v12, -inf  ;;  %v1204_v38 = vadd.f32 %v1202_v10, %v6840_v7 }
 0x8b9   :  { %1206 = vmax.xlane.f32.xlu0 %v1205_v37 }
 0x8ba   :  { %v1208_v40 = vsel %vm406_vm3, %v1204_v38, -inf }
 0x8bb   :  { %1209 = vmax.xlane.f32.xlu1 %v1208_v40 }
 0x946   :  { %v1207_v45 = vpop.xlane.xlu0 %1206 }
 0x947   :  { %v1211_v46 = vsub.f32 %v1203_v12, %v1207_v45 }
 0x948   :  { %v1210_v48 = vpop.xlane.xlu1 %1209 }
 0x949   :  { %v1213_v13 = vmul.f32 1.442695, %v1211_v46  ;;  %v1212_v14 = vsub.f32 %v1204_v38, %v1210_v48 }
 0x94b   :  { %6349 = vpow2.f32 %v1213_v13  ;;  %v1215_v18 = vmul.f32 1.442695, %v1212_v14  ;;  %v6161_v14 = vld [vmem:[%s7906_s12] sm:$0xff]  }
 0x94c   :  { %5866 = vmatpush3.bf16.msra.mxu1 %v6161_v14 }
 0x94d   :  { %6351 = vpow2.f32 %v1215_v18  ;;  %5867 = vmatprep.subr.bf16.mxu1 %v6415_v0  ;;  %v6162_v18 = vld [vmem:[%s7906_s12 + $0x8] sm:$0xff]  }
 0x950   :  { %5868 = vmatpush3.bf16.msra.mxu1 %v6162_v18 }
 0x951   :  { %5869 = vmatprep.subr.bf16.mxu1 %v6415_v0 }
 0x955   :  { %v6350_v19 = vpop.eup %6349 }
 0x956   :  { %v1217_v23 = vsel %vm406_vm3, %v6350_v19, 0.0 }
 0x957   :  { %v6352_v29 = vpop.eup %6351  ;;  %1218 = vadd.xlane.f32.xlu0 %v1217_v23  ;;  %v6164_v23 = vld [vmem:[%s7906_s12 + $0x18] sm:$0xff]  }
 0x958   :  { %v1220_v30 = vsel %vm406_vm3, %v6352_v29, 0.0 }
 0x959   :  { %1221 = vadd.xlane.f32.xlu1 %v1220_v30 }
 0x9e4   :  { %v1219_v32 = vpop.xlane.xlu0 %1218 }
 0x9e5   :  { %6353 = vrcp.f32 %v1219_v32 }
 0x9e6   :  { %v1222_v15 = vpop.xlane.xlu1 %1221 }
 0x9e7   :  { %6355 = vrcp.f32 %v1222_v15 }
 0x9ef   :  { %v6354_v16 = vpop.eup %6353 }
 0x9f0   :  { %v1225_v20 = vmul.f32 %v6354_v16, %v6350_v19  ;;  %v6163_v19 = vld [vmem:[%s7906_s12 + $0x10] sm:$0xff]  }
 0x9f1   :  { %v6356_v17 = vpop.eup %6355  ;;  %5870 = vmatpush3.bf16.msra.mxu1 %v6163_v19  ;;  %v4999_v19 = vld [vmem:[%s7911_s15] ss:$0 sm:$0xff] }
 0x9f2   :  { %v1226_v25 = vmul.f32 %v6356_v17, %v6352_v29  ;;  %5871 = vmatprep.subr.bf16.mxu1 %v6415_v0 }
 0x9f4   :  { %v1227_v27 = vpack.c.bf16 %v1226_v25, %v1225_v20 }
 0x9f5   :  { %5872 = vmatpush3.bf16.msra.mxu1 %v6164_v23 }
 0x9f6   :  { %5814 = vmatmul.mubr.msk.bf16.vlgmr.msra.gmra.mrb[32].mxu0 %vm406_vm3, %v1227_v27  ;;  %v4992_v27 = vld [vmem:[%s7907_s13] ss:$0 sm:$0xff] }
 0x9f7   :  { %5830 = vmatpush3.bf16.msra.mxu0 %v6157_v26  ;;  %5837 = vmatprep.mubr.msk.bf16.mxu0 %vm6416_vm0, %v6415_v0 }
 0x9f8   :  { %5831 = vmatprep.subr.bf16.mxu0 %v6415_v0 }
 0x9fb   :  { %5832 = vmatpush3.bf16.msra.mxu0 %v6158_v28 }
 0x9fc   :  { %5833 = vmatprep.subr.bf16.mxu0 %v6415_v0 }
 0x9ff   :  { %5834 = vmatpush3.bf16.msra.mxu0 %v6159_v31 }
 0xa00   :  { %5835 = vmatprep.subr.bf16.mxu0 %v6415_v0 }
 0xa03   :  { %5836 = vmatpush3.bf16.msra.mxu0 %v6160_v33 }
 0xa04   :  { %5853 = vmatprep.subr.bf16.mxu0 %v6415_v0 }
 0xa06   :  { %5838 = vmatmul.mubr.msk.bf16.vlgmr.msra.gmra.mrb[36].mxu0 %vm199_vm2, %v6616_v24 }
 0xa07   :  { %5855 = vmatprep.mubr.msk.bf16.mxu0 %vm6416_vm0, %v6415_v0 }
 0xac9   :  { %v1266_v34 = vpop.f32.mrb[32].mxu0 }
 0xaca   :  { %v5815_v35 = vpop.f32.mrb[33].mxu0 }
 0xacb   :  { %v1269_v36 = vpop.f32.mrb[34].mxu0 }
 0xacc   :  { %v5816_v39 = vpop.f32.mrb[35].mxu0 }
 0xad9   :  { %v1441_v42 = vpop.f32.mrb[36].mxu0 }
 0xada   :  { %v5839_v43 = vpop.f32.mrb[37].mxu0  ;;  %v1442_v49 = vadd.f32 %v4969_v41, %v1441_v42 }
 0xadb   :  { %v1444_v44 = vpop.f32.mrb[38].mxu0 }
 0xadc   :  { %v1445_v51 = vadd.f32 %v4969_v41, %v1444_v44  ;;  %v5840_v52 = vpop.f32.mrb[39].mxu0 }
 0xade   :  { %v1531_v55 = vpack.c.bf16 %v1445_v51, %v1442_v49 }
 0xae0   :  { %v1536_v24 = vsel %vm406_vm3, %v1531_v55, 0 }
 0xae1   :  { %5854 = vmatpush3.bf16.xpose.msra.mxu0 %v1536_v24 }
 0xae2   :  { %5859 = vmatprep.subr.bf16.mxu0 %v6415_v0 }
 0xae8   :  { %5856 = vmatmul.mubr.msk.bf16.vlgmr.msra.gmra.mrb[40].mxu0 %vm406_vm3, %v1530_v56 }
 0xae9   :  { %5860 = vmatpush3.bf16.msra.mxu0 %v1606_v1  ;;  %5861 = vmatprep.mubr.msk.bf16.mxu0 %vm6416_vm0, %v6415_v0 }
 0xbbb   :  { %v1572_v57 = vpop.f32.mrb[40].mxu0 }
 0xbbc   :  { %v1579_v58 = vmul.f32 0.25, %v1572_v57  ;;  %v5857_v59 = vpop.f32.mrb[41].mxu0 }
 0xbbd   :  { %v1575_v60 = vpop.f32.mrb[42].mxu0  ;;  %v6167_v59 = vld [vmem:[%s7908_s16 + $0x4] ss:$16 sps:$4 sm:$0xff]  }
 0xbbe   :  { %v1580_v63 = vmul.f32 0.25, %v1575_v60  ;;  %v5858_v2 = vpop.f32.mrb[43].mxu0  ;;  %v1581_v4 = vadd.f32 %v1579_v58, %v6835_v3  ;;  %v6165_v60 = vld [vmem:[%s7908_s16] ss:$16 sps:$4 sm:$0xff]   ;;  %1917 = vmatprep.subr.bf16.mxu0 %v6167_v59  ;;  %v6218_v59 = vld [vmem:[%s7909_s18 + $0xf8] sm:$0xff]  }
 0xbbf   :  { %v6170_v2 = vld [vmem:[%s7908_s16 + $0xc] ss:$16 sps:$4 sm:$0xff]  }
 0xbc0   :  { %v1583_v5 = vsel %vm406_vm3, %v1581_v4, -inf  ;;  %v1582_v53 = vadd.f32 %v1580_v63, %v6840_v7  ;;  %v6168_v63 = vld [vmem:[%s7908_s16 + $0x8] ss:$16 sps:$4 sm:$0xff]   ;;  %1960 = vmatprep.subr.bf16.mxu1 %v6170_v2  ;;  %v1814_v2 = vlaneseq }
 0xbc1   :  { %1584 = vmax.xlane.f32.xlu0 %v1583_v5  ;;  %v6176_v5 = vld [vmem:[%s7908_s16 + $0x2c] ss:$16 sps:$4 sm:$0xff]  }
 0xbc2   :  { %v1586_v54 = vsel %vm406_vm3, %v1582_v53, -inf }
 0xbc3   :  { %1587 = vmax.xlane.f32.xlu1 %v1586_v54  ;;  %v6174_v54 = vld [vmem:[%s7908_s16 + $0x28] ss:$16 sps:$4 sm:$0xff]  }
 0xc4e   :  { %v1585_v56 = vpop.xlane.xlu0 %1584 }
 0xc4f   :  { %v1589_v61 = vsub.f32 %v1581_v4, %v1585_v56  ;;  %v6173_v4 = vld [vmem:[%s7908_s16 + $0x24] ss:$16 sps:$4 sm:$0xff]  }
 0xc50   :  { %v1588_v62 = vpop.xlane.xlu1 %1587  ;;  %v6179_v56 = vld [vmem:[%s7908_s16 + $0x44] ss:$16 sps:$4 sm:$0xff]  }
 0xc51   :  { %v1591_v1 = vmul.f32 1.442695, %v1589_v61  ;;  %v1590_v6 = vsub.f32 %v1582_v53, %v1588_v62  ;;  %v6171_v53 = vld [vmem:[%s7908_s16 + $0x20] ss:$16 sps:$4 sm:$0xff]   ;;  %v6182_v61 = vld [vmem:[%s7908_s16 + $0x4c] ss:$16 sps:$4 sm:$0xff]  }
 0xc52   :  { %v6177_v62 = vld [vmem:[%s7908_s16 + $0x40] ss:$16 sps:$4 sm:$0xff]  }
 0xc53   :  { %6357 = vpow2.f32 %v1591_v1  ;;  %v1593_v8 = vmul.f32 1.442695, %v1590_v6  ;;  %v6180_v1 = vld [vmem:[%s7908_s16 + $0x48] ss:$16 sps:$4 sm:$0xff]   ;;  %v6183_v6 = vld [vmem:[%s7908_s16 + $0x60] ss:$16 sps:$4 sm:$0xff]  }
 0xc55   :  { %6359 = vpow2.f32 %v1593_v8  ;;  %v6185_v8 = vld [vmem:[%s7908_s16 + $0x64] ss:$16 sps:$4 sm:$0xff]  }
 0xc5d   :  { %v6358_v9 = vpop.eup %6357 }
 0xc5e   :  { %v1595_v10 = vsel %vm406_vm3, %v6358_v9, 0.0 }
 0xc5f   :  { %v6360_v3 = vpop.eup %6359  ;;  %1596 = vadd.xlane.f32.xlu0 %v1595_v10  ;;  %v6188_v10 = vld [vmem:[%s7908_s16 + $0x6c] ss:$16 sps:$4 sm:$0xff]  }
 0xc60   :  { %v1598_v11 = vsel %vm406_vm3, %v6360_v3, 0.0 }
 0xc61   :  { %1599 = vadd.xlane.f32.xlu1 %v1598_v11  ;;  %v6189_v11 = vld [vmem:[%s7909_s18 + $0x40] sm:$0xff]  }
 0xc72   :  { %899 = vrot.lane.b32.xlu1 %v6919_v50, %s7931_s8 }
 0xc75   :  { %897 = vrot.lane.b32.xlu0 %v6917_v47, %s7931_s8 }
 0xc76   :  { %1275 = vrot.lane.b32.xlu1 %v1266_v34, %s7929_s29 }
 0xc7a   :  { %1277 = vrot.lane.b32.xlu1 %v1269_v36, %s7929_s29 }
 0xcec   :  { %v1597_v7 = vpop.xlane.xlu0 %1596 }
 0xced   :  { %6361 = vrcp.f32 %v1597_v7  ;;  %v6190_v7 = vld [vmem:[%s7909_s18 + $0xc0] sm:$0xff]  }
 0xcee   :  { %v1600_v12 = vpop.xlane.xlu1 %1599 }
 0xcef   :  { %6363 = vrcp.f32 %v1600_v12 }
 0xcf0   :  { %v898_v37 = vpop.permute.xlu0 %897 }
 0xcf1   :  { %904 = vst.msk [vmem:[#allocation2] sm:$0xff] %vm903_vm4, %v898_v37 }
 0xcf2   :  { %v900_v38 = vpop.permute.xlu1 %899 }
 0xcf3   :  { %905 = vst.msk [vmem:[#allocation2 + $0x8] sm:$0xff] %vm903_vm4, %v900_v38 }
 0xcf6   :  { %v1276_v50 = vpop.permute.xlu1 %1275 }
 0xcf7   :  { %v6362_v40 = vpop.eup %6361  ;;  %1282 = vst.msk [vmem:[#allocation2] sm:$0xff] %vm1281_vm5, %v1276_v50 }
 0xcf8   :  { %v1603_v45 = vmul.f32 %v6362_v40, %v6358_v9  ;;  %v6186_v9 = vld [vmem:[%s7908_s16 + $0x68] ss:$16 sps:$4 sm:$0xff]  }
 0xcf9   :  { %v6364_v47 = vpop.eup %6363 }
 0xcfa   :  { %v1604_v46 = vmul.f32 %v6364_v47, %v6360_v3  ;;  %v1278_v48 = vpop.permute.xlu1 %1277  ;;  %v6420_v3 = vmov 0  }
 0xcfb   :  { %1283 = vst.msk [vmem:[#allocation2 + $0x8] sm:$0xff] %vm1281_vm5, %v1278_v48  ;;  %v4998_v48 = vld [vmem:[%s7910_s14] ss:$0 sm:$0xff] }
 0xcfc   :  { %v1605_v13 = vpack.c.bf16 %v1604_v46, %v1603_v45 }
 0xcfe   :  { %5862 = vmatmul.mubr.msk.bf16.vlgmr.msra.gmra.mrb[44].mxu0 %vm406_vm3, %v1605_v13 }
 0xcff   :  { %1918 = vmatpush1.bf16.msra.mxu0 %v6165_v60  ;;  %1949 = vmatprep.mubr.bf16.mxu0 %v6420_v3  ;;  %v6219_v60 = vld [vmem:[%s7909_s18 + $0x38] sm:$0xff]  }
 0xd00   :  { %1919 = vmatprep.subr.bf16.mxu0 %v6173_v4  ;;  %v7192_v4 = vshrl.u32 %v1814_v2, 7 }
 0xd03   :  { %1920 = vmatpush1.bf16.msra.mxu0 %v6171_v53  ;;  %v1824_v53 = vsub.s32 2, %v7192_v4 }
 0xd04   :  { %1921 = vmatprep.subr.bf16.mxu0 %v6179_v56  ;;  %v1820_v56 = vsub.s32 1, %v7192_v4 }
 0xd07   :  { %1922 = vmatpush1.bf16.msra.mxu0 %v6177_v62 }
 0xd08   :  { %1923 = vmatprep.subr.bf16.mxu0 %v6185_v8 }
 0xd0b   :  { %1924 = vmatpush1.bf16.msra.mxu0 %v6183_v6 }
 0xd0c   :  { %5488 = vmatprep.subr.bf16.mxu0 %v6189_v11 }
 0xdd1   :  { %v1644_v29 = vpop.f32.mrb[44].mxu0 }
 0xdd2   :  { %1653 = vrot.lane.b32.xlu0 %v1644_v29, %s7927_s30  ;;  %v5863_v30 = vpop.f32.mrb[45].mxu0 }
 0xdd3   :  { %v1647_v32 = vpop.f32.mrb[46].mxu0 }
 0xdd4   :  { %1655 = vrot.lane.b32.xlu1 %v1647_v32, %s7927_s30  ;;  %v5864_v15 = vpop.f32.mrb[47].mxu0  ;;  %v6191_v32 = vld [vmem:[%s7909_s18] sm:$0xff]  }
 0xdd5   :  { %v6192_v15 = vld [vmem:[%s7909_s18 + $0x80] sm:$0xff]  }
 0xe44   :  { %v1654_v16 = vpop.permute.xlu0 %1653 }
 0xe45   :  { %1660 = vst.msk [vmem:[#allocation2] sm:$0xff] %vm1659_vm6, %v1654_v16 }
 0xe46   :  { %v1656_v17 = vpop.permute.xlu1 %1655 }
 0xe47   :  { %1661 = vst.msk [vmem:[#allocation2 + $0x8] sm:$0xff] %vm1659_vm6, %v1656_v17  ;;  %v6193_v17 = vld [vmem:[%s7909_s18 + $0x48] sm:$0xff]  }
 0xe4c   :  { %v1662_v20 = vld [vmem:[#allocation2] sm:$0xff] }
 0xe4e   :  { %v1663_v25 = vld [vmem:[#allocation2 + $0x8] sm:$0xff] }
 0xe4f   :  { %v1664_v26 = vpack.c.bf16 %v1663_v25, %v1662_v20  ;;  %v6194_v20 = vld [vmem:[%s7909_s18 + $0xc8] sm:$0xff]  }
 0xe50   :  { %v6195_v25 = vld [vmem:[%s7909_s18 + $0x8] sm:$0xff]  }
 0xe51   :  { %5874 = vmatmul.mubr.msk.bf16.vlgmr.msra.gmra.mrb[36].mxu1 %vm199_vm2, %v1664_v26  ;;  %v6196_v26 = vld [vmem:[%s7909_s18 + $0x88] sm:$0xff]  }
 0xe52   :  { %1961 = vmatpush1.bf16.msra.mxu1 %v6168_v63  ;;  %1992 = vmatprep.mubr.bf16.mxu1 %v6420_v3  ;;  %v6220_v63 = vld [vmem:[%s7909_s18 + $0xb8] sm:$0xff]  }
 0xe53   :  { %1962 = vmatprep.subr.bf16.mxu1 %v6176_v5  ;;  %v1816_v5 = vsub.s32 0, %v7192_v4 }
 0xe56   :  { %1963 = vmatpush1.bf16.msra.mxu1 %v6174_v54  ;;  %v1812_v54 = vld [vmem:[%s7912_s17] sm:$0xf] }
 0xe57   :  { %1964 = vmatprep.subr.bf16.mxu1 %v6182_v61  ;;  %v1828_v61 = vsub.s32 3, %v7192_v4  ;;  %v1817_v62 = vrot.slane %v1812_v54, %v1816_v5  ;;  %v1821_v6 = vrot.slane %v1812_v54, %v1820_v56 }
 0xe59   :  { %v1829_v8 = vrot.slane %v1812_v54, %v1828_v61 }
 0xe5a   :  { %1965 = vmatpush1.bf16.msra.mxu1 %v6180_v1  ;;  %v1825_v1 = vrot.slane %v1812_v54, %v1824_v53 }
 0xe5b   :  { %1966 = vmatprep.subr.bf16.mxu1 %v6188_v10 }
 0xe5e   :  { %1967 = vmatpush1.bf16.msra.mxu1 %v6186_v9 }
 0xe5f   :  { %5510 = vmatprep.subr.bf16.mxu1 %v6190_v7 }
 0xf24   :  { %v1741_v28 = vpop.f32.mrb[36].mxu1 }
 0xf25   :  { %v1742_v31 = vadd.f32 %v4992_v27, %v1741_v28  ;;  %v5875_v33 = vpop.f32.mrb[37].mxu1  ;;  %v6198_v28 = vld [vmem:[%s7909_s18 + $0xd0] sm:$0xff]  }
 0xf26   :  { %v1744_v34 = vpop.f32.mrb[38].mxu1  ;;  %v6200_v33 = vld [vmem:[%s7909_s18 + $0x90] sm:$0xff]  }
 0xf27   :  { %v1745_v35 = vadd.f32 %v4992_v27, %v1744_v34  ;;  %v5876_v36 = vpop.f32.mrb[39].mxu1  ;;  %v1748_v39 = vadd.f32 %v1742_v31, %v6607_v21  ;;  %v6197_v27 = vld [vmem:[%s7909_s18 + $0x50] sm:$0xff]   ;;  %v6201_v34 = vld [vmem:[%s7909_s18 + $0x58] sm:$0xff]  }
 0xf28   :  { %v6199_v31 = vld [vmem:[%s7909_s18 + $0x10] sm:$0xff]   ;;  %v6203_v36 = vld [vmem:[%s7909_s18 + $0x18] sm:$0xff]  }
 0xf29   :  { %v1752_v41 = vsel %vm199_vm2, %v1748_v39, 0.0  ;;  %v1749_v42 = vadd.f32 %v1745_v35, %v6609_v22  ;;  %v6202_v35 = vld [vmem:[%s7909_s18 + $0xd8] sm:$0xff]  }
 0xf2a   :  { %1753 = vadd.xlane.f32.xlu0 %v1752_v41  ;;  %v6205_v41 = vld [vmem:[%s7909_s18 + $0x60] sm:$0xff]  }
 0xf2b   :  { %v1755_v43 = vsel %vm199_vm2, %v1749_v42, 0.0 }
 0xf2c   :  { %1756 = vadd.xlane.f32.xlu1 %v1755_v43  ;;  %v6207_v43 = vld [vmem:[%s7909_s18 + $0x20] sm:$0xff]  }
 0xfb7   :  { %v1754_v44 = vpop.xlane.xlu0 %1753 }
 0xfb8   :  { %v1759_v49 = vmul.f32 0.015625, %v1754_v44  ;;  %v6208_v44 = vld [vmem:[%s7909_s18 + $0xa0] sm:$0xff]  }
 0xfb9   :  { %v1757_v51 = vpop.xlane.xlu1 %1756 }
 0xfba   :  { %v1761_v52 = vsub.f32 %v1748_v39, %v1759_v49  ;;  %v1760_v55 = vmul.f32 0.015625, %v1757_v51  ;;  %v6204_v39 = vld [vmem:[%s7909_s18 + $0x98] sm:$0xff]   ;;  %v6209_v49 = vld [vmem:[%s7909_s18 + $0x68] sm:$0xff]  }
 0xfbb   :  { %v6210_v51 = vld [vmem:[%s7909_s18 + $0xe8] sm:$0xff]  }
 0xfbc   :  { %v7023_v24 = vsub.f32 %v1749_v42, %v1760_v55  ;;  %v1763_v57 = vmul.f32 %v1761_v52, %v1761_v52  ;;  %v6206_v42 = vld [vmem:[%s7909_s18 + $0xe0] sm:$0xff]   ;;  %v6212_v55 = vld [vmem:[%s7909_s18 + $0xa8] sm:$0xff]  }
 0xfbe   :  { %v1765_v58 = vsel %vm199_vm2, %v1763_v57, 0.0  ;;  %v1764_v21 = vmul.f32 %v7023_v24, %v7023_v24  ;;  %v6214_v57 = vld [vmem:[%s7909_s18 + $0xf0] sm:$0xff]  }
 0xfbf   :  { %1766 = vadd.xlane.f32.xlu0 %v1765_v58  ;;  %v6215_v58 = vld [vmem:[%s7909_s18 + $0x30] sm:$0xff]  }
 0xfc0   :  { %v1768_v22 = vsel %vm199_vm2, %v1764_v21, 0.0  ;;  %v6216_v21 = vld [vmem:[%s7909_s18 + $0xb0] sm:$0xff]  }
 0xfc3   :  { %1769 = vadd.xlane.f32.xlu0 %v1768_v22  ;;  %v6217_v22 = vld [vmem:[%s7909_s18 + $0x78] sm:$0xff]  }
0x104c   :  { %v1767_v12 = vpop.xlane.xlu0 %1766 }
0x104d   :  { %v1771_v37 = vmul.f32 0.015625, %v1767_v12 }
0x104f   :  { %v1773_v38 = vadd.f32 1e-05, %v1771_v37 }
0x1050   :  { %v1770_v50 = vpop.xlane.xlu0 %1769 }
0x1051   :  { %6365 = vrsqrt.f32 %v1773_v38  ;;  %v1772_v40 = vmul.f32 0.015625, %v1770_v50 }
0x1053   :  { %v1774_v47 = vadd.f32 1e-05, %v1772_v40 }
0x1055   :  { %6367 = vrsqrt.f32 %v1774_v47 }
0x105b   :  { %v6366_v45 = vpop.eup %6365 }
0x105c   :  { %v1777_v46 = vmul.f32 %v6366_v45, %v1761_v52  ;;  %v6211_v52 = vld [vmem:[%s7909_s18 + $0x28] sm:$0xff]  }
0x105e   :  { %v1785_v14 = vmul.f32 %v4998_v48, %v1777_v46 }
0x105f   :  { %v6368_v13 = vpop.eup %6367 }
0x1060   :  { %v1778_v18 = vmul.f32 %v6368_v13, %v7023_v24  ;;  %v7092_v29 = vadd.f32 %v4999_v19, %v1785_v14  ;;  %v6213_v24 = vld [vmem:[%s7909_s18 + $0x70] sm:$0xff]  }
0x1062   :  { %v1786_v23 = vmul.f32 %v4998_v48, %v1778_v18 }
0x1064   :  { %v7094_v30 = vadd.f32 %v4999_v19, %v1786_v23 }
0x1066   :  { %v1795_v16 = vpack.c.bf16 %v7094_v30, %v7092_v29 }
0x1068   :  { %5016 = vmatmul.mubr.msk.bf16.vlgmr.msra.gmra.mrb[48].mxu0 %vm199_vm2, %v1795_v16  ;;  %5017 = vmatmul.mubr.msk.bf16.vlgmr.msra.gmra.mrb[40].mxu1 %vm199_vm2, %v1795_v16 }
0x1069   :  { %5489 = vmatpush3.bf16.msra.mxu0 %v6191_v32  ;;  %5511 = vmatpush3.bf16.msra.mxu1 %v6192_v15 }
0x106a   :  { %5490 = vmatprep.subr.bf16.mxu0 %v6193_v17  ;;  %5512 = vmatprep.subr.bf16.mxu1 %v6194_v20 }
0x106d   :  { %5491 = vmatpush3.bf16.msra.mxu0 %v6195_v25  ;;  %5513 = vmatpush3.bf16.msra.mxu1 %v6196_v26 }
0x106e   :  { %5492 = vmatprep.subr.bf16.mxu0 %v6197_v27  ;;  %5514 = vmatprep.subr.bf16.mxu1 %v6198_v28 }
0x1071   :  { %5493 = vmatpush3.bf16.msra.mxu0 %v6199_v31  ;;  %5515 = vmatpush3.bf16.msra.mxu1 %v6200_v33 }
0x1072   :  { %5494 = vmatprep.subr.bf16.mxu0 %v6201_v34  ;;  %5516 = vmatprep.subr.bf16.mxu1 %v6202_v35  ;;  %v5018_v35 = vld [vmem:[%s7913_s19] ss:$0 sm:$0xff] }
0x1075   :  { %5495 = vmatpush3.bf16.msra.mxu0 %v6203_v36  ;;  %5517 = vmatpush3.bf16.msra.mxu1 %v6204_v39 }
0x1076   :  { %5496 = vmatprep.subr.bf16.mxu0 %v6205_v41  ;;  %5518 = vmatprep.subr.bf16.mxu1 %v6206_v42 }
0x1079   :  { %5497 = vmatpush3.bf16.msra.mxu0 %v6207_v43  ;;  %5519 = vmatpush3.bf16.msra.mxu1 %v6208_v44 }
0x107a   :  { %5498 = vmatprep.subr.bf16.mxu0 %v6209_v49  ;;  %5520 = vmatprep.subr.bf16.mxu1 %v6210_v51 }
0x107d   :  { %5499 = vmatpush3.bf16.msra.mxu0 %v6211_v52  ;;  %5521 = vmatpush3.bf16.msra.mxu1 %v6212_v55 }
0x107e   :  { %5500 = vmatprep.subr.bf16.mxu0 %v6213_v24  ;;  %5522 = vmatprep.subr.bf16.mxu1 %v6214_v57 }
0x1081   :  { %5501 = vmatpush3.bf16.msra.mxu0 %v6215_v58  ;;  %5523 = vmatpush3.bf16.msra.mxu1 %v6216_v21 }
0x1082   :  { %5502 = vmatprep.subr.bf16.mxu0 %v6217_v22  ;;  %5524 = vmatprep.subr.bf16.mxu1 %v6218_v59 }
0x1085   :  { %5503 = vmatpush3.bf16.msra.mxu0 %v6219_v60  ;;  %5525 = vmatpush3.bf16.msra.mxu1 %v6220_v63 }
0x1086   :  { %5877 = vmatprep.subr.bf16.mxu0 %v6415_v0  ;;  %5889 = vmatprep.subr.bf16.mxu1 %v6415_v0 }
0x113b   :  { %v1951_v9 = vpop.f32.mrb[48].mxu0  ;;  %v1994_v10 = vpop.f32.mrb[40].mxu1 }
0x113c   :  { %v1952_v11 = vadd.f32 %v1951_v9, %v1817_v62  ;;  %v1995_v7 = vadd.f32 %v1994_v10, %v1825_v1  ;;  %v1953_v12 = vpop.f32.mrb[49].mxu0  ;;  %v1996_v37 = vpop.f32.mrb[41].mxu1 }
0x113d   :  { %v1954_v38 = vadd.f32 %v1953_v12, %v1821_v6  ;;  %v1997_v50 = vadd.f32 %v1996_v37, %v1829_v8  ;;  %v1955_v40 = vpop.f32.mrb[50].mxu0  ;;  %v1998_v47 = vpop.f32.mrb[42].mxu1  ;;  %v6223_v12 = vld [vmem:[%s7945_s10 + $0x88] sm:$0xff]  }
0x113e   :  { %v1956_v45 = vadd.f32 %v1955_v40, %v1817_v62  ;;  %v1999_v46 = vadd.f32 %v1998_v47, %v1825_v1  ;;  %v1957_v48 = vpop.f32.mrb[51].mxu0  ;;  %v2000_v13 = vpop.f32.mrb[43].mxu1  ;;  %v2003_v19 = vmax.f32 %v1952_v11, 0.0  ;;  %v2005_v23 = vmax.f32 %v1995_v7, 0.0  ;;  %v6222_v7 = vld [vmem:[%s7944_s6 + $0x80] sm:$0xff]   ;;  %v6224_v37 = vld [vmem:[%s7944_s6 + $0x88] sm:$0xff]  }
0x113f   :  { %v1958_v14 = vadd.f32 %v1957_v48, %v1821_v6  ;;  %v2001_v18 = vadd.f32 %v2000_v13, %v1829_v8  ;;  %v2004_v16 = vmax.f32 %v1954_v38, 0.0  ;;  %v2006_v17 = vmax.f32 %v1997_v50, 0.0  ;;  %v6225_v38 = vld [vmem:[%s7945_s10 + $0x90] sm:$0xff]   ;;  %v6227_v40 = vld [vmem:[%s7945_s10 + $0x98] sm:$0xff]  }
0x1140   :  { %v2007_v32 = vmax.f32 %v1956_v45, 0.0  ;;  %v2009_v15 = vmax.f32 %v1999_v46, 0.0  ;;  %v6226_v50 = vld [vmem:[%s7944_s6 + $0x90] sm:$0xff]   ;;  %v6228_v47 = vld [vmem:[%s7944_s6 + $0x98] sm:$0xff]  }
0x1141   :  { %v2008_v20 = vmax.f32 %v1958_v14, 0.0  ;;  %v2010_v25 = vmax.f32 %v2001_v18, 0.0 }
0x1142   :  { %v2011_v26 = vpack.c.bf16 %v2007_v32, %v2003_v19  ;;  %v2013_v27 = vpack.c.bf16 %v2009_v15, %v2005_v23  ;;  %v5051_v23 = vld [vmem:[%s7914_s20] ss:$0 sm:$0xff] }
0x1143   :  { %v2012_v28 = vpack.c.bf16 %v2008_v20, %v2004_v16  ;;  %v2014_v31 = vpack.c.bf16 %v2010_v25, %v2006_v17  ;;  %v5052_v20 = vld [vmem:[%s7915_s21] ss:$0 sm:$0xff] }
0x1145   :  { %2310 = vmatprep.mubr.bf16.mxu0 %v2012_v28  ;;  %2351 = vmatprep.mubr.bf16.mxu1 %v2014_v31  ;;  %v6229_v28 = vld [vmem:[%s7948_s7 + $0x80] sm:$0xff]  }
0x1146   :  { %2311 = vmatmul.mubr.bf16.vlgmr.msra.gmra.mrb[52].mxu0 %v2011_v26  ;;  %2352 = vmatmul.mubr.bf16.vlgmr.msra.gmra.mrb[44].mxu1 %v2013_v27 }
0x1147   :  { %5885 = vmatprep.mubr.msk.bf16.mxu0 %vm6416_vm0, %v6415_v0  ;;  %5897 = vmatprep.mubr.msk.bf16.mxu1 %vm6416_vm0, %v6415_v0 }
0x1148   :  { %5890 = vmatpush3.bf16.msra.mxu1 %v6222_v7  ;;  %v6237_v7 = vld [vmem:[%s7948_s7 + $0xa0] sm:$0xff]  }
0x1149   :  { %5891 = vmatprep.subr.bf16.mxu1 %v6415_v0 }
0x114c   :  { %5892 = vmatpush3.bf16.msra.mxu1 %v6224_v37  ;;  %v6239_v37 = vld [vmem:[%s7948_s7 + $0xb0] sm:$0xff]  }
0x114d   :  { %5893 = vmatprep.subr.bf16.mxu1 %v6415_v0 }
0x1150   :  { %5894 = vmatpush3.bf16.msra.mxu1 %v6226_v50  ;;  %v6241_v50 = vld [vmem:[%s7945_s10 + $0xc0] sm:$0xff]  }
0x1151   :  { %5895 = vmatprep.subr.bf16.mxu1 %v6415_v0 }
0x1154   :  { %5896 = vmatpush3.bf16.msra.mxu1 %v6228_v47  ;;  %v6243_v47 = vld [vmem:[%s7945_s10 + $0xd0] sm:$0xff]  }
0x1155   :  { %5913 = vmatprep.subr.bf16.mxu1 %v6415_v0 }
0x1219   :  { %v5504_v33 = vpop.f32.mrb[52].mxu0  ;;  %v5526_v34 = vpop.f32.mrb[44].mxu1 }
0x121a   :  { %v5505_v36 = vpop.f32.mrb[53].mxu0  ;;  %v5527_v39 = vpop.f32.mrb[45].mxu1 }
0x121b   :  { %v5506_v41 = vadd.f32 %v5505_v36, %v5504_v33  ;;  %v5528_v42 = vadd.f32 %v5527_v39, %v5526_v34  ;;  %v5507_v43 = vpop.f32.mrb[54].mxu0  ;;  %v5529_v44 = vpop.f32.mrb[46].mxu1  ;;  %v6230_v33 = vld [vmem:[%s7948_s7 + $0x88] sm:$0xff]   ;;  %v6231_v34 = vld [vmem:[%s7948_s7 + $0x90] sm:$0xff]   ;;  %v5062_v36 = vld [vmem:[%s7949_s1 + $0x4] ss:$0 sm:$0xff] }
0x121c   :  { %v5508_v49 = vpop.f32.mrb[55].mxu0  ;;  %v5530_v51 = vpop.f32.mrb[47].mxu1 }
0x121d   :  { %v2313_v52 = vadd.f32 %v5506_v41, %v5018_v35  ;;  %v5509_v55 = vadd.f32 %v5508_v49, %v5507_v43  ;;  %v5531_v24 = vadd.f32 %v5530_v51, %v5529_v44  ;;  %v5077_v41 = vld [vmem:[%s7950_s4 + $0x4] ss:$0 sm:$0xff] }
0x121f   :  { %v2354_v57 = vadd.f32 %v5528_v42, %v2313_v52  ;;  %v2316_v58 = vadd.f32 %v5509_v55, %v5018_v35  ;;  %v6232_v35 = vld [vmem:[%s7948_s7 + $0x98] sm:$0xff]  }
0x1221   :  { %v2357_v21 = vadd.f32 %v5531_v24, %v2316_v58  ;;  %v2360_v22 = vadd.f32 %v2354_v57, %v7092_v29 }
0x1223   :  { %v2364_v59 = vsel %vm199_vm2, %v2360_v22, 0.0  ;;  %v2361_v60 = vadd.f32 %v2357_v21, %v7094_v30  ;;  %v6221_v30 = vld [vmem:[%s7945_s10 + $0x80] sm:$0xff]  }
0x1224   :  { %2365 = vadd.xlane.f32.xlu0 %v2364_v59  ;;  %5878 = vmatpush3.bf16.msra.mxu0 %v6221_v30  ;;  %v6236_v30 = vld [vmem:[%s7945_s10 + $0xb8] sm:$0xff]  }
0x1225   :  { %v2367_v63 = vsel %vm199_vm2, %v2361_v60, 0.0  ;;  %5879 = vmatprep.subr.bf16.mxu0 %v6415_v0 }
0x1226   :  { %2368 = vadd.xlane.f32.xlu1 %v2367_v63  ;;  %v6233_v63 = vld [vmem:[%s7945_s10 + $0xa0] sm:$0xff]  }
0x1228   :  { %5880 = vmatpush3.bf16.msra.mxu0 %v6223_v12  ;;  %v6238_v12 = vld [vmem:[%s7948_s7 + $0xa8] sm:$0xff]  }
0x1229   :  { %5881 = vmatprep.subr.bf16.mxu0 %v6415_v0 }
0x122c   :  { %5882 = vmatpush3.bf16.msra.mxu0 %v6225_v38  ;;  %v6240_v38 = vld [vmem:[%s7948_s7 + $0xb8] sm:$0xff]  }
0x122d   :  { %5883 = vmatprep.subr.bf16.mxu0 %v6415_v0 }
0x1230   :  { %5884 = vmatpush3.bf16.msra.mxu0 %v6227_v40  ;;  %v6242_v40 = vld [vmem:[%s7945_s10 + $0xc8] sm:$0xff]  }
0x1231   :  { %5901 = vmatprep.subr.bf16.mxu0 %v6415_v0 }
0x12b1   :  { %v2366_v2 = vpop.xlane.xlu0 %2365 }
0x12b2   :  { %v2370_v54 = vmul.f32 0.015625, %v2366_v2  ;;  %v5092_v2 = vld [vmem:[%s7904_s11 + $0x4] ss:$0 sm:$0xff] }
0x12b3   :  { %v2369_v62 = vpop.xlane.xlu1 %2368 }
0x12b4   :  { %v2372_v1 = vsub.f32 %v2360_v22, %v2370_v54  ;;  %v2371_v6 = vmul.f32 0.015625, %v2369_v62  ;;  %v6234_v62 = vld [vmem:[%s7945_s10 + $0xa8] sm:$0xff]  }
0x12b6   :  { %v2373_v8 = vsub.f32 %v2361_v60, %v2371_v6  ;;  %v2374_v9 = vmul.f32 %v2372_v1, %v2372_v1 }
0x12b8   :  { %v2376_v10 = vsel %vm199_vm2, %v2374_v9, 0.0  ;;  %v2375_v11 = vmul.f32 %v2373_v8, %v2373_v8 }
0x12b9   :  { %2377 = vadd.xlane.f32.xlu0 %v2376_v10 }
0x12ba   :  { %v2379_v29 = vsel %vm199_vm2, %v2375_v11, 0.0  ;;  %v6235_v11 = vld [vmem:[%s7945_s10 + $0xb0] sm:$0xff]  }
0x12bb   :  { %2380 = vadd.xlane.f32.xlu1 %v2379_v29 }
0x1346   :  { %v2378_v45 = vpop.xlane.xlu0 %2377 }
0x1347   :  { %v2382_v46 = vmul.f32 0.015625, %v2378_v45  ;;  %v6244_v45 = vld [vmem:[%s7945_s10 + $0xd8] sm:$0xff]  }
0x1348   :  { %v2381_v48 = vpop.xlane.xlu1 %2380 }
0x1349   :  { %v2384_v13 = vadd.f32 1e-05, %v2382_v46  ;;  %v2383_v14 = vmul.f32 0.015625, %v2381_v48  ;;  %v6245_v46 = vld [vmem:[%s7948_s7 + $0xc0] sm:$0xff]   ;;  %v6246_v48 = vld [vmem:[%s7948_s7 + $0xc8] sm:$0xff]  }
0x134b   :  { %6369 = vrsqrt.f32 %v2384_v13  ;;  %v2385_v18 = vadd.f32 1e-05, %v2383_v14  ;;  %v6247_v13 = vld [vmem:[%s7948_s7 + $0xd0] sm:$0xff]   ;;  %v6248_v14 = vld [vmem:[%s7948_s7 + $0xd8] sm:$0xff]  }
0x134d   :  { %6371 = vrsqrt.f32 %v2385_v18  ;;  %v6249_v18 = vld [vmem:[%s7945_s10 + $0xe0] sm:$0xff]  }
0x1355   :  { %v6370_v19 = vpop.eup %6369 }
0x1356   :  { %v2388_v32 = vmul.f32 %v6370_v19, %v2372_v1  ;;  %v6250_v19 = vld [vmem:[%s7945_s10 + $0xe8] sm:$0xff]  }
0x1357   :  { %v6372_v15 = vpop.eup %6371 }
0x1358   :  { %v2396_v16 = vmul.f32 %v5051_v23, %v2388_v32  ;;  %v2389_v17 = vmul.f32 %v6372_v15, %v2373_v8  ;;  %v6252_v32 = vld [vmem:[%s7945_s10 + $0xf8] sm:$0xff]   ;;  %v6253_v15 = vld [vmem:[%s7948_s7 + $0xe0] sm:$0xff]  }
0x135a   :  { %v2397_v25 = vmul.f32 %v5051_v23, %v2389_v17  ;;  %v7260_v26 = vadd.f32 %v5052_v20, %v2396_v16  ;;  %v6251_v23 = vld [vmem:[%s7945_s10 + $0xf0] sm:$0xff]   ;;  %v6254_v16 = vld [vmem:[%s7948_s7 + $0xe8] sm:$0xff]   ;;  %s7953_s10 = smov 48  }
0x135b   :  { %v6255_v17 = vld [vmem:[%s7948_s7 + $0xf0] sm:$0xff]  }
0x135c   :  { %v7262_v27 = vadd.f32 %v5052_v20, %v2397_v25  ;;  %v6256_v20 = vld [vmem:[%s7948_s7 + $0xf8] sm:$0xff]  }
0x135e   :  { %v7269_v31 = vpack.c.bf16 %v7262_v27, %v7260_v26 }
0x1360   :  { %5886 = vmatmul.mubr.msk.bf16.vlgmr.msra.gmra.mrb[56].mxu0 %vm199_vm2, %v7269_v31  ;;  %5898 = vmatmul.mubr.msk.bf16.vlgmr.msra.gmra.mrb[48].mxu1 %vm199_vm2, %v7269_v31 }
0x1361   :  { %5902 = vmatpush3.bf16.msra.mxu0 %v6229_v28  ;;  %5909 = vmatprep.mubr.msk.bf16.mxu0 %vm6416_vm0, %v6415_v0 }
0x1362   :  { %5903 = vmatprep.subr.bf16.mxu0 %v6415_v0  ;;  %5915 = vmatprep.mubr.msk.bf16.mxu1 %vm6416_vm0, %v6415_v0 }
0x1365   :  { %5904 = vmatpush3.bf16.msra.mxu0 %v6230_v33 }
0x1366   :  { %5905 = vmatprep.subr.bf16.mxu0 %v6415_v0 }
0x1369   :  { %5906 = vmatpush3.bf16.msra.mxu0 %v6231_v34 }
0x136a   :  { %5907 = vmatprep.subr.bf16.mxu0 %v6415_v0 }
0x136d   :  { %5908 = vmatpush3.bf16.msra.mxu0 %v6232_v35 }
0x136e   :  { %5919 = vmatprep.subr.bf16.mxu0 %v6415_v0 }
0x1370   :  { %5910 = vmatmul.mubr.msk.bf16.vlgmr.msra.gmra.mrb[60].mxu0 %vm199_vm2, %v7269_v31 }
0x1371   :  { %5921 = vmatprep.mubr.msk.bf16.mxu0 %vm6416_vm0, %v6415_v0 }
0x1433   :  { %v2485_v39 = vpop.f32.mrb[56].mxu0  ;;  %v2567_v42 = vpop.f32.mrb[48].mxu1 }
0x1434   :  { %v5887_v43 = vpop.f32.mrb[57].mxu0  ;;  %v5899_v44 = vpop.f32.mrb[49].mxu1  ;;  %v2486_v52 = vadd.f32 %v5062_v36, %v2485_v39  ;;  %v2568_v55 = vadd.f32 %v5077_v41, %v2567_v42  ;;  %v7434_v39 = vld [vmem:[%s7905_s2] sm:$0xff] }
0x1435   :  { %v2488_v49 = vpop.f32.mrb[58].mxu0  ;;  %v2570_v51 = vpop.f32.mrb[50].mxu1  ;;  %v7441_v43 = vld [vmem:[%s7905_s2 + $0x8] sm:$0xff] }
0x1436   :  { %v2489_v24 = vadd.f32 %v5062_v36, %v2488_v49  ;;  %v2571_v57 = vadd.f32 %v5077_v41, %v2570_v51  ;;  %v5888_v58 = vpop.f32.mrb[59].mxu0  ;;  %v5900_v21 = vpop.f32.mrb[51].mxu1  ;;  %v5109_v51 = vld [vmem:[%s7949_s1 + $0x5] ss:$0 sm:$0xff] }
0x1438   :  { %v2656_v22 = vpack.c.bf16 %v2489_v24, %v2486_v52  ;;  %v2657_v59 = vpack.c.bf16 %v2571_v57, %v2568_v55 }
0x143a   :  { %v2662_v60 = vsel %vm406_vm3, %v2657_v59, 0  ;;  %v5139_v59 = vld [vmem:[%s7904_s11 + $0x5] ss:$0 sm:$0xff] }
0x143b   :  { %5914 = vmatpush3.bf16.xpose.msra.mxu1 %v2662_v60 }
0x143c   :  { %5925 = vmatprep.subr.bf16.mxu1 %v6415_v0 }
0x1442   :  { %5916 = vmatmul.mubr.msk.bf16.vlgmr.msra.gmra.mrb[52].mxu1 %vm406_vm3, %v2656_v22 }
0x1443   :  { %v2649_v54 = vpop.f32.mrb[60].mxu0  ;;  %5926 = vmatpush3.bf16.msra.mxu1 %v6233_v63  ;;  %5933 = vmatprep.mubr.msk.bf16.mxu1 %vm6416_vm0, %v6415_v0 }
0x1444   :  { %v5911_v1 = vpop.f32.mrb[61].mxu0  ;;  %5927 = vmatprep.subr.bf16.mxu1 %v6415_v0  ;;  %v2650_v8 = vadd.f32 %v5092_v2, %v2649_v54 }
0x1445   :  { %v2652_v6 = vpop.f32.mrb[62].mxu0 }
0x1446   :  { %v2653_v9 = vadd.f32 %v5092_v2, %v2652_v6  ;;  %v5912_v10 = vpop.f32.mrb[63].mxu0 }
0x1447   :  { %5928 = vmatpush3.bf16.msra.mxu1 %v6234_v62 }
0x1448   :  { %v2732_v29 = vpack.c.bf16 %v2653_v9, %v2650_v8  ;;  %5929 = vmatprep.subr.bf16.mxu1 %v6415_v0  ;;  %v5156_v8 = vld [vmem:[%s7949_s1 + $0x6] ss:$0 sm:$0xff] }
0x144a   :  { %5920 = vmatpush3.bf16.msra.mxu0 %v2732_v29 }
0x144b   :  { %5930 = vmatpush3.bf16.msra.mxu1 %v6235_v11  ;;  %5937 = vmatprep.subr.bf16.mxu0 %v6415_v0 }
0x144c   :  { %5931 = vmatprep.subr.bf16.mxu1 %v6415_v0 }
0x144f   :  { %5932 = vmatpush3.bf16.msra.mxu1 %v6236_v30 }
0x1450   :  { %5949 = vmatprep.subr.bf16.mxu1 %v6415_v0 }
0x1452   :  { %5934 = vmatmul.mubr.msk.bf16.vlgmr.msra.gmra.mrb[56].mxu1 %vm199_vm2, %v7269_v31 }
0x1453   :  { %5950 = vmatpush3.bf16.msra.mxu1 %v6237_v7  ;;  %5957 = vmatprep.mubr.msk.bf16.mxu1 %vm6416_vm0, %v6415_v0 }
0x1454   :  { %5951 = vmatprep.subr.bf16.mxu1 %v6415_v0 }
0x1457   :  { %5952 = vmatpush3.bf16.msra.mxu1 %v6238_v12 }
0x1458   :  { %5953 = vmatprep.subr.bf16.mxu1 %v6415_v0 }
0x145b   :  { %5954 = vmatpush3.bf16.msra.mxu1 %v6239_v37  ;;  %v5186_v37 = vld [vmem:[%s7904_s11 + $0x6] ss:$0 sm:$0xff] }
0x145c   :  { %5955 = vmatprep.subr.bf16.mxu1 %v6415_v0 }
0x145f   :  { %5956 = vmatpush3.bf16.msra.mxu1 %v6240_v38 }
0x1460   :  { %5973 = vmatprep.subr.bf16.mxu1 %v6415_v0 }
0x1462   :  { %5958 = vmatmul.mubr.msk.bf16.vlgmr.msra.gmra.mrb[60].mxu1 %vm199_vm2, %v7269_v31 }
0x1463   :  { %5974 = vmatpush3.bf16.msra.mxu1 %v6241_v50  ;;  %5981 = vmatprep.mubr.msk.bf16.mxu1 %vm6416_vm0, %v6415_v0 }
0x1464   :  { %5975 = vmatprep.subr.bf16.mxu1 %v6415_v0 }
0x1467   :  { %5976 = vmatpush3.bf16.msra.mxu1 %v6242_v40 }
0x1468   :  { %5977 = vmatprep.subr.bf16.mxu1 %v6415_v0 }
0x146b   :  { %5978 = vmatpush3.bf16.msra.mxu1 %v6243_v47 }
0x146c   :  { %5979 = vmatprep.subr.bf16.mxu1 %v6415_v0 }
0x146f   :  { %5980 = vmatpush3.bf16.msra.mxu1 %v6244_v45 }
0x1470   :  { %5997 = vmatprep.subr.bf16.mxu1 %v6415_v0 }
0x1472   :  { %5982 = vmatmul.mubr.msk.bf16.vlgmr.msra.gmra.mrb[64].mxu1 %vm199_vm2, %v7269_v31 }
0x1473   :  { %5998 = vmatpush3.bf16.msra.mxu1 %v6245_v46  ;;  %6005 = vmatprep.mubr.msk.bf16.mxu1 %vm6416_vm0, %v6415_v0 }
0x1474   :  { %5999 = vmatprep.subr.bf16.mxu1 %v6415_v0 }
0x1477   :  { %6000 = vmatpush3.bf16.msra.mxu1 %v6246_v48 }
0x1478   :  { %6001 = vmatprep.subr.bf16.mxu1 %v6415_v0 }
0x147b   :  { %6002 = vmatpush3.bf16.msra.mxu1 %v6247_v13  ;;  %v5203_v13 = vld [vmem:[%s7949_s1 + $0x7] ss:$0 sm:$0xff] }
0x147c   :  { %6003 = vmatprep.subr.bf16.mxu1 %v6415_v0 }
0x147f   :  { %6004 = vmatpush3.bf16.msra.mxu1 %v6248_v14 }
0x1480   :  { %6021 = vmatprep.subr.bf16.mxu1 %v6415_v0 }
0x1482   :  { %6006 = vmatmul.mubr.msk.bf16.vlgmr.msra.gmra.mrb[68].mxu1 %vm199_vm2, %v7269_v31 }
0x1483   :  { %6022 = vmatpush3.bf16.msra.mxu1 %v6249_v18  ;;  %6029 = vmatprep.mubr.msk.bf16.mxu1 %vm6416_vm0, %v6415_v0 }
0x1484   :  { %6023 = vmatprep.subr.bf16.mxu1 %v6415_v0 }
0x1487   :  { %6024 = vmatpush3.bf16.msra.mxu1 %v6250_v19 }
0x1488   :  { %6025 = vmatprep.subr.bf16.mxu1 %v6415_v0 }
0x148b   :  { %6026 = vmatpush3.bf16.msra.mxu1 %v6251_v23 }
0x148c   :  { %6027 = vmatprep.subr.bf16.mxu1 %v6415_v0 }
0x148f   :  { %6028 = vmatpush3.bf16.msra.mxu1 %v6252_v32 }
0x1490   :  { %6045 = vmatprep.subr.bf16.mxu1 %v6415_v0 }
0x1492   :  { %6030 = vmatmul.mubr.msk.bf16.vlgmr.msra.gmra.mrb[72].mxu1 %vm199_vm2, %v7269_v31 }
0x1493   :  { %6046 = vmatpush3.bf16.msra.mxu1 %v6253_v15  ;;  %6053 = vmatprep.mubr.msk.bf16.mxu1 %vm6416_vm0, %v6415_v0 }
0x1494   :  { %6047 = vmatprep.subr.bf16.mxu1 %v6415_v0 }
0x1497   :  { %6048 = vmatpush3.bf16.msra.mxu1 %v6254_v16 }
0x1498   :  { %6049 = vmatprep.subr.bf16.mxu1 %v6415_v0 }
0x149b   :  { %6050 = vmatpush3.bf16.msra.mxu1 %v6255_v17  ;;  %v5233_v17 = vld [vmem:[%s7904_s11 + $0x7] ss:$0 sm:$0xff] }
0x149c   :  { %6051 = vmatprep.subr.bf16.mxu1 %v6415_v0 }
0x149f   :  { %6052 = vmatpush3.bf16.msra.mxu1 %v6256_v20 }
0x14a0   :  { %6069 = vmatprep.subr.bf16.mxu1 %v6415_v0 }
0x14a2   :  { %6054 = vmatmul.mubr.msk.bf16.vlgmr.msra.gmra.mrb[76].mxu1 %vm199_vm2, %v7269_v31 }
0x14a3   :  { %6077 = vmatprep.mubr.msk.bf16.mxu1 %vm6416_vm0, %v6415_v0 }
0x1515   :  { %v2698_v25 = vpop.f32.mrb[52].mxu1 }
0x1516   :  { %v2705_v28 = vmul.f32 0.25, %v2698_v25  ;;  %v5917_v33 = vpop.f32.mrb[53].mxu1 }
0x1517   :  { %v2701_v34 = vpop.f32.mrb[54].mxu1 }
0x1518   :  { %v2706_v35 = vmul.f32 0.25, %v2701_v34  ;;  %v5918_v36 = vpop.f32.mrb[55].mxu1  ;;  %v2707_v41 = vadd.f32 %v7434_v39, %v2705_v28 }
0x151a   :  { %v2709_v42 = vsel %vm406_vm3, %v2707_v41, -inf  ;;  %v2708_v44 = vadd.f32 %v7441_v43, %v2706_v35 }
0x151b   :  { %2710 = vmax.xlane.f32.xlu0 %v2709_v42 }
0x151c   :  { %v2712_v49 = vsel %vm406_vm3, %v2708_v44, -inf }
0x151d   :  { %2713 = vmax.xlane.f32.xlu1 %v2712_v49 }
0x1525   :  { %v2854_v52 = vpop.f32.mrb[56].mxu1 }
0x1526   :  { %v5935_v55 = vpop.f32.mrb[57].mxu1  ;;  %v7448_v57 = vadd.f32 %v5109_v51, %v2854_v52 }
0x1527   :  { %v2857_v24 = vpop.f32.mrb[58].mxu1 }
0x1528   :  { %v7450_v58 = vadd.f32 %v5109_v51, %v2857_v24  ;;  %v5936_v21 = vpop.f32.mrb[59].mxu1 }
0x152a   :  { %v3025_v22 = vpack.c.bf16 %v7450_v58, %v7448_v57 }
0x1535   :  { %v3018_v60 = vpop.f32.mrb[60].mxu1 }
0x1536   :  { %v5959_v63 = vpop.f32.mrb[61].mxu1  ;;  %v7457_v54 = vadd.f32 %v5139_v59, %v3018_v60 }
0x1537   :  { %v3021_v2 = vpop.f32.mrb[62].mxu1 }
0x1538   :  { %v7459_v62 = vadd.f32 %v5139_v59, %v3021_v2  ;;  %v5960_v1 = vpop.f32.mrb[63].mxu1 }
0x153a   :  { %v3101_v6 = vpack.c.bf16 %v7459_v62, %v7457_v54 }
0x1545   :  { %v3231_v9 = vpop.f32.mrb[64].mxu1 }
0x1546   :  { %v5983_v10 = vpop.f32.mrb[65].mxu1  ;;  %v7466_v29 = vadd.f32 %v5156_v8, %v3231_v9 }
0x1547   :  { %v3234_v11 = vpop.f32.mrb[66].mxu1 }
0x1548   :  { %v7468_v30 = vadd.f32 %v5156_v8, %v3234_v11  ;;  %v5984_v7 = vpop.f32.mrb[67].mxu1 }
0x1549   :  { %v6258_v7 = vld [vmem:[%s7944_s6 + $0xa8] sm:$0xff]  }
0x154a   :  { %v3402_v12 = vpack.c.bf16 %v7468_v30, %v7466_v29 }
0x1555   :  { %v3395_v38 = vpop.f32.mrb[68].mxu1 }
0x1556   :  { %v6007_v50 = vpop.f32.mrb[69].mxu1  ;;  %v7475_v47 = vadd.f32 %v5186_v37, %v3395_v38  ;;  %v6260_v38 = vld [vmem:[%s7944_s6 + $0xb8] sm:$0xff]  }
0x1557   :  { %v3398_v40 = vpop.f32.mrb[70].mxu1 }
0x1558   :  { %v7477_v45 = vadd.f32 %v5186_v37, %v3398_v40  ;;  %v6008_v46 = vpop.f32.mrb[71].mxu1  ;;  %v6259_v37 = vld [vmem:[%s7944_s6 + $0xb0] sm:$0xff]  }
0x155a   :  { %v3478_v48 = vpack.c.bf16 %v7477_v45, %v7475_v47 }
0x1565   :  { %v3608_v14 = vpop.f32.mrb[72].mxu1 }
0x1566   :  { %v6031_v18 = vpop.f32.mrb[73].mxu1  ;;  %v7484_v23 = vadd.f32 %v5203_v13, %v3608_v14  ;;  %v5124_v14 = vld [vmem:[%s7950_s4 + $0x5] ss:$0 sm:$0xff] }
0x1567   :  { %v3611_v19 = vpop.f32.mrb[74].mxu1 }
0x1568   :  { %v7486_v32 = vadd.f32 %v5203_v13, %v3611_v19  ;;  %v6032_v15 = vpop.f32.mrb[75].mxu1 }
0x156a   :  { %v3779_v16 = vpack.c.bf16 %v7486_v32, %v7484_v23 }
0x1575   :  { %v3772_v20 = vpop.f32.mrb[76].mxu1 }
0x1576   :  { %v6055_v25 = vpop.f32.mrb[77].mxu1  ;;  %v7493_v33 = vadd.f32 %v5233_v17, %v3772_v20 }
0x1577   :  { %v3775_v28 = vpop.f32.mrb[78].mxu1 }
0x1578   :  { %v7495_v34 = vadd.f32 %v5233_v17, %v3775_v28  ;;  %v6056_v35 = vpop.f32.mrb[79].mxu1 }
0x157a   :  { %v3855_v36 = vpack.c.bf16 %v7495_v34, %v7493_v33 }
0x15a8   :  { %v2711_v42 = vpop.xlane.xlu0 %2710 }
0x15a9   :  { %v2715_v49 = vsub.f32 %v2707_v41, %v2711_v42 }
0x15aa   :  { %v2714_v51 = vpop.xlane.xlu1 %2713 }
0x15ab   :  { %v2717_v52 = vmul.f32 1.442695, %v2715_v49  ;;  %v2716_v55 = vsub.f32 %v2708_v44, %v2714_v51  ;;  %v6257_v44 = vld [vmem:[%s7944_s6 + $0xa0] sm:$0xff]  }
0x15ad   :  { %6373 = vpow2.f32 %v2717_v52  ;;  %v2719_v24 = vmul.f32 1.442695, %v2716_v55 }
0x15af   :  { %6375 = vpow2.f32 %v2719_v24 }
0x15b7   :  { %v6374_v21 = vpop.eup %6373 }
0x15b8   :  { %v2721_v59 = vsel %vm406_vm3, %v6374_v21, 0.0 }
0x15b9   :  { %v6376_v60 = vpop.eup %6375  ;;  %2722 = vadd.xlane.f32.xlu0 %v2721_v59 }
0x15ba   :  { %v2724_v63 = vsel %vm406_vm3, %v6376_v60, 0.0 }
0x15bb   :  { %2725 = vadd.xlane.f32.xlu1 %v2724_v63 }
0x1646   :  { %v2723_v2 = vpop.xlane.xlu0 %2722 }
0x1647   :  { %6377 = vrcp.f32 %v2723_v2 }
0x1648   :  { %v2726_v1 = vpop.xlane.xlu1 %2725 }
0x1649   :  { %6379 = vrcp.f32 %v2726_v1 }
0x1651   :  { %v6378_v8 = vpop.eup %6377 }
0x1652   :  { %v2729_v9 = vmul.f32 %v6378_v8, %v6374_v21 }
0x1653   :  { %v6380_v41 = vpop.eup %6379 }
0x1654   :  { %v2730_v10 = vmul.f32 %v6380_v41, %v6376_v60 }
0x1656   :  { %v2731_v11 = vpack.c.bf16 %v2730_v10, %v2729_v9 }
0x1658   :  { %5922 = vmatmul.mubr.msk.bf16.vlgmr.msra.gmra.mrb[64].mxu0 %vm406_vm3, %v2731_v11 }
0x1659   :  { %5938 = vmatpush3.bf16.msra.mxu0 %v6257_v44  ;;  %5945 = vmatprep.mubr.msk.bf16.mxu0 %vm6416_vm0, %v6415_v0 }
0x165a   :  { %5939 = vmatprep.subr.bf16.mxu0 %v6415_v0 }
0x165d   :  { %5940 = vmatpush3.bf16.msra.mxu0 %v6258_v7 }
0x165e   :  { %5941 = vmatprep.subr.bf16.mxu0 %v6415_v0 }
0x1661   :  { %5942 = vmatpush3.bf16.msra.mxu0 %v6259_v37 }
0x1662   :  { %5943 = vmatprep.subr.bf16.mxu0 %v6415_v0 }
0x1665   :  { %5944 = vmatpush3.bf16.msra.mxu0 %v6260_v38  ;;  %v6261_v38 = vld [vmem:[%s7944_s6 + $0xc0] sm:$0xff]  }
0x1666   :  { %5961 = vmatprep.subr.bf16.mxu0 %v6415_v0 }
0x1668   :  { %5946 = vmatmul.mubr.msk.bf16.vlgmr.msra.gmra.mrb[68].mxu0 %vm199_vm2, %v7269_v31 }
0x1669   :  { %5963 = vmatprep.mubr.msk.bf16.mxu0 %vm6416_vm0, %v6415_v0 }
0x172b   :  { %v2770_v50 = vpop.f32.mrb[64].mxu0 }
0x172c   :  { %2777 = vst.msk [vmem:[#allocation2] sm:$0xff] %vm406_vm3, %v2770_v50  ;;  %v5923_v40 = vpop.f32.mrb[65].mxu0 }
0x172d   :  { %v2773_v46 = vpop.f32.mrb[66].mxu0  ;;  %v6262_v40 = vld [vmem:[%s7944_s6 + $0xc8] sm:$0xff]  }
0x172e   :  { %2778 = vst.msk [vmem:[#allocation2 + $0x8] sm:$0xff] %vm406_vm3, %v2773_v46  ;;  %v5924_v13 = vpop.f32.mrb[67].mxu0  ;;  %v6263_v46 = vld [vmem:[%s7944_s6 + $0xd0] sm:$0xff]  }
0x172f   :  { %v6264_v13 = vld [vmem:[%s7944_s6 + $0xd8] sm:$0xff]  }
0x173b   :  { %v2936_v18 = vpop.f32.mrb[68].mxu0 }
0x173c   :  { %v5947_v19 = vpop.f32.mrb[69].mxu0  ;;  %v2937_v17 = vadd.f32 %v5124_v14, %v2936_v18 }
0x173d   :  { %v2939_v15 = vpop.f32.mrb[70].mxu0 }
0x173e   :  { %v2940_v20 = vadd.f32 %v5124_v14, %v2939_v15  ;;  %v5948_v25 = vpop.f32.mrb[71].mxu0 }
0x1740   :  { %v3026_v28 = vpack.c.bf16 %v2940_v20, %v2937_v17  ;;  %v5171_v17 = vld [vmem:[%s7950_s4 + $0x6] ss:$0 sm:$0xff] }
0x1742   :  { %v3031_v35 = vsel %vm406_vm3, %v3026_v28, 0 }
0x1743   :  { %5962 = vmatpush3.bf16.xpose.msra.mxu0 %v3031_v35 }
0x1744   :  { %5967 = vmatprep.subr.bf16.mxu0 %v6415_v0 }
0x174a   :  { %5964 = vmatmul.mubr.msk.bf16.vlgmr.msra.gmra.mrb[72].mxu0 %vm406_vm3, %v3025_v22 }
0x174b   :  { %5968 = vmatpush3.bf16.msra.mxu0 %v3101_v6  ;;  %5969 = vmatprep.mubr.msk.bf16.mxu0 %vm6416_vm0, %v6415_v0 }
0x174c   :  { %5985 = vmatprep.subr.bf16.mxu0 %v6415_v0 }
0x181d   :  { %v3067_v42 = vpop.f32.mrb[72].mxu0 }
0x181e   :  { %v3074_v49 = vmul.f32 0.25, %v3067_v42  ;;  %v5965_v51 = vpop.f32.mrb[73].mxu0 }
0x181f   :  { %v3070_v52 = vpop.f32.mrb[74].mxu0 }
0x1820   :  { %v3075_v55 = vmul.f32 0.25, %v3070_v52  ;;  %v5966_v24 = vpop.f32.mrb[75].mxu0  ;;  %v3076_v21 = vadd.f32 %v7434_v39, %v3074_v49 }
0x1822   :  { %v3078_v57 = vsel %vm406_vm3, %v3076_v21, -inf  ;;  %v3077_v58 = vadd.f32 %v7441_v43, %v3075_v55 }
0x1823   :  { %3079 = vmax.xlane.f32.xlu0 %v3078_v57 }
0x1824   :  { %v3081_v22 = vsel %vm406_vm3, %v3077_v58, -inf }
0x1825   :  { %3082 = vmax.xlane.f32.xlu1 %v3081_v22 }
0x18b0   :  { %v3080_v54 = vpop.xlane.xlu0 %3079 }
0x18b1   :  { %v3084_v62 = vsub.f32 %v3076_v21, %v3080_v54 }
0x18b2   :  { %v3083_v6 = vpop.xlane.xlu1 %3082 }
0x18b3   :  { %v3086_v59 = vmul.f32 1.442695, %v3084_v62  ;;  %v3085_v60 = vsub.f32 %v3077_v58, %v3083_v6 }
0x18b5   :  { %6381 = vpow2.f32 %v3086_v59  ;;  %v3088_v63 = vmul.f32 1.442695, %v3085_v60 }
0x18b7   :  { %6383 = vpow2.f32 %v3088_v63 }
0x18bf   :  { %v6382_v2 = vpop.eup %6381 }
0x18c0   :  { %v3090_v1 = vsel %vm406_vm3, %v6382_v2, 0.0 }
0x18c1   :  { %v6384_v8 = vpop.eup %6383  ;;  %3091 = vadd.xlane.f32.xlu0 %v3090_v1 }
0x18c2   :  { %v3093_v41 = vsel %vm406_vm3, %v6384_v8, 0.0 }
0x18c3   :  { %3094 = vadd.xlane.f32.xlu1 %v3093_v41 }
0x194e   :  { %v3092_v9 = vpop.xlane.xlu0 %3091 }
0x194f   :  { %6385 = vrcp.f32 %v3092_v9 }
0x1950   :  { %v3095_v10 = vpop.xlane.xlu1 %3094 }
0x1951   :  { %6387 = vrcp.f32 %v3095_v10 }
0x1959   :  { %v6386_v44 = vpop.eup %6385 }
0x195a   :  { %v3098_v7 = vmul.f32 %v6386_v44, %v6382_v2 }
0x195b   :  { %v6388_v11 = vpop.eup %6387 }
0x195c   :  { %v3099_v37 = vmul.f32 %v6388_v11, %v6384_v8 }
0x195e   :  { %v3100_v50 = vpack.c.bf16 %v3099_v37, %v3098_v7  ;;  %v6265_v7 = vld [vmem:[%s7944_s6 + $0xe0] sm:$0xff]  }
0x1960   :  { %5970 = vmatmul.mubr.msk.bf16.vlgmr.msra.gmra.mrb[76].mxu0 %vm406_vm3, %v3100_v50  ;;  %v6267_v50 = vld [vmem:[%s7944_s6 + $0xf0] sm:$0xff]  }
0x1961   :  { %5986 = vmatpush3.bf16.msra.mxu0 %v6261_v38  ;;  %5993 = vmatprep.mubr.msk.bf16.mxu0 %vm6416_vm0, %v6415_v0  ;;  %v6266_v38 = vld [vmem:[%s7944_s6 + $0xe8] sm:$0xff]  }
0x1962   :  { %5987 = vmatprep.subr.bf16.mxu0 %v6415_v0 }
0x1965   :  { %5988 = vmatpush3.bf16.msra.mxu0 %v6262_v40  ;;  %v6268_v40 = vld [vmem:[%s7944_s6 + $0xf8] sm:$0xff]   ;;  %s7951_s6 = smov 16  }
0x1966   :  { %5989 = vmatprep.subr.bf16.mxu0 %v6415_v0 }
0x1969   :  { %5990 = vmatpush3.bf16.msra.mxu0 %v6263_v46 }
0x196a   :  { %5991 = vmatprep.subr.bf16.mxu0 %v6415_v0 }
0x196d   :  { %5992 = vmatpush3.bf16.msra.mxu0 %v6264_v13 }
0x196e   :  { %6009 = vmatprep.subr.bf16.mxu0 %v6415_v0 }
0x1970   :  { %5994 = vmatmul.mubr.msk.bf16.vlgmr.msra.gmra.mrb[80].mxu0 %vm199_vm2, %v7269_v31 }
0x1971   :  { %6011 = vmatprep.mubr.msk.bf16.mxu0 %vm6416_vm0, %v6415_v0 }
0x1a33   :  { %v7570_v14 = vpop.f32.mrb[76].mxu0 }
0x1a34   :  { %v5971_v18 = vpop.f32.mrb[77].mxu0 }
0x1a35   :  { %v7572_v19 = vpop.f32.mrb[78].mxu0 }
0x1a36   :  { %v5972_v15 = vpop.f32.mrb[79].mxu0 }
0x1a43   :  { %v3313_v20 = vpop.f32.mrb[80].mxu0 }
0x1a44   :  { %v5995_v25 = vpop.f32.mrb[81].mxu0  ;;  %v3314_v35 = vadd.f32 %v5171_v17, %v3313_v20 }
0x1a45   :  { %v3316_v28 = vpop.f32.mrb[82].mxu0 }
0x1a46   :  { %v3317_v42 = vadd.f32 %v5171_v17, %v3316_v28  ;;  %v5996_v49 = vpop.f32.mrb[83].mxu0  ;;  %v5218_v17 = vld [vmem:[%s7950_s4 + $0x7] ss:$0 sm:$0xff]  ;;  %s7952_s4 = smov 32  }
0x1a48   :  { %v3403_v51 = vpack.c.bf16 %v3317_v42, %v3314_v35 }
0x1a4a   :  { %v3408_v52 = vsel %vm406_vm3, %v3403_v51, 0 }
0x1a4b   :  { %6010 = vmatpush3.bf16.xpose.msra.mxu0 %v3408_v52 }
0x1a4c   :  { %6015 = vmatprep.subr.bf16.mxu0 %v6415_v0 }
0x1a52   :  { %6012 = vmatmul.mubr.msk.bf16.vlgmr.msra.gmra.mrb[84].mxu0 %vm406_vm3, %v3402_v12 }
0x1a53   :  { %6016 = vmatpush3.bf16.msra.mxu0 %v3478_v48  ;;  %6017 = vmatprep.mubr.msk.bf16.mxu0 %vm6416_vm0, %v6415_v0 }
0x1a54   :  { %6033 = vmatprep.subr.bf16.mxu0 %v6415_v0 }
0x1b25   :  { %v3444_v55 = vpop.f32.mrb[84].mxu0 }
0x1b26   :  { %v3451_v24 = vmul.f32 0.25, %v3444_v55  ;;  %v6013_v21 = vpop.f32.mrb[85].mxu0 }
0x1b27   :  { %v3447_v57 = vpop.f32.mrb[86].mxu0 }
0x1b28   :  { %v3452_v58 = vmul.f32 0.25, %v3447_v57  ;;  %v6014_v22 = vpop.f32.mrb[87].mxu0  ;;  %v3453_v54 = vadd.f32 %v7434_v39, %v3451_v24 }
0x1b2a   :  { %v3455_v29 = vsel %vm406_vm3, %v3453_v54, -inf  ;;  %v3454_v30 = vadd.f32 %v7441_v43, %v3452_v58 }
0x1b2b   :  { %3456 = vmax.xlane.f32.xlu0 %v3455_v29 }
0x1b2c   :  { %v3458_v12 = vsel %vm406_vm3, %v3454_v30, -inf }
0x1b2d   :  { %3459 = vmax.xlane.f32.xlu1 %v3458_v12 }
0x1bb8   :  { %v3457_v47 = vpop.xlane.xlu0 %3456 }
0x1bb9   :  { %v3461_v45 = vsub.f32 %v3453_v54, %v3457_v47 }
0x1bba   :  { %v3460_v48 = vpop.xlane.xlu1 %3459 }
0x1bbb   :  { %v3463_v62 = vmul.f32 1.442695, %v3461_v45  ;;  %v3462_v6 = vsub.f32 %v3454_v30, %v3460_v48 }
0x1bbd   :  { %6389 = vpow2.f32 %v3463_v62  ;;  %v3465_v59 = vmul.f32 1.442695, %v3462_v6 }
0x1bbf   :  { %6391 = vpow2.f32 %v3465_v59 }
0x1bc7   :  { %v6390_v60 = vpop.eup %6389 }
0x1bc8   :  { %v3467_v63 = vsel %vm406_vm3, %v6390_v60, 0.0 }
0x1bc9   :  { %v6392_v2 = vpop.eup %6391  ;;  %3468 = vadd.xlane.f32.xlu0 %v3467_v63 }
0x1bca   :  { %v3470_v1 = vsel %vm406_vm3, %v6392_v2, 0.0 }
0x1bcb   :  { %3471 = vadd.xlane.f32.xlu1 %v3470_v1 }
0x1c56   :  { %v3469_v8 = vpop.xlane.xlu0 %3468 }
0x1c57   :  { %6393 = vrcp.f32 %v3469_v8  ;;  %v6269_v8 = vld [vmem:[%s7906_s12 + $0x20] sm:$0xff]  }
0x1c58   :  { %v3472_v41 = vpop.xlane.xlu1 %3471  ;;  %6070 = vmatpush3.bf16.msra.mxu1 %v6269_v8 }
0x1c59   :  { %6395 = vrcp.f32 %v3472_v41  ;;  %6071 = vmatprep.subr.bf16.mxu1 %v6415_v0  ;;  %v6270_v41 = vld [vmem:[%s7906_s12 + $0x28] sm:$0xff]  }
0x1c5c   :  { %6072 = vmatpush3.bf16.msra.mxu1 %v6270_v41 }
0x1c5d   :  { %6073 = vmatprep.subr.bf16.mxu1 %v6415_v0 }
0x1c61   :  { %v6394_v9 = vpop.eup %6393 }
0x1c62   :  { %v3475_v44 = vmul.f32 %v6394_v9, %v6390_v60  ;;  %v6271_v9 = vld [vmem:[%s7906_s12 + $0x30] sm:$0xff]  }
0x1c63   :  { %v6396_v10 = vpop.eup %6395  ;;  %6074 = vmatpush3.bf16.msra.mxu1 %v6271_v9  ;;  %v5258_v9 = vld [vmem:[%s7910_s14 + $0x1] ss:$0 sm:$0xff] }
0x1c64   :  { %v3476_v11 = vmul.f32 %v6396_v10, %v6392_v2  ;;  %v6272_v10 = vld [vmem:[%s7906_s12 + $0x38] sm:$0xff]   ;;  %6075 = vmatprep.subr.bf16.mxu1 %v6415_v0 }
0x1c66   :  { %v3477_v37 = vpack.c.bf16 %v3476_v11, %v3475_v44 }
0x1c67   :  { %6076 = vmatpush3.bf16.msra.mxu1 %v6272_v10 }
0x1c68   :  { %6018 = vmatmul.mubr.msk.bf16.vlgmr.msra.gmra.mrb[88].mxu0 %vm406_vm3, %v3477_v37 }
0x1c69   :  { %6034 = vmatpush3.bf16.msra.mxu0 %v6265_v7  ;;  %6041 = vmatprep.mubr.msk.bf16.mxu0 %vm6416_vm0, %v6415_v0 }
0x1c6a   :  { %6035 = vmatprep.subr.bf16.mxu0 %v6415_v0 }
0x1c6d   :  { %6036 = vmatpush3.bf16.msra.mxu0 %v6266_v38 }
0x1c6e   :  { %6037 = vmatprep.subr.bf16.mxu0 %v6415_v0 }
0x1c71   :  { %6038 = vmatpush3.bf16.msra.mxu0 %v6267_v50 }
0x1c72   :  { %6039 = vmatprep.subr.bf16.mxu0 %v6415_v0 }
0x1c75   :  { %6040 = vmatpush3.bf16.msra.mxu0 %v6268_v40 }
0x1c76   :  { %6057 = vmatprep.subr.bf16.mxu0 %v6415_v0 }
0x1c78   :  { %6042 = vmatmul.mubr.msk.bf16.vlgmr.msra.gmra.mrb[92].mxu0 %vm199_vm2, %v7269_v31 }
0x1c79   :  { %6059 = vmatprep.mubr.msk.bf16.mxu0 %vm6416_vm0, %v6415_v0 }
0x1d3b   :  { %v3516_v46 = vpop.f32.mrb[88].mxu0 }
0x1d3c   :  { %v6019_v13 = vpop.f32.mrb[89].mxu0 }
0x1d3d   :  { %v3519_v18 = vpop.f32.mrb[90].mxu0 }
0x1d3e   :  { %v6020_v15 = vpop.f32.mrb[91].mxu0 }
0x1d4b   :  { %v3690_v20 = vpop.f32.mrb[92].mxu0 }
0x1d4c   :  { %v6043_v25 = vpop.f32.mrb[93].mxu0  ;;  %v3691_v35 = vadd.f32 %v5218_v17, %v3690_v20 }
0x1d4d   :  { %v3693_v28 = vpop.f32.mrb[94].mxu0 }
0x1d4e   :  { %v3694_v42 = vadd.f32 %v5218_v17, %v3693_v28  ;;  %v6044_v49 = vpop.f32.mrb[95].mxu0 }
0x1d50   :  { %v3780_v51 = vpack.c.bf16 %v3694_v42, %v3691_v35 }
0x1d52   :  { %v3785_v31 = vsel %vm406_vm3, %v3780_v51, 0 }
0x1d53   :  { %6058 = vmatpush3.bf16.xpose.msra.mxu0 %v3785_v31 }
0x1d54   :  { %6063 = vmatprep.subr.bf16.mxu0 %v6415_v0 }
0x1d5a   :  { %6060 = vmatmul.mubr.msk.bf16.vlgmr.msra.gmra.mrb[96].mxu0 %vm406_vm3, %v3779_v16 }
0x1d5b   :  { %6064 = vmatpush3.bf16.msra.mxu0 %v3855_v36  ;;  %6065 = vmatprep.mubr.msk.bf16.mxu0 %vm6416_vm0, %v6415_v0 }
0x1e2d   :  { %v3821_v52 = vpop.f32.mrb[96].mxu0 }
0x1e2e   :  { %v3828_v55 = vmul.f32 0.25, %v3821_v52  ;;  %v6061_v24 = vpop.f32.mrb[97].mxu0 }
0x1e2f   :  { %v3824_v21 = vpop.f32.mrb[98].mxu0 }
0x1e30   :  { %v3829_v57 = vmul.f32 0.25, %v3824_v21  ;;  %v6062_v58 = vpop.f32.mrb[99].mxu0  ;;  %v3830_v22 = vadd.f32 %v7434_v39, %v3828_v55 }
0x1e32   :  { %v3832_v54 = vsel %vm406_vm3, %v3830_v22, -inf  ;;  %v3831_v23 = vadd.f32 %v7441_v43, %v3829_v57 }
0x1e33   :  { %3833 = vmax.xlane.f32.xlu0 %v3832_v54 }
0x1e34   :  { %v3835_v32 = vsel %vm406_vm3, %v3831_v23, -inf }
0x1e35   :  { %3836 = vmax.xlane.f32.xlu1 %v3835_v32  ;;  %v6273_v32 = vld [vmem:[%s7908_s16 + $0x80] ss:$16 sps:$4 sm:$0xff]  }
0x1ec0   :  { %v3834_v16 = vpop.xlane.xlu0 %3833 }
0x1ec1   :  { %v3838_v33 = vsub.f32 %v3830_v22, %v3834_v16  ;;  %v6276_v16 = vld [vmem:[%s7908_s16 + $0x88] ss:$16 sps:$4 sm:$0xff]  }
0x1ec2   :  { %v3837_v34 = vpop.xlane.xlu1 %3836 }
0x1ec3   :  { %v3840_v36 = vmul.f32 1.442695, %v3838_v33  ;;  %v3839_v29 = vsub.f32 %v3831_v23, %v3837_v34  ;;  %v6278_v23 = vld [vmem:[%s7908_s16 + $0x8c] ss:$16 sps:$4 sm:$0xff]   ;;  %v6281_v33 = vld [vmem:[%s7908_s16 + $0xa4] ss:$16 sps:$4 sm:$0xff]  }
0x1ec4   :  { %4213 = vmatprep.subr.bf16.mxu1 %v6278_v23  ;;  %v6284_v34 = vld [vmem:[%s7908_s16 + $0xac] ss:$16 sps:$4 sm:$0xff]   ;;  %v6323_v23 = vld [vmem:[%s7909_s18 + $0x130] sm:$0xff]  }
0x1ec5   :  { %6397 = vpow2.f32 %v3840_v36  ;;  %v3842_v30 = vmul.f32 1.442695, %v3839_v29  ;;  %v6279_v36 = vld [vmem:[%s7908_s16 + $0xa0] ss:$16 sps:$4 sm:$0xff]   ;;  %v6282_v29 = vld [vmem:[%s7908_s16 + $0xa8] ss:$16 sps:$4 sm:$0xff]  }
0x1ec7   :  { %6399 = vpow2.f32 %v3842_v30  ;;  %v6287_v30 = vld [vmem:[%s7908_s16 + $0xc4] ss:$16 sps:$4 sm:$0xff]  }
0x1ecf   :  { %v6398_v12 = vpop.eup %6397 }
0x1ed0   :  { %v3844_v47 = vsel %vm406_vm3, %v6398_v12, 0.0 }
0x1ed1   :  { %v6400_v39 = vpop.eup %6399  ;;  %3845 = vadd.xlane.f32.xlu0 %v3844_v47  ;;  %v6285_v47 = vld [vmem:[%s7908_s16 + $0xc0] ss:$16 sps:$4 sm:$0xff]  }
0x1ed2   :  { %v3847_v45 = vsel %vm406_vm3, %v6400_v39, 0.0 }
0x1ed3   :  { %3848 = vadd.xlane.f32.xlu1 %v3847_v45  ;;  %v6291_v45 = vld [vmem:[%s7908_s16 + $0xe0] ss:$16 sps:$4 sm:$0xff]  }
0x1ee4   :  { %3150 = vrot.lane.b32.xlu1 %v7572_v19, %s7951_s6 }
0x1ee7   :  { %3148 = vrot.lane.b32.xlu0 %v7570_v14, %s7951_s6 }
0x1ee8   :  { %3525 = vrot.lane.b32.xlu1 %v3516_v46, %s7952_s4 }
0x1eec   :  { %3527 = vrot.lane.b32.xlu1 %v3519_v18, %s7952_s4  ;;  %v5250_v18 = vld [vmem:[%s7907_s13 + $0x1] ss:$0 sm:$0xff] }
0x1f5e   :  { %v3846_v43 = vpop.xlane.xlu0 %3845 }
0x1f5f   :  { %6401 = vrcp.f32 %v3846_v43  ;;  %v6293_v43 = vld [vmem:[%s7908_s16 + $0xe4] ss:$16 sps:$4 sm:$0xff]  }
0x1f60   :  { %v3849_v48 = vpop.xlane.xlu1 %3848 }
0x1f61   :  { %6403 = vrcp.f32 %v3849_v48  ;;  %v6294_v48 = vld [vmem:[%s7908_s16 + $0xe8] ss:$16 sps:$4 sm:$0xff]  }
0x1f62   :  { %v3149_v62 = vpop.permute.xlu0 %3148 }
0x1f63   :  { %3154 = vst.msk [vmem:[#allocation2] sm:$0xff] %vm903_vm4, %v3149_v62  ;;  %v6296_v62 = vld [vmem:[%s7908_s16 + $0xec] ss:$16 sps:$4 sm:$0xff]  }
0x1f64   :  { %v3151_v6 = vpop.permute.xlu1 %3150 }
0x1f65   :  { %3155 = vst.msk [vmem:[#allocation2 + $0x8] sm:$0xff] %vm903_vm4, %v3151_v6  ;;  %v6297_v6 = vld [vmem:[%s7909_s18 + $0x140] sm:$0xff]  }
0x1f68   :  { %v3526_v59 = vpop.permute.xlu1 %3525 }
0x1f69   :  { %v6402_v60 = vpop.eup %6401  ;;  %3531 = vst.msk [vmem:[#allocation2] sm:$0xff] %vm1281_vm5, %v3526_v59  ;;  %v6298_v59 = vld [vmem:[%s7909_s18 + $0x1c0] sm:$0xff]  }
0x1f6a   :  { %v3852_v14 = vmul.f32 %v6402_v60, %v6398_v12  ;;  %v6290_v12 = vld [vmem:[%s7908_s16 + $0xcc] ss:$16 sps:$4 sm:$0xff]  }
0x1f6b   :  { %v6404_v19 = vpop.eup %6403 }
0x1f6c   :  { %v3853_v63 = vmul.f32 %v6404_v19, %v6400_v39  ;;  %v3528_v2 = vpop.permute.xlu1 %3527  ;;  %v6288_v39 = vld [vmem:[%s7908_s16 + $0xc8] ss:$16 sps:$4 sm:$0xff]  }
0x1f6d   :  { %3532 = vst.msk [vmem:[#allocation2 + $0x8] sm:$0xff] %vm1281_vm5, %v3528_v2 }
0x1f6e   :  { %v3854_v1 = vpack.c.bf16 %v3853_v63, %v3852_v14 }
0x1f70   :  { %6066 = vmatmul.mubr.msk.bf16.vlgmr.msra.gmra.mrb[100].mxu0 %vm406_vm3, %v3854_v1 }
0x1f71   :  { %4202 = vmatprep.mubr.bf16.mxu0 %v6420_v3 }
0x2043   :  { %v3893_v44 = vpop.f32.mrb[100].mxu0 }
0x2044   :  { %3902 = vrot.lane.b32.xlu0 %v3893_v44, %s7953_s10  ;;  %v6067_v11 = vpop.f32.mrb[101].mxu0 }
0x2045   :  { %v3896_v7 = vpop.f32.mrb[102].mxu0 }
0x2046   :  { %3904 = vrot.lane.b32.xlu1 %v3896_v7, %s7953_s10  ;;  %v6068_v37 = vpop.f32.mrb[103].mxu0  ;;  %v5259_v7 = vld [vmem:[%s7911_s15 + $0x1] ss:$0 sm:$0xff] }
0x20b6   :  { %v3903_v38 = vpop.permute.xlu0 %3902 }
0x20b7   :  { %3908 = vst.msk [vmem:[#allocation2] sm:$0xff] %vm1659_vm6, %v3903_v38 }
0x20b8   :  { %v3905_v50 = vpop.permute.xlu1 %3904 }
0x20b9   :  { %3909 = vst.msk [vmem:[#allocation2 + $0x8] sm:$0xff] %vm1659_vm6, %v3905_v50 }
0x20be   :  { %v3910_v40 = vld [vmem:[#allocation2] sm:$0xff] }
0x20c0   :  { %v3911_v46 = vld [vmem:[#allocation2 + $0x8] sm:$0xff] }
0x20c1   :  { %v3912_v13 = vpack.c.bf16 %v3911_v46, %v3910_v40  ;;  %v6299_v40 = vld [vmem:[%s7909_s18 + $0x100] sm:$0xff]  }
0x20c2   :  { %v6300_v46 = vld [vmem:[%s7909_s18 + $0x180] sm:$0xff]  }
0x20c3   :  { %6078 = vmatmul.mubr.msk.bf16.vlgmr.msra.gmra.mrb[80].mxu1 %vm199_vm2, %v3912_v13 }
0x20c4   :  { %4245 = vmatprep.mubr.bf16.mxu1 %v6420_v3  ;;  %4214 = vmatpush1.bf16.msra.mxu1 %v6276_v16  ;;  %v6325_v16 = vld [vmem:[%s7909_s18 + $0x178] sm:$0xff]  }
0x20c5   :  { %4215 = vmatprep.subr.bf16.mxu1 %v6284_v34  ;;  %v6327_v34 = vld [vmem:[%s7909_s18 + $0x138] sm:$0xff]  }
0x20c8   :  { %4216 = vmatpush1.bf16.msra.mxu1 %v6282_v29  ;;  %v5276_v29 = vld [vmem:[%s7912_s17 + $0x4] sm:$0xf] }
0x20c9   :  { %4217 = vmatprep.subr.bf16.mxu1 %v6290_v12  ;;  %v4078_v12 = vrot.slane %v5276_v29, %v1824_v53 }
0x20cc   :  { %4218 = vmatpush1.bf16.msra.mxu1 %v6288_v39  ;;  %v4082_v39 = vrot.slane %v5276_v29, %v1828_v61 }
0x20cd   :  { %4219 = vmatprep.subr.bf16.mxu1 %v6296_v62 }
0x20d0   :  { %4220 = vmatpush1.bf16.msra.mxu1 %v6294_v48 }
0x20d1   :  { %5635 = vmatprep.subr.bf16.mxu1 %v6298_v59 }
0x2196   :  { %v3991_v15 = vpop.f32.mrb[80].mxu1 }
0x2197   :  { %v3992_v17 = vadd.f32 %v5250_v18, %v3991_v15  ;;  %v6079_v20 = vpop.f32.mrb[81].mxu1  ;;  %v6302_v15 = vld [vmem:[%s7909_s18 + $0x1c8] sm:$0xff]  }
0x2198   :  { %v3994_v25 = vpop.f32.mrb[82].mxu1  ;;  %v6304_v20 = vld [vmem:[%s7909_s18 + $0x188] sm:$0xff]  }
0x2199   :  { %v3995_v28 = vadd.f32 %v5250_v18, %v3994_v25  ;;  %v6080_v35 = vpop.f32.mrb[83].mxu1  ;;  %v3998_v42 = vadd.f32 %v3992_v17, %v7260_v26  ;;  %v6301_v18 = vld [vmem:[%s7909_s18 + $0x148] sm:$0xff]   ;;  %v6305_v25 = vld [vmem:[%s7909_s18 + $0x150] sm:$0xff]  }
0x219a   :  { %v6303_v17 = vld [vmem:[%s7909_s18 + $0x108] sm:$0xff]   ;;  %v6307_v35 = vld [vmem:[%s7909_s18 + $0x110] sm:$0xff]  }
0x219b   :  { %v4004_v49 = vsel %vm199_vm2, %v3998_v42, 0.0  ;;  %v3999_v51 = vadd.f32 %v3995_v28, %v7262_v27  ;;  %v6275_v27 = vld [vmem:[%s7908_s16 + $0x84] ss:$16 sps:$4 sm:$0xff]  }
0x219c   :  { %4005 = vadd.xlane.f32.xlu0 %v4004_v49  ;;  %4170 = vmatprep.subr.bf16.mxu0 %v6275_v27  ;;  %v6306_v28 = vld [vmem:[%s7909_s18 + $0x1d0] sm:$0xff]   ;;  %v6309_v49 = vld [vmem:[%s7909_s18 + $0x158] sm:$0xff]  }
0x219d   :  { %v4007_v31 = vsel %vm199_vm2, %v3999_v51, 0.0  ;;  %4171 = vmatpush1.bf16.msra.mxu0 %v6273_v32  ;;  %v6322_v27 = vld [vmem:[%s7909_s18 + $0x1f0] sm:$0xff]  }
0x219e   :  { %4008 = vadd.xlane.f32.xlu1 %v4007_v31  ;;  %4172 = vmatprep.subr.bf16.mxu0 %v6281_v33  ;;  %v6311_v31 = vld [vmem:[%s7909_s18 + $0x118] sm:$0xff]   ;;  %v6324_v32 = vld [vmem:[%s7909_s18 + $0x1b0] sm:$0xff]  }
0x219f   :  { %v6326_v33 = vld [vmem:[%s7909_s18 + $0x1f8] sm:$0xff]  }
0x21a1   :  { %4173 = vmatpush1.bf16.msra.mxu0 %v6279_v36  ;;  %v6328_v36 = vld [vmem:[%s7909_s18 + $0x1b8] sm:$0xff]  }
0x21a2   :  { %4174 = vmatprep.subr.bf16.mxu0 %v6287_v30  ;;  %v4070_v30 = vrot.slane %v5276_v29, %v1816_v5 }
0x21a5   :  { %4175 = vmatpush1.bf16.msra.mxu0 %v6285_v47  ;;  %v4074_v47 = vrot.slane %v5276_v29, %v1820_v56 }
0x21a6   :  { %4176 = vmatprep.subr.bf16.mxu0 %v6293_v43 }
0x21a9   :  { %4177 = vmatpush1.bf16.msra.mxu0 %v6291_v45 }
0x21aa   :  { %5613 = vmatprep.subr.bf16.mxu0 %v6297_v6 }
0x2229   :  { %v4006_v3 = vpop.xlane.xlu0 %4005 }
0x222a   :  { %v4010_v52 = vmul.f32 0.015625, %v4006_v3  ;;  %v6312_v3 = vld [vmem:[%s7909_s18 + $0x198] sm:$0xff]  }
0x222b   :  { %v4009_v55 = vpop.xlane.xlu1 %4008 }
0x222c   :  { %v4012_v24 = vsub.f32 %v3998_v42, %v4010_v52  ;;  %v4011_v21 = vmul.f32 0.015625, %v4009_v55  ;;  %v6308_v42 = vld [vmem:[%s7909_s18 + $0x190] sm:$0xff]   ;;  %v6313_v52 = vld [vmem:[%s7909_s18 + $0x160] sm:$0xff]  }
0x222d   :  { %v6314_v55 = vld [vmem:[%s7909_s18 + $0x1e0] sm:$0xff]  }
0x222e   :  { %v4013_v57 = vsub.f32 %v3999_v51, %v4011_v21  ;;  %v4014_v58 = vmul.f32 %v4012_v24, %v4012_v24  ;;  %v6310_v51 = vld [vmem:[%s7909_s18 + $0x1d8] sm:$0xff]   ;;  %v6316_v21 = vld [vmem:[%s7909_s18 + $0x1a0] sm:$0xff]  }
0x2230   :  { %v4016_v22 = vsel %vm199_vm2, %v4014_v58, 0.0  ;;  %v4015_v54 = vmul.f32 %v4013_v57, %v4013_v57  ;;  %v6318_v58 = vld [vmem:[%s7909_s18 + $0x1e8] sm:$0xff]  }
0x2231   :  { %4017 = vadd.xlane.f32.xlu0 %v4016_v22  ;;  %v6319_v22 = vld [vmem:[%s7909_s18 + $0x128] sm:$0xff]  }
0x2232   :  { %v4019_v26 = vsel %vm199_vm2, %v4015_v54, 0.0  ;;  %v6320_v54 = vld [vmem:[%s7909_s18 + $0x1a8] sm:$0xff]  }
0x2235   :  { %4020 = vadd.xlane.f32.xlu0 %v4019_v26  ;;  %v6321_v26 = vld [vmem:[%s7909_s18 + $0x170] sm:$0xff]  }
0x22be   :  { %v4018_v60 = vpop.xlane.xlu0 %4017 }
0x22bf   :  { %v4022_v19 = vmul.f32 0.015625, %v4018_v60 }
0x22c1   :  { %v4024_v14 = vadd.f32 1e-05, %v4022_v19 }
0x22c2   :  { %v4021_v63 = vpop.xlane.xlu0 %4020 }
0x22c3   :  { %6405 = vrsqrt.f32 %v4024_v14  ;;  %v4023_v2 = vmul.f32 0.015625, %v4021_v63 }
0x22c5   :  { %v4025_v1 = vadd.f32 1e-05, %v4023_v2 }
0x22c7   :  { %6407 = vrsqrt.f32 %v4025_v1 }
0x22cd   :  { %v6406_v8 = vpop.eup %6405 }
0x22ce   :  { %v4028_v41 = vmul.f32 %v6406_v8, %v4012_v24  ;;  %v6315_v24 = vld [vmem:[%s7909_s18 + $0x120] sm:$0xff]  }
0x22d0   :  { %v4036_v44 = vmul.f32 %v5258_v9, %v4028_v41 }
0x22d1   :  { %v6408_v10 = vpop.eup %6407 }
0x22d2   :  { %v4029_v11 = vmul.f32 %v6408_v10, %v4013_v57  ;;  %v7740_v38 = vadd.f32 %v5259_v7, %v4036_v44  ;;  %v6317_v57 = vld [vmem:[%s7909_s18 + $0x168] sm:$0xff]  }
0x22d4   :  { %v4037_v37 = vmul.f32 %v5258_v9, %v4029_v11 }
0x22d6   :  { %v7742_v50 = vadd.f32 %v5259_v7, %v4037_v37 }
0x22d8   :  { %v4046_v13 = vpack.c.bf16 %v7742_v50, %v7740_v38 }
0x22da   :  { %5293 = vmatmul.mubr.msk.bf16.vlgmr.msra.gmra.mrb[104].mxu0 %vm199_vm2, %v4046_v13  ;;  %5294 = vmatmul.mubr.msk.bf16.vlgmr.msra.gmra.mrb[84].mxu1 %vm199_vm2, %v4046_v13 }
0x22db   :  { %5614 = vmatpush3.bf16.msra.mxu0 %v6299_v40  ;;  %5636 = vmatpush3.bf16.msra.mxu1 %v6300_v46 }
0x22dc   :  { %5615 = vmatprep.subr.bf16.mxu0 %v6301_v18  ;;  %5637 = vmatprep.subr.bf16.mxu1 %v6302_v15 }
0x22df   :  { %5616 = vmatpush3.bf16.msra.mxu0 %v6303_v17  ;;  %5638 = vmatpush3.bf16.msra.mxu1 %v6304_v20  ;;  %v5360_v17 = vld [vmem:[%s7913_s19 + $0x1] ss:$0 sm:$0xff] }
0x22e0   :  { %5617 = vmatprep.subr.bf16.mxu0 %v6305_v25  ;;  %5639 = vmatprep.subr.bf16.mxu1 %v6306_v28 }
0x22e3   :  { %5618 = vmatpush3.bf16.msra.mxu0 %v6307_v35  ;;  %5640 = vmatpush3.bf16.msra.mxu1 %v6308_v42 }
0x22e4   :  { %5619 = vmatprep.subr.bf16.mxu0 %v6309_v49  ;;  %5641 = vmatprep.subr.bf16.mxu1 %v6310_v51 }
0x22e7   :  { %5620 = vmatpush3.bf16.msra.mxu0 %v6311_v31  ;;  %5642 = vmatpush3.bf16.msra.mxu1 %v6312_v3 }
0x22e8   :  { %5621 = vmatprep.subr.bf16.mxu0 %v6313_v52  ;;  %5643 = vmatprep.subr.bf16.mxu1 %v6314_v55 }
0x22eb   :  { %5622 = vmatpush3.bf16.msra.mxu0 %v6315_v24  ;;  %5644 = vmatpush3.bf16.msra.mxu1 %v6316_v21 }
0x22ec   :  { %5623 = vmatprep.subr.bf16.mxu0 %v6317_v57  ;;  %5645 = vmatprep.subr.bf16.mxu1 %v6318_v58 }
0x22ef   :  { %5624 = vmatpush3.bf16.msra.mxu0 %v6319_v22  ;;  %5646 = vmatpush3.bf16.msra.mxu1 %v6320_v54 }
0x22f0   :  { %5625 = vmatprep.subr.bf16.mxu0 %v6321_v26  ;;  %5647 = vmatprep.subr.bf16.mxu1 %v6322_v27 }
0x22f3   :  { %5626 = vmatpush3.bf16.msra.mxu0 %v6323_v23  ;;  %5648 = vmatpush3.bf16.msra.mxu1 %v6324_v32 }
0x22f4   :  { %5627 = vmatprep.subr.bf16.mxu0 %v6325_v16  ;;  %5649 = vmatprep.subr.bf16.mxu1 %v6326_v33 }
0x22f7   :  { %5628 = vmatpush3.bf16.msra.mxu0 %v6327_v34  ;;  %5650 = vmatpush3.bf16.msra.mxu1 %v6328_v36 }
0x23ad   :  { %v4204_v45 = vpop.f32.mrb[104].mxu0  ;;  %v4247_v43 = vpop.f32.mrb[84].mxu1 }
0x23ae   :  { %v4205_v48 = vadd.f32 %v4204_v45, %v4070_v30  ;;  %v4248_v62 = vadd.f32 %v4247_v43, %v4078_v12  ;;  %v4206_v6 = vpop.f32.mrb[105].mxu0  ;;  %v4249_v59 = vpop.f32.mrb[85].mxu1 }
0x23af   :  { %v4207_v60 = vadd.f32 %v4206_v6, %v4074_v47  ;;  %v4250_v19 = vadd.f32 %v4249_v59, %v4082_v39  ;;  %v4208_v14 = vpop.f32.mrb[106].mxu0  ;;  %v4251_v63 = vpop.f32.mrb[86].mxu1  ;;  %v5395_v6 = vld [vmem:[%s7914_s20 + $0x1] ss:$0 sm:$0xff] }
0x23b0   :  { %v4209_v5 = vadd.f32 %v4208_v14, %v4070_v30  ;;  %v4252_v2 = vadd.f32 %v4251_v63, %v4078_v12  ;;  %v4210_v1 = vpop.f32.mrb[107].mxu0  ;;  %v4253_v53 = vpop.f32.mrb[87].mxu1  ;;  %v4256_v56 = vmax.f32 %v4205_v48, 0.0  ;;  %v4258_v9 = vmax.f32 %v4248_v62, 0.0  ;;  %v5396_v63 = vld [vmem:[%s7915_s21 + $0x1] ss:$0 sm:$0xff] }
0x23b1   :  { %v4211_v8 = vadd.f32 %v4210_v1, %v4074_v47  ;;  %v4254_v41 = vadd.f32 %v4253_v53, %v4082_v39  ;;  %v4257_v10 = vmax.f32 %v4207_v60, 0.0  ;;  %v4259_v44 = vmax.f32 %v4250_v19, 0.0 }
0x23b2   :  { %v4260_v4 = vmax.f32 %v4209_v5, 0.0  ;;  %v4262_v61 = vmax.f32 %v4252_v2, 0.0  ;;  %v6421_v12 = vmov 0.0|0.0  }
0x23b3   :  { %v4261_v11 = vmax.f32 %v4211_v8, 0.0  ;;  %v4263_v7 = vmax.f32 %v4254_v41, 0.0  ;;  %6100 = vmatprep.subr.bf16.mxu0 %v6421_v12  ;;  %v4663_v8 = vld [vmem:[%s7917_s3] sm:$0x3] }
0x23b4   :  { %v4264_v37 = vpack.c.bf16 %v4260_v4, %v4256_v56  ;;  %v4266_v40 = vpack.c.bf16 %v4262_v61, %v4258_v9  ;;  %v6329_v41 = vld [vmem:[%s7916_s22] sm:$0xff]   ;;  %v6330_v56 = vld [vmem:[%s7916_s22 + $0x8] sm:$0xff]   ;;  %v6331_v9 = vld [vmem:[%s7916_s22 + $0x10] sm:$0xff]  }
0x23b5   :  { %v4265_v46 = vpack.c.bf16 %v4261_v11, %v4257_v10  ;;  %v4267_v13 = vpack.c.bf16 %v4263_v7, %v4259_v44  ;;  %v6332_v4 = vld [vmem:[%s7916_s22 + $0x18] sm:$0xff]   ;;  %v5398_v11 = vld [vmem:[%s7918_s23] ss:$0 sm:$0xff] }
0x23b7   :  { %4565 = vmatprep.mubr.bf16.mxu0 %v4265_v46  ;;  %4606 = vmatprep.mubr.bf16.mxu1 %v4267_v13 }
0x23b8   :  { %4566 = vmatmul.mubr.bf16.vlgmr.msra.gmra.mrb[108].mxu0 %v4264_v37  ;;  %4607 = vmatmul.mubr.bf16.vlgmr.msra.gmra.mrb[88].mxu1 %v4266_v40 }
0x23b9   :  { %6085 = vmatprep.mubr.msk.f32.mxu0 %vm6416_vm0, %v6415_v0 }
0x248b   :  { %v5629_v18 = vpop.f32.mrb[108].mxu0  ;;  %v5651_v15 = vpop.f32.mrb[88].mxu1 }
0x248c   :  { %v5630_v20 = vpop.f32.mrb[109].mxu0  ;;  %v5652_v25 = vpop.f32.mrb[89].mxu1 }
0x248d   :  { %v5631_v28 = vadd.f32 %v5630_v20, %v5629_v18  ;;  %v5653_v35 = vadd.f32 %v5652_v25, %v5651_v15  ;;  %v5632_v42 = vpop.f32.mrb[110].mxu0  ;;  %v5654_v49 = vpop.f32.mrb[90].mxu1 }
0x248e   :  { %v5633_v51 = vpop.f32.mrb[111].mxu0  ;;  %v5655_v31 = vpop.f32.mrb[91].mxu1 }
0x248f   :  { %v4568_v3 = vadd.f32 %v5631_v28, %v5360_v17  ;;  %v5634_v52 = vadd.f32 %v5633_v51, %v5632_v42  ;;  %v5656_v55 = vadd.f32 %v5655_v31, %v5654_v49 }
0x2491   :  { %v4609_v24 = vadd.f32 %v5653_v35, %v4568_v3  ;;  %v4571_v21 = vadd.f32 %v5634_v52, %v5360_v17 }
0x2493   :  { %v4612_v57 = vadd.f32 %v5656_v55, %v4571_v21  ;;  %v4615_v58 = vadd.f32 %v4609_v24, %v7740_v38 }
0x2495   :  { %v4621_v22 = vsel %vm199_vm2, %v4615_v58, 0.0  ;;  %v4616_v54 = vadd.f32 %v4612_v57, %v7742_v50 }
0x2496   :  { %4622 = vadd.xlane.f32.xlu0 %v4621_v22 }
0x2497   :  { %v4624_v26 = vsel %vm199_vm2, %v4616_v54, 0.0 }
0x2498   :  { %4625 = vadd.xlane.f32.xlu1 %v4624_v26 }
0x2523   :  { %v4623_v27 = vpop.xlane.xlu0 %4622 }
0x2524   :  { %v4627_v23 = vmul.f32 0.015625, %v4623_v27 }
0x2525   :  { %v4626_v32 = vpop.xlane.xlu1 %4625 }
0x2526   :  { %v4629_v16 = vsub.f32 %v4615_v58, %v4627_v23  ;;  %v4628_v33 = vmul.f32 0.015625, %v4626_v32 }
0x2528   :  { %v4630_v34 = vsub.f32 %v4616_v54, %v4628_v33  ;;  %v4631_v36 = vmul.f32 %v4629_v16, %v4629_v16 }
0x252a   :  { %v4633_v29 = vsel %vm199_vm2, %v4631_v36, 0.0  ;;  %v4632_v30 = vmul.f32 %v4630_v34, %v4630_v34 }
0x252b   :  { %4634 = vadd.xlane.f32.xlu0 %v4633_v29 }
0x252c   :  { %v4636_v38 = vsel %vm199_vm2, %v4632_v30, 0.0 }
0x252d   :  { %4637 = vadd.xlane.f32.xlu1 %v4636_v38 }
0x25b8   :  { %v4635_v50 = vpop.xlane.xlu0 %4634 }
0x25b9   :  { %v4639_v47 = vmul.f32 0.015625, %v4635_v50 }
0x25ba   :  { %v4638_v39 = vpop.xlane.xlu1 %4637 }
0x25bb   :  { %v4641_v45 = vadd.f32 1e-05, %v4639_v47  ;;  %v4640_v43 = vmul.f32 0.015625, %v4638_v39 }
0x25bd   :  { %6409 = vrsqrt.f32 %v4641_v45  ;;  %v4642_v48 = vadd.f32 1e-05, %v4640_v43 }
0x25bf   :  { %6411 = vrsqrt.f32 %v4642_v48 }
0x25c7   :  { %v6410_v62 = vpop.eup %6409 }
0x25c8   :  { %v4645_v59 = vmul.f32 %v6410_v62, %v4629_v16 }
0x25c9   :  { %v6412_v60 = vpop.eup %6411 }
0x25ca   :  { %v4646_v19 = vmul.f32 %v6412_v60, %v4630_v34  ;;  %v4653_v14 = vmul.f32 %v5395_v6, %v4645_v59 }
0x25cc   :  { %v4654_v5 = vmul.f32 %v5395_v6, %v4646_v19  ;;  %v4661_v2 = vadd.f32 %v5396_v63, %v4653_v14 }
0x25ce   :  { %v4662_v1 = vadd.f32 %v5396_v63, %v4654_v5 }
0x25d0   :  { %v6101_v53 = vpack.c.bf16 %v4662_v1, %v4661_v2 }
0x25d2   :  { %6102 = vmatpush3.bf16.msra.mxu0 %v6101_v53 }
0x25d3   :  { %6088 = vmatprep.subr.bf16.mxu0 %v6415_v0 }
0x25d5   :  { %6086 = vmatmul.mubr.msk.f32.vlgmr.msra.gmra.mrb[112].mxu0 %vm406_vm3, %v4663_v8 }
0x25d6   :  { %6089 = vmatpush3.bf16.msra.mxu0 %v6329_v41  ;;  %6096 = vmatprep.mubr.msk.bf16.mxu0 %vm6416_vm0, %v6415_v0 }
0x25d7   :  { %6090 = vmatprep.subr.bf16.mxu0 %v6415_v0 }
0x25da   :  { %6091 = vmatpush3.bf16.msra.mxu0 %v6330_v56 }
0x25db   :  { %6092 = vmatprep.subr.bf16.mxu0 %v6415_v0 }
0x25de   :  { %6093 = vmatpush3.bf16.msra.mxu0 %v6331_v9 }
0x25df   :  { %6094 = vmatprep.subr.bf16.mxu0 %v6415_v0 }
0x25e2   :  { %6095 = vmatpush3.bf16.msra.mxu0 %v6332_v4 }
0x26a8   :  { %v4733_v61 = vpop.f32.mrb[112].mxu0 }
0x26a9   :  { %v4737_v10 = vpack.c.bf16 %v4733_v61, %v4733_v61  ;;  %v6087_v44 = vpop.f32.mrb[113].mxu0 }
0x26ab   :  { %6097 = vmatmul.mubr.msk.bf16.vlgmr.msra.gmra.mrb[116].mxu0 %vm199_vm2, %v4737_v10 }
0x277e   :  { %v4814_v7 = vpop.f32.mrb[116].mxu0 }
0x277f   :  { %v4815_v37 = vadd.f32 %v5398_v11, %v4814_v7  ;;  %v6098_v40 = vpop.f32.mrb[117].mxu0 }
0x2780   :  { %v4817_v46 = vpop.f32.mrb[118].mxu0 }
0x2781   :  { %4821 = vst.msk [vmem:[%s7919_s24] sm:$0x3] %vm4820_vm7, %v4815_v37  ;;  %v6099_v0 = vpop.f32.mrb[119].mxu0 }

</bundles_post_ra>
